<compile_context>
chip_gen: v5e
topology: v5e:2x2
jax: 0.10.0
libtpu: 0.0.40
codegen_flags: <defaults>
</compile_context>

<pallas_src>
import math

import jax
import jax.numpy as jnp
from jax.experimental import pallas as pl
from jax.experimental.pallas import tpu as pltpu


def _round_up(x, m):
    return ((x + m - 1) // m) * m


def _vmem_limit_bytes():
    # Leave ~25% headroom below physical VMEM (64 MiB on v7x, 128 MiB v5e/v6e).
    try:
        cap = int(pltpu.get_tpu_info().vmem_capacity_bytes)
        return (cap * 3) // 4
    except Exception:
        return None  # fall back to the compiler's default scoped limit


# ---------------------------------------------------------------------------
# Fused MLP kernel: y = (relu(x @ W1 + b1)) @ W2 + b2
# x/W1/W2 arrive as bf16 (MXU-native); biases and epilogue are f32.
# ---------------------------------------------------------------------------
def _mlp_kernel(x_ref, w1_ref, b1_ref, w2_ref, b2_ref, o_ref):
    # Layer 1: bf16 x bf16 -> f32 accumulate on the MXU.
    h = jnp.dot(x_ref[...], w1_ref[...], preferred_element_type=jnp.float32)
    h = jnp.maximum(h + b1_ref[...], 0.0)  # f32 epilogue (bias + ReLU)
    # Layer 2: hidden stays in VMEM/vregs; cast back to bf16 only to feed MXU.
    y = jnp.dot(h.astype(jnp.bfloat16), w2_ref[...],
                preferred_element_type=jnp.float32)
    o_ref[...] = (y + b2_ref[...]).astype(o_ref.dtype)


def projection_head_forward(params, x):
    """Pallas forward for ProjectionHead. x: (M, input_dim) f32 -> (M, output_dim) f32."""
    w1, b1 = params["w1"], params["b1"]
    w2, b2 = params["w2"], params["b2"]
    M, K = x.shape
    H = w1.shape[1]
    O = w2.shape[1]

    # Tile the batch dimension; pad rows to a multiple of the tile (and of 8).
    tm = min(256, _round_up(M, 8))
    Mpad = _round_up(M, tm)
    if Mpad != M:
        x = jnp.pad(x, ((0, Mpad - M), (0, 0)))

    # bf16 operands for the MXU; biases kept f32 for the epilogue.
    xb = x.astype(jnp.bfloat16)
    w1b = w1.astype(jnp.bfloat16)
    w2b = w2.astype(jnp.bfloat16)
    b1r = b1.reshape(1, H).astype(jnp.float32)
    b2r = b2.reshape(1, O).astype(jnp.float32)

    cp_kwargs = dict(dimension_semantics=("parallel",))
    vmem_limit = _vmem_limit_bytes()
    if vmem_limit is not None:
        cp_kwargs["vmem_limit_bytes"] = vmem_limit

    out = pl.pallas_call(
        _mlp_kernel,
        out_shape=jax.ShapeDtypeStruct((Mpad, O), jnp.float32),
        grid=(pl.cdiv(Mpad, tm),),
        in_specs=[
            pl.BlockSpec((tm, K), lambda i: (i, 0)),   # x tile (pipelined over M)
            pl.BlockSpec((K, H), lambda i: (0, 0)),    # W1 (resident)
            pl.BlockSpec((1, H), lambda i: (0, 0)),    # b1
            pl.BlockSpec((H, O), lambda i: (0, 0)),    # W2 (resident)
            pl.BlockSpec((1, O), lambda i: (0, 0)),    # b2
        ],
        out_specs=pl.BlockSpec((tm, O), lambda i: (i, 0)),
        compiler_params=pltpu.CompilerParams(**cp_kwargs),
    )(xb, w1b, b1r, w2b, b2r)
    return out[:M]


# ---------------------------------------------------------------------------
# Deterministic parameters (PyTorch nn.Linear default init) + pure-JAX reference
# ---------------------------------------------------------------------------
def make_params(input_dim=2048, hidden_dim=512, output_dim=128, key=None):
    key = jax.random.PRNGKey(0) if key is None else key
    k1, k2, k3, k4 = jax.random.split(key, 4)
    bnd1 = 1.0 / math.sqrt(input_dim)
    bnd2 = 1.0 / math.sqrt(hidden_dim)
    return {
        "w1": jax.random.uniform(k1, (input_dim, hidden_dim), jnp.float32, -bnd1, bnd1),
        "b1": jax.random.uniform(k2, (hidden_dim,), jnp.float32, -bnd1, bnd1),
        "w2": jax.random.uniform(k3, (hidden_dim, output_dim), jnp.float32, -bnd2, bnd2),
        "b2": jax.random.uniform(k4, (output_dim,), jnp.float32, -bnd2, bnd2),
    }


def reference_forward(params, x):
    h = jnp.maximum(x @ params["w1"] + params["b1"], 0.0)
    return h @ params["w2"] + params["b2"]


if __name__ == "__main__":
    root = jax.random.PRNGKey(0)
    kx, kp = jax.random.split(root)

    batch, input_dim, hidden_dim, output_dim = 16, 2048, 512, 128
    x = jax.random.normal(kx, (batch, input_dim), jnp.float32)
    params = make_params(input_dim, hidden_dim, output_dim, key=kp)

    fwd = jax.jit(projection_head_forward)
    y = jax.block_until_ready(fwd(params, x))

    assert y.shape == (batch, output_dim), y.shape
    assert bool(jnp.all(jnp.isfinite(y)))

    # Numerical check against the f32 reference (tolerance accounts for the
    # bf16 MXU operands).
    ref = reference_forward(params, x)
    rel_err = float(jnp.max(jnp.abs(y - ref)) / (jnp.max(jnp.abs(ref)) + 1e-6))
    assert rel_err < 5e-2, rel_err

    print("KERNEL_OK")
</pallas_src>

<mosaic_0001>
module attributes {stable_mosaic.version = 11 : i64} {
  func.func @_mlp_kernel(%arg0: i32, %arg1: memref<16x2048xbf16, #tpu.memory_space<vmem>>, %arg2: memref<2048x512xbf16, #tpu.memory_space<vmem>>, %arg3: memref<1x512xf32, #tpu.memory_space<vmem>>, %arg4: memref<512x128xbf16, #tpu.memory_space<vmem>>, %arg5: memref<1x128xf32, #tpu.memory_space<vmem>>, %arg6: memref<16x128xf32, #tpu.memory_space<vmem>>) attributes {dimension_semantics = [#tpu.dimension_semantics<parallel>], iteration_bounds = array<i64: 1>, scalar_prefetch = 0 : i64, scratch_operands = 0 : i64, tpu.core_type = #tpu.core_type<tc>, window_params = [{transform_indices = @transform_0, window_bounds = array<i64: 16, 2048>}, {pipeline_mode = #tpu.pipeline_mode<synchronous>, transform_indices = @transform_1, window_bounds = array<i64: 2048, 512>}, {pipeline_mode = #tpu.pipeline_mode<synchronous>, transform_indices = @transform_2, window_bounds = array<i64: 1, 512>}, {pipeline_mode = #tpu.pipeline_mode<synchronous>, transform_indices = @transform_3, window_bounds = array<i64: 512, 128>}, {pipeline_mode = #tpu.pipeline_mode<synchronous>, transform_indices = @transform_4, window_bounds = array<i64: 1, 128>}, {transform_indices = @transform_5, window_bounds = array<i64: 16, 128>}]} {
    %c0 = arith.constant 0 : index
    %c0_0 = arith.constant 0 : index
    %0 = vector.load %arg1[%c0, %c0_0] : memref<16x2048xbf16, #tpu.memory_space<vmem>>, vector<16x2048xbf16>
    %c0_1 = arith.constant 0 : index
    %c0_2 = arith.constant 0 : index
    %1 = vector.load %arg2[%c0_1, %c0_2] : memref<2048x512xbf16, #tpu.memory_space<vmem>>, vector<2048x512xbf16>
    %cst = arith.constant dense<0.000000e+00> : vector<16x512xf32>
    %2 = tpu.matmul %0, %1, %cst {dimension_numbers = #tpu.dot_dimension_numbers<[1], [0], [0], [1], [0, 0, 1, 1], [], []>} : vector<16x2048xbf16>, vector<2048x512xbf16>, vector<16x512xf32> -> vector<16x512xf32>
    %c0_3 = arith.constant 0 : index
    %c0_4 = arith.constant 0 : index
    %3 = vector.load %arg3[%c0_3, %c0_4] : memref<1x512xf32, #tpu.memory_space<vmem>>, vector<1x512xf32>
    %4 = vector.broadcast %3 : vector<1x512xf32> to vector<16x512xf32>
    %5 = arith.addf %2, %4 : vector<16x512xf32>
    %cst_5 = arith.constant 0.000000e+00 : f32
    %6 = vector.broadcast %cst_5 : f32 to vector<16x512xf32>
    %7 = arith.maximumf %5, %6 : vector<16x512xf32>
    %8 = arith.truncf %7 : vector<16x512xf32> to vector<16x512xbf16>
    %c0_6 = arith.constant 0 : index
    %c0_7 = arith.constant 0 : index
    %9 = vector.load %arg4[%c0_6, %c0_7] : memref<512x128xbf16, #tpu.memory_space<vmem>>, vector<512x128xbf16>
    %cst_8 = arith.constant dense<0.000000e+00> : vector<16x128xf32>
    %10 = tpu.matmul %8, %9, %cst_8 {dimension_numbers = #tpu.dot_dimension_numbers<[1], [0], [0], [1], [0, 0, 1, 1], [], []>} : vector<16x512xbf16>, vector<512x128xbf16>, vector<16x128xf32> -> vector<16x128xf32>
    %c0_9 = arith.constant 0 : index
    %c0_10 = arith.constant 0 : index
    %11 = vector.load %arg5[%c0_9, %c0_10] : memref<1x128xf32, #tpu.memory_space<vmem>>, vector<1x128xf32>
    %12 = vector.broadcast %11 : vector<1x128xf32> to vector<16x128xf32>
    %13 = arith.addf %10, %12 : vector<16x128xf32>
    %c0_11 = arith.constant 0 : index
    %c0_12 = arith.constant 0 : index
    %14 = vector.load %arg6[%c0_11, %c0_12] : memref<16x128xf32, #tpu.memory_space<vmem>>, vector<16x128xf32>
    tpu.vector_store %arg6[%c0_11, %c0_12], %13 {strides = array<i32>} : memref<16x128xf32, #tpu.memory_space<vmem>>, vector<16x128xf32>,
    return
  }
  func.func @transform_0(%arg0: i32) -> (i32, i32) {
    %c0_i32 = arith.constant 0 : i32
    %c0_i32_0 = arith.constant 0 : i32
    return %arg0, %c0_i32 : i32, i32
  }
  func.func @transform_1(%arg0: i32) -> (i32, i32) {
    %c0_i32 = arith.constant 0 : i32
    %c0_i32_0 = arith.constant 0 : i32
    %c0_i32_1 = arith.constant 0 : i32
    return %c0_i32, %c0_i32_0 : i32, i32
  }
  func.func @transform_2(%arg0: i32) -> (i32, i32) {
    %c0_i32 = arith.constant 0 : i32
    %c0_i32_0 = arith.constant 0 : i32
    %c0_i32_1 = arith.constant 0 : i32
    return %c0_i32, %c0_i32_0 : i32, i32
  }
  func.func @transform_3(%arg0: i32) -> (i32, i32) {
    %c0_i32 = arith.constant 0 : i32
    %c0_i32_0 = arith.constant 0 : i32
    %c0_i32_1 = arith.constant 0 : i32
    return %c0_i32, %c0_i32_0 : i32, i32
  }
  func.func @transform_4(%arg0: i32) -> (i32, i32) {
    %c0_i32 = arith.constant 0 : i32
    %c0_i32_0 = arith.constant 0 : i32
    %c0_i32_1 = arith.constant 0 : i32
    return %c0_i32, %c0_i32_0 : i32, i32
  }
  func.func @transform_5(%arg0: i32) -> (i32, i32) {
    %c0_i32 = arith.constant 0 : i32
    %c0_i32_0 = arith.constant 0 : i32
    return %arg0, %c0_i32 : i32, i32
  }
}

</mosaic_0001>

<bundles_post_ra>
// kernel: projection_head_forward.1
= control target key start
LH: loop header
LB: loop body
LE: loop exit
PB: predicated region body
PF: predicated region fallthrough
CT: control target
= control target key end

     0   :  { %s10827_s0 = inlined_call_operand.vmem [shape: bf16[16,2048], index: 0, kind: input, shape index: {}]   ;;  %s10828_s1 = inlined_call_operand.vmem [shape: bf16[2048,512], index: 1, kind: input, shape index: {}]   ;;  %s10829_s2 = inlined_call_operand.vmem [shape: f32[1,512], index: 2, kind: input, shape index: {}]   ;;  %s10830_s3 = inlined_call_operand.vmem [shape: bf16[512,128], index: 3, kind: input, shape index: {}]   ;;  %s10831_s4 = inlined_call_operand.vmem [shape: f32[1,128], index: 4, kind: input, shape index: {}]   ;;  %s10832_s5 = inlined_call_operand.hbm [shape: f32[16,128], index: 5, kind: output, shape index: {}]  }
   0x1   :  { %v4621_v0 = vld [vmem:[%s10828_s1 + $0xe0] sm:$0xf]  ;;  %v6729_v1 = vld [vmem:[%s10828_s1 + $0xec] sm:$0xf0] }
   0x2   :  { %v4749_v2 = vld [vmem:[%s10828_s1 + $0x1e0] sm:$0xf]  ;;  %v4622_v3 = vor.u32 %v6729_v1, %v4621_v0  ;;  %v6761_v4 = vld [vmem:[%s10828_s1 + $0x1ec] sm:$0xf0] }
   0x3   :  { %v4877_v5 = vld [vmem:[%s10828_s1 + $0x2e0] sm:$0xf]  ;;  %v6793_v6 = vld [vmem:[%s10828_s1 + $0x2ec] sm:$0xf0]  ;;  %v4750_v7 = vor.u32 %v6761_v4, %v4749_v2 }
   0x4   :  { %v4878_v8 = vor.u32 %v6793_v6, %v4877_v5  ;;  %v5005_v9 = vld [vmem:[%s10828_s1 + $0x3e0] sm:$0xf]  ;;  %v6825_v10 = vld [vmem:[%s10828_s1 + $0x3ec] sm:$0xf0]  ;;  %3199 = vmatpush.bf16.msra.mxu0 %v4622_v3 }
   0x5   :  { %v4605_v11 = vld [vmem:[%s10828_s1 + $0xc0] sm:$0xf]  ;;  %v5006_v12 = vor.u32 %v6825_v10, %v5005_v9  ;;  %v6725_v13 = vld [vmem:[%s10828_s1 + $0xcc] sm:$0xf0]  ;;  %3213 = vmatpush.bf16.msra.mxu1 %v4750_v7 }
   0x6   :  { %v4733_v14 = vld [vmem:[%s10828_s1 + $0x1c0] sm:$0xf]  ;;  %v6757_v15 = vld [vmem:[%s10828_s1 + $0x1cc] sm:$0xf0]  ;;  %3227 = vmatpush.bf16.msra.mxu2 %v4878_v8  ;;  %v4606_v16 = vor.u32 %v6725_v13, %v4605_v11 }
   0x7   :  { %v4734_v17 = vor.u32 %v6757_v15, %v4733_v14  ;;  %v4861_v18 = vld [vmem:[%s10828_s1 + $0x2c0] sm:$0xf]  ;;  %v6789_v19 = vld [vmem:[%s10828_s1 + $0x2cc] sm:$0xf0]  ;;  %3241 = vmatpush.bf16.msra.mxu3 %v5006_v12 }
   0x8   :  { %v4989_v20 = vld [vmem:[%s10828_s1 + $0x3c0] sm:$0xf]  ;;  %v4862_v21 = vor.u32 %v6789_v19, %v4861_v18  ;;  %v6821_v22 = vld [vmem:[%s10828_s1 + $0x3cc] sm:$0xf0]  ;;  %3200 = vmatpush.bf16.msra.mxu0 %v4606_v16 }
   0x9   :  { %v4589_v23 = vld [vmem:[%s10828_s1 + $0xa0] sm:$0xf]  ;;  %v6721_v24 = vld [vmem:[%s10828_s1 + $0xac] sm:$0xf0]  ;;  %v4990_v25 = vor.u32 %v6821_v22, %v4989_v20  ;;  %3214 = vmatpush.bf16.msra.mxu1 %v4734_v17 }
   0xa   :  { %v4717_v26 = vld [vmem:[%s10828_s1 + $0x1a0] sm:$0xf]  ;;  %v6753_v27 = vld [vmem:[%s10828_s1 + $0x1ac] sm:$0xf0]  ;;  %v4590_v29 = vor.u32 %v6721_v24, %v4589_v23  ;;  %3228 = vmatpush.bf16.msra.mxu2 %v4862_v21 }
   0xb   :  { %v4845_v28 = vld [vmem:[%s10828_s1 + $0x2a0] sm:$0xf]  ;;  %v6785_v30 = vld [vmem:[%s10828_s1 + $0x2ac] sm:$0xf0]  ;;  %v4718_v33 = vor.u32 %v6753_v27, %v4717_v26  ;;  %3242 = vmatpush.bf16.msra.mxu3 %v4990_v25 }
   0xc   :  { %v4973_v31 = vld [vmem:[%s10828_s1 + $0x3a0] sm:$0xf]  ;;  %v6817_v32 = vld [vmem:[%s10828_s1 + $0x3ac] sm:$0xf0]  ;;  %v4846_v34 = vor.u32 %v6785_v30, %v4845_v28  ;;  %3201 = vmatpush.bf16.msra.mxu0 %v4590_v29 }
   0xd   :  { %v4573_v35 = vld [vmem:[%s10828_s1 + $0x80] sm:$0xf]  ;;  %v6717_v36 = vld [vmem:[%s10828_s1 + $0x8c] sm:$0xf0]  ;;  %v4974_v38 = vor.u32 %v6817_v32, %v4973_v31  ;;  %3215 = vmatpush.bf16.msra.mxu1 %v4718_v33 }
   0xe   :  { %v4701_v37 = vld [vmem:[%s10828_s1 + $0x180] sm:$0xf]  ;;  %v6749_v39 = vld [vmem:[%s10828_s1 + $0x18c] sm:$0xf0]  ;;  %v4574_v44 = vor.u32 %v6717_v36, %v4573_v35  ;;  %3229 = vmatpush.bf16.msra.mxu2 %v4846_v34 }
   0xf   :  { %v4829_v40 = vld [vmem:[%s10828_s1 + $0x280] sm:$0xf]  ;;  %v6781_v41 = vld [vmem:[%s10828_s1 + $0x28c] sm:$0xf0]  ;;  %v4702_v45 = vor.u32 %v6749_v39, %v4701_v37  ;;  %3243 = vmatpush.bf16.msra.mxu3 %v4974_v38 }
  0x10   :  { %v4957_v42 = vld [vmem:[%s10828_s1 + $0x380] sm:$0xf]  ;;  %v6813_v43 = vld [vmem:[%s10828_s1 + $0x38c] sm:$0xf0]  ;;  %v4830_v46 = vor.u32 %v6781_v41, %v4829_v40  ;;  %3202 = vmatpush.bf16.msra.mxu0 %v4574_v44 }
  0x11   :  { %v4557_v47 = vld [vmem:[%s10828_s1 + $0x60] sm:$0xf]  ;;  %v6713_v48 = vld [vmem:[%s10828_s1 + $0x6c] sm:$0xf0]  ;;  %v4958_v50 = vor.u32 %v6813_v43, %v4957_v42  ;;  %3216 = vmatpush.bf16.msra.mxu1 %v4702_v45 }
  0x12   :  { %v4685_v49 = vld [vmem:[%s10828_s1 + $0x160] sm:$0xf]  ;;  %v6745_v51 = vld [vmem:[%s10828_s1 + $0x16c] sm:$0xf0]  ;;  %v4558_v56 = vor.u32 %v6713_v48, %v4557_v47  ;;  %3230 = vmatpush.bf16.msra.mxu2 %v4830_v46 }
  0x13   :  { %v4813_v52 = vld [vmem:[%s10828_s1 + $0x260] sm:$0xf]  ;;  %v6777_v53 = vld [vmem:[%s10828_s1 + $0x26c] sm:$0xf0]  ;;  %v4686_v57 = vor.u32 %v6745_v51, %v4685_v49  ;;  %3244 = vmatpush.bf16.msra.mxu3 %v4958_v50 }
  0x14   :  { %v4941_v54 = vld [vmem:[%s10828_s1 + $0x360] sm:$0xf]  ;;  %v6809_v55 = vld [vmem:[%s10828_s1 + $0x36c] sm:$0xf0]  ;;  %v4814_v58 = vor.u32 %v6777_v53, %v4813_v52  ;;  %3203 = vmatpush.bf16.msra.mxu0 %v4558_v56 }
  0x15   :  { %v4541_v59 = vld [vmem:[%s10828_s1 + $0x40] sm:$0xf]  ;;  %v6709_v60 = vld [vmem:[%s10828_s1 + $0x4c] sm:$0xf0]  ;;  %v4942_v62 = vor.u32 %v6809_v55, %v4941_v54  ;;  %3217 = vmatpush.bf16.msra.mxu1 %v4686_v57  ;;  %v4453_v54 = vld [vmem:[%s10827_s0 + $0x8] sm:$0xf] }
  0x16   :  { %v4669_v61 = vld [vmem:[%s10828_s1 + $0x140] sm:$0xf]  ;;  %v6741_v63 = vld [vmem:[%s10828_s1 + $0x14c] sm:$0xf0]  ;;  %v4542_v4 = vor.u32 %v6709_v60, %v4541_v59  ;;  %3231 = vmatpush.bf16.msra.mxu2 %v4814_v58  ;;  %v6692_v59 = vld [vmem:[%s10827_s0 + $0x44] sm:$0xf0] }
  0x17   :  { %v4797_v0 = vld [vmem:[%s10828_s1 + $0x240] sm:$0xf]  ;;  %v6773_v1 = vld [vmem:[%s10828_s1 + $0x24c] sm:$0xf0]  ;;  %v4670_v5 = vor.u32 %v6741_v63, %v4669_v61  ;;  %3245 = vmatpush.bf16.msra.mxu3 %v4942_v62 }
  0x18   :  { %v4925_v2 = vld [vmem:[%s10828_s1 + $0x340] sm:$0xf]  ;;  %v6805_v3 = vld [vmem:[%s10828_s1 + $0x34c] sm:$0xf0]  ;;  %v4798_v6 = vor.u32 %v6773_v1, %v4797_v0  ;;  %3204 = vmatpush.bf16.msra.mxu0 %v4542_v4  ;;  %v7577_v1 = vor.u32 %v6692_v59, %v4453_v54 }
  0x19   :  { %v4525_v7 = vld [vmem:[%s10828_s1 + $0x20] sm:$0xf]  ;;  %v6705_v8 = vld [vmem:[%s10828_s1 + $0x2c] sm:$0xf0]  ;;  %v4926_v10 = vor.u32 %v6805_v3, %v4925_v2  ;;  %3218 = vmatpush.bf16.msra.mxu1 %v4670_v5 }
  0x1a   :  { %v4653_v9 = vld [vmem:[%s10828_s1 + $0x120] sm:$0xf]  ;;  %v6737_v11 = vld [vmem:[%s10828_s1 + $0x12c] sm:$0xf0]  ;;  %v4526_v16 = vor.u32 %v6705_v8, %v4525_v7  ;;  %3232 = vmatpush.bf16.msra.mxu2 %v4798_v6  ;;  %v6683_v6 = vld [vmem:[%s10827_s0 + $0x4] sm:$0xf] }
  0x1b   :  { %v4781_v12 = vld [vmem:[%s10828_s1 + $0x220] sm:$0xf]  ;;  %v6769_v13 = vld [vmem:[%s10828_s1 + $0x22c] sm:$0xf0]  ;;  %v4654_v19 = vor.u32 %v6737_v11, %v4653_v9  ;;  %3246 = vmatpush.bf16.msra.mxu3 %v4926_v10  ;;  %v4447_v7 = vld [vmem:[%s10827_s0 + $0x40] sm:$0xf0] }
  0x1c   :  { %v4909_v14 = vld [vmem:[%s10828_s1 + $0x320] sm:$0xf]  ;;  %v6801_v15 = vld [vmem:[%s10828_s1 + $0x32c] sm:$0xf0]  ;;  %v4782_v20 = vor.u32 %v6769_v13, %v4781_v12  ;;  %3205 = vmatpush.bf16.msra.mxu0 %v4526_v16  ;;  %v6684_v8 = vld [vmem:[%s10827_s0 + $0xc] sm:$0xf]  ;;  %v7599_v10 = vor.u32 %v6683_v6, %v4447_v7 }
  0x1d   :  { %v4509_v17 = vld [vmem:[%s10828_s1] sm:$0xf]  ;;  %v6701_v18 = vld [vmem:[%s10828_s1 + $0xc] sm:$0xf0]  ;;  %v4910_v24 = vor.u32 %v6801_v15, %v4909_v14  ;;  %3219 = vmatpush.bf16.msra.mxu1 %v4654_v19  ;;  %v4455_v11 = vld [vmem:[%s10827_s0 + $0x48] sm:$0xf0] }
  0x1e   :  { %v4637_v21 = vld [vmem:[%s10828_s1 + $0x100] sm:$0xf]  ;;  %v6733_v22 = vld [vmem:[%s10828_s1 + $0x10c] sm:$0xf0]  ;;  %v4510_v31 = vor.u32 %v6701_v18, %v4509_v17  ;;  %3233 = vmatpush.bf16.msra.mxu2 %v4782_v20  ;;  %v7613_v17 = vor.u32 %v6684_v8, %v4455_v11 }
  0x1f   :  { %v4765_v23 = vld [vmem:[%s10828_s1 + $0x200] sm:$0xf]  ;;  %v6765_v25 = vld [vmem:[%s10828_s1 + $0x20c] sm:$0xf0]  ;;  %v4638_v35 = vor.u32 %v6733_v22, %v4637_v21  ;;  %3247 = vmatpush.bf16.msra.mxu3 %v4910_v24 }
  0x20   :  { %v4893_v26 = vld [vmem:[%s10828_s1 + $0x300] sm:$0xf]  ;;  %v6797_v27 = vld [vmem:[%s10828_s1 + $0x30c] sm:$0xf0]  ;;  %v4766_v36 = vor.u32 %v6765_v25, %v4765_v23  ;;  %3206 = vmatpush.bf16.msra.mxu0 %v4510_v31 }
  0x21   :  { %v5133_v28 = vld [vmem:[%s10828_s1 + $0x4e0] sm:$0xf]  ;;  %v6857_v29 = vld [vmem:[%s10828_s1 + $0x4ec] sm:$0xf0]  ;;  %v4894_v39 = vor.u32 %v6797_v27, %v4893_v26  ;;  %3220 = vmatpush.bf16.msra.mxu1 %v4638_v35 }
  0x22   :  { %v5261_v30 = vld [vmem:[%s10828_s1 + $0x5e0] sm:$0xf]  ;;  %v6889_v32 = vld [vmem:[%s10828_s1 + $0x5ec] sm:$0xf0]  ;;  %v5134_v40 = vor.u32 %v6857_v29, %v5133_v28  ;;  %3234 = vmatpush.bf16.msra.mxu2 %v4766_v36 }
  0x23   :  { %v5389_v33 = vld [vmem:[%s10828_s1 + $0x6e0] sm:$0xf]  ;;  %v6921_v34 = vld [vmem:[%s10828_s1 + $0x6ec] sm:$0xf0]  ;;  %v5262_v43 = vor.u32 %v6889_v32, %v5261_v30  ;;  %3248 = vmatpush.bf16.msra.mxu3 %v4894_v39 }
  0x24   :  { %v5517_v37 = vld [vmem:[%s10828_s1 + $0x7e0] sm:$0xf]  ;;  %v6953_v38 = vld [vmem:[%s10828_s1 + $0x7ec] sm:$0xf0]  ;;  %v5390_v44 = vor.u32 %v6921_v34, %v5389_v33  ;;  %3255 = vmatpush.bf16.msrb.mxu0 %v5134_v40  ;;  %3221 = vmatmul.bf16.vlgmr.msra.gmra.mxu1 %v7599_v10 }
  0x25   :  { %v5117_v41 = vld [vmem:[%s10828_s1 + $0x4c0] sm:$0xf]  ;;  %v6853_v42 = vld [vmem:[%s10828_s1 + $0x4cc] sm:$0xf0]  ;;  %v5518_v48 = vor.u32 %v6953_v38, %v5517_v37  ;;  %3269 = vmatpush.bf16.msrb.mxu1 %v5262_v43  ;;  %3235 = vmatmul.bf16.vlgmr.msra.gmra.mxu2 %v7577_v1 }
  0x26   :  { %v5245_v45 = vld [vmem:[%s10828_s1 + $0x5c0] sm:$0xf]  ;;  %v6885_v46 = vld [vmem:[%s10828_s1 + $0x5cc] sm:$0xf0]  ;;  %v5118_v55 = vor.u32 %v6853_v42, %v5117_v41  ;;  %3283 = vmatpush.bf16.msrb.mxu2 %v5390_v44  ;;  %3249 = vmatmul.bf16.vlgmr.msra.gmra.mxu3 %v7613_v17 }
  0x27   :  { %v5373_v47 = vld [vmem:[%s10828_s1 + $0x6c0] sm:$0xf]  ;;  %v6917_v49 = vld [vmem:[%s10828_s1 + $0x6cc] sm:$0xf0]  ;;  %v5246_v60 = vor.u32 %v6885_v46, %v5245_v45  ;;  %3297 = vmatpush.bf16.msrb.mxu3 %v5518_v48 }
  0x28   :  { %v5501_v50 = vld [vmem:[%s10828_s1 + $0x7c0] sm:$0xf]  ;;  %v6949_v51 = vld [vmem:[%s10828_s1 + $0x7cc] sm:$0xf0]  ;;  %v5374_v61 = vor.u32 %v6917_v49, %v5373_v47  ;;  %3256 = vmatpush.bf16.msrb.mxu0 %v5118_v55 }
  0x29   :  { %v4445_v52 = vld [vmem:[%s10827_s0] sm:$0xf]  ;;  %v6849_v57 = vld [vmem:[%s10828_s1 + $0x4ac] sm:$0xf0]  ;;  %v5502_v2 = vor.u32 %v6949_v51, %v5501_v50  ;;  %3270 = vmatpush.bf16.msrb.mxu1 %v5246_v60 }
  0x2a   :  { %v6691_v53 = vld [vmem:[%s10827_s0 + $0x3c] sm:$0xf0]  ;;  %v6881_v63 = vld [vmem:[%s10828_s1 + $0x5ac] sm:$0xf0]  ;;  %3284 = vmatpush.bf16.msrb.mxu2 %v5374_v61 }
  0x2b   :  { %v5101_v56 = vld [vmem:[%s10828_s1 + $0x4a0] sm:$0xf]  ;;  %v7563_v58 = vor.u32 %v6691_v53, %v4445_v52  ;;  %v6913_v3 = vld [vmem:[%s10828_s1 + $0x6ac] sm:$0xf0]  ;;  %3298 = vmatpush.bf16.msrb.mxu3 %v5502_v2 }
  0x2c   :  { %v5229_v62 = vld [vmem:[%s10828_s1 + $0x5a0] sm:$0xf]  ;;  %v6945_v5 = vld [vmem:[%s10828_s1 + $0x7ac] sm:$0xf0]  ;;  %v5102_v9 = vor.u32 %v6849_v57, %v5101_v56 }
  0x2d   :  { %v5357_v0 = vld [vmem:[%s10828_s1 + $0x6a0] sm:$0xf]  ;;  %3207 = vmatmul.bf16.vlgmr.msra.gmra.mxu0 %v7563_v58  ;;  %v5230_v12 = vor.u32 %v6881_v63, %v5229_v62  ;;  %v6845_v15 = vld [vmem:[%s10828_s1 + $0x48c] sm:$0xf0] }
  0x2e   :  { %v5485_v4 = vld [vmem:[%s10828_s1 + $0x7a0] sm:$0xf]  ;;  %v5358_v13 = vor.u32 %v6913_v3, %v5357_v0  ;;  %v6877_v19 = vld [vmem:[%s10828_s1 + $0x58c] sm:$0xf0]  ;;  %3257 = vmatpush.bf16.msrb.mxu0 %v5102_v9 }
  0x2f   :  { %v5085_v14 = vld [vmem:[%s10828_s1 + $0x480] sm:$0xf]  ;;  %v5486_v18 = vor.u32 %v6945_v5, %v5485_v4  ;;  %v6909_v21 = vld [vmem:[%s10828_s1 + $0x68c] sm:$0xf0]  ;;  %3271 = vmatpush.bf16.msrb.mxu1 %v5230_v12 }
  0x30   :  { %v5213_v16 = vld [vmem:[%s10828_s1 + $0x580] sm:$0xf]  ;;  %v6941_v23 = vld [vmem:[%s10828_s1 + $0x78c] sm:$0xf0]  ;;  %v5086_v24 = vor.u32 %v6845_v15, %v5085_v14  ;;  %3285 = vmatpush.bf16.msrb.mxu2 %v5358_v13 }
  0x31   :  { %v5341_v20 = vld [vmem:[%s10828_s1 + $0x680] sm:$0xf]  ;;  %v5214_v25 = vor.u32 %v6877_v19, %v5213_v16  ;;  %v6841_v28 = vld [vmem:[%s10828_s1 + $0x46c] sm:$0xf0]  ;;  %3299 = vmatpush.bf16.msrb.mxu3 %v5486_v18 }
  0x32   :  { %v5469_v22 = vld [vmem:[%s10828_s1 + $0x780] sm:$0xf]  ;;  %v5342_v26 = vor.u32 %v6909_v21, %v5341_v20  ;;  %v6873_v31 = vld [vmem:[%s10828_s1 + $0x56c] sm:$0xf0]  ;;  %3258 = vmatpush.bf16.msrb.mxu0 %v5086_v24 }
  0x33   :  { %v5069_v27 = vld [vmem:[%s10828_s1 + $0x460] sm:$0xf]  ;;  %v5470_v30 = vor.u32 %v6941_v23, %v5469_v22  ;;  %v6905_v33 = vld [vmem:[%s10828_s1 + $0x66c] sm:$0xf0]  ;;  %3272 = vmatpush.bf16.msrb.mxu1 %v5214_v25  ;;  %v4469_v25 = vld [vmem:[%s10827_s0 + $0x18] sm:$0xf] }
  0x34   :  { %v5197_v29 = vld [vmem:[%s10828_s1 + $0x560] sm:$0xf]  ;;  %v6937_v35 = vld [vmem:[%s10828_s1 + $0x76c] sm:$0xf0]  ;;  %v5070_v36 = vor.u32 %v6841_v28, %v5069_v27  ;;  %3286 = vmatpush.bf16.msrb.mxu2 %v5342_v26  ;;  %v6694_v26 = vld [vmem:[%s10827_s0 + $0x54] sm:$0xf0] }
  0x35   :  { %v5325_v32 = vld [vmem:[%s10828_s1 + $0x660] sm:$0xf]  ;;  %v5198_v37 = vor.u32 %v6873_v31, %v5197_v29  ;;  %v6837_v40 = vld [vmem:[%s10828_s1 + $0x44c] sm:$0xf0]  ;;  %3300 = vmatpush.bf16.msrb.mxu3 %v5470_v30  ;;  %v6685_v27 = vld [vmem:[%s10827_s0 + $0x14] sm:$0xf] }
  0x36   :  { %v5453_v34 = vld [vmem:[%s10828_s1 + $0x760] sm:$0xf]  ;;  %v5326_v38 = vor.u32 %v6905_v33, %v5325_v32  ;;  %v6869_v43 = vld [vmem:[%s10828_s1 + $0x54c] sm:$0xf0]  ;;  %3259 = vmatpush.bf16.msrb.mxu0 %v5070_v36  ;;  %v4463_v30 = vld [vmem:[%s10827_s0 + $0x50] sm:$0xf0] }
  0x37   :  { %v5053_v39 = vld [vmem:[%s10828_s1 + $0x440] sm:$0xf]  ;;  %v5454_v42 = vor.u32 %v6937_v35, %v5453_v34  ;;  %v6901_v45 = vld [vmem:[%s10828_s1 + $0x64c] sm:$0xf0]  ;;  %3273 = vmatpush.bf16.msrb.mxu1 %v5198_v37  ;;  %v6686_v31 = vld [vmem:[%s10827_s0 + $0x1c] sm:$0xf] }
  0x38   :  { %v5181_v41 = vld [vmem:[%s10828_s1 + $0x540] sm:$0xf]  ;;  %v6933_v47 = vld [vmem:[%s10828_s1 + $0x74c] sm:$0xf0]  ;;  %v5054_v48 = vor.u32 %v6837_v40, %v5053_v39  ;;  %3287 = vmatpush.bf16.msrb.mxu2 %v5326_v38  ;;  %v4471_v32 = vld [vmem:[%s10827_s0 + $0x58] sm:$0xf0] }
  0x39   :  { %v5309_v44 = vld [vmem:[%s10828_s1 + $0x640] sm:$0xf]  ;;  %v5182_v50 = vor.u32 %v6869_v43, %v5181_v41  ;;  %v6833_v52 = vld [vmem:[%s10828_s1 + $0x42c] sm:$0xf0]  ;;  %3301 = vmatpush.bf16.msrb.mxu3 %v5454_v42  ;;  %v7796_v43 = vor.u32 %v6694_v26, %v4469_v25 }
  0x3a   :  { %v5437_v46 = vld [vmem:[%s10828_s1 + $0x740] sm:$0xf]  ;;  %v5310_v51 = vor.u32 %v6901_v45, %v5309_v44  ;;  %v6865_v54 = vld [vmem:[%s10828_s1 + $0x52c] sm:$0xf0]  ;;  %3260 = vmatpush.bf16.msrb.mxu0 %v5054_v48  ;;  %v7798_v44 = vor.u32 %v6685_v27, %v4463_v30 }
  0x3b   :  { %v5037_v49 = vld [vmem:[%s10828_s1 + $0x420] sm:$0xf]  ;;  %v5438_v55 = vor.u32 %v6933_v47, %v5437_v46  ;;  %v6897_v57 = vld [vmem:[%s10828_s1 + $0x62c] sm:$0xf0]  ;;  %3274 = vmatpush.bf16.msrb.mxu1 %v5182_v50  ;;  %v7806_v47 = vor.u32 %v6686_v31, %v4471_v32 }
  0x3c   :  { %v5165_v53 = vld [vmem:[%s10828_s1 + $0x520] sm:$0xf]  ;;  %v6929_v60 = vld [vmem:[%s10828_s1 + $0x72c] sm:$0xf0]  ;;  %v5038_v63 = vor.u32 %v6833_v52, %v5037_v49  ;;  %3288 = vmatpush.bf16.msrb.mxu2 %v5310_v51 }
  0x3d   :  { %v5293_v56 = vld [vmem:[%s10828_s1 + $0x620] sm:$0xf]  ;;  %v6829_v62 = vld [vmem:[%s10828_s1 + $0x40c] sm:$0xf0]  ;;  %v5166_v5 = vor.u32 %v6865_v54, %v5165_v53  ;;  %3302 = vmatpush.bf16.msrb.mxu3 %v5438_v55 }
  0x3e   :  { %v5421_v59 = vld [vmem:[%s10828_s1 + $0x720] sm:$0xf]  ;;  %v6861_v2 = vld [vmem:[%s10828_s1 + $0x50c] sm:$0xf0]  ;;  %v5294_v6 = vor.u32 %v6897_v57, %v5293_v56  ;;  %3261 = vmatpush.bf16.msrb.mxu0 %v5038_v63 }
  0x3f   :  { %v5021_v61 = vld [vmem:[%s10828_s1 + $0x400] sm:$0xf]  ;;  %v6893_v4 = vld [vmem:[%s10828_s1 + $0x60c] sm:$0xf0]  ;;  %v5422_v11 = vor.u32 %v6929_v60, %v5421_v59  ;;  %3275 = vmatpush.bf16.msrb.mxu1 %v5166_v5 }
  0x40   :  { %v5149_v0 = vld [vmem:[%s10828_s1 + $0x500] sm:$0xf]  ;;  %v6925_v8 = vld [vmem:[%s10828_s1 + $0x70c] sm:$0xf0]  ;;  %v5022_v19 = vor.u32 %v6829_v62, %v5021_v61  ;;  %3289 = vmatpush.bf16.msrb.mxu2 %v5294_v6 }
  0x41   :  { %v5277_v3 = vld [vmem:[%s10828_s1 + $0x600] sm:$0xf]  ;;  %v6985_v12 = vld [vmem:[%s10828_s1 + $0x8ec] sm:$0xf0]  ;;  %v5150_v23 = vor.u32 %v6861_v2, %v5149_v0  ;;  %3303 = vmatpush.bf16.msrb.mxu3 %v5422_v11 }
  0x42   :  { %v5405_v7 = vld [vmem:[%s10828_s1 + $0x700] sm:$0xf]  ;;  %v7017_v14 = vld [vmem:[%s10828_s1 + $0x9ec] sm:$0xf0]  ;;  %v5278_v24 = vor.u32 %v6893_v4, %v5277_v3  ;;  %3262 = vmatpush.bf16.msrb.mxu0 %v5022_v19 }
  0x43   :  { %v5645_v9 = vld [vmem:[%s10828_s1 + $0x8e0] sm:$0xf]  ;;  %v7049_v16 = vld [vmem:[%s10828_s1 + $0xaec] sm:$0xf0]  ;;  %v5406_v28 = vor.u32 %v6925_v8, %v5405_v7  ;;  %3276 = vmatpush.bf16.msrb.mxu1 %v5150_v23 }
  0x44   :  { %v5773_v13 = vld [vmem:[%s10828_s1 + $0x9e0] sm:$0xf]  ;;  %v7081_v20 = vld [vmem:[%s10828_s1 + $0xbec] sm:$0xf0]  ;;  %v5646_v29 = vor.u32 %v6985_v12, %v5645_v9  ;;  %3290 = vmatpush.bf16.msrb.mxu2 %v5278_v24 }
  0x45   :  { %v5901_v15 = vld [vmem:[%s10828_s1 + $0xae0] sm:$0xf]  ;;  %v4461_v21 = vld [vmem:[%s10827_s0 + $0x10] sm:$0xf]  ;;  %v5774_v33 = vor.u32 %v7017_v14, %v5773_v13  ;;  %3304 = vmatpush.bf16.msrb.mxu3 %v5406_v28 }
  0x46   :  { %v6029_v18 = vld [vmem:[%s10828_s1 + $0xbe0] sm:$0xf]  ;;  %v6693_v22 = vld [vmem:[%s10827_s0 + $0x4c] sm:$0xf0]  ;;  %v5902_v34 = vor.u32 %v7049_v16, %v5901_v15  ;;  %3311 = vmatpush.bf16.msra.mxu0 %v5646_v29  ;;  %3277 = vmatmul.bf16.vlgmr.msrb.gmra.mxu1 %v7798_v44 }
  0x47   :  { %v5629_v35 = vld [vmem:[%s10828_s1 + $0x8c0] sm:$0xf]  ;;  %v6981_v36 = vld [vmem:[%s10828_s1 + $0x8cc] sm:$0xf0]  ;;  %v6030_v38 = vor.u32 %v7081_v20, %v6029_v18  ;;  %v7785_v39 = vor.u32 %v6693_v22, %v4461_v21  ;;  %3325 = vmatpush.bf16.msra.mxu1 %v5774_v33  ;;  %3291 = vmatmul.bf16.vlgmr.msrb.gmra.mxu2 %v7796_v43 }
  0x48   :  { %v5757_v37 = vld [vmem:[%s10828_s1 + $0x9c0] sm:$0xf]  ;;  %v7013_v40 = vld [vmem:[%s10828_s1 + $0x9cc] sm:$0xf0]  ;;  %v5630_v48 = vor.u32 %v6981_v36, %v5629_v35  ;;  %3339 = vmatpush.bf16.msra.mxu2 %v5902_v34  ;;  %3305 = vmatmul.bf16.vlgmr.msrb.gmra.mxu3 %v7806_v47 }
  0x49   :  { %v5885_v41 = vld [vmem:[%s10828_s1 + $0xac0] sm:$0xf]  ;;  %v7045_v42 = vld [vmem:[%s10828_s1 + $0xacc] sm:$0xf0]  ;;  %v5758_v49 = vor.u32 %v7013_v40, %v5757_v37  ;;  %3353 = vmatpush.bf16.msra.mxu3 %v6030_v38  ;;  %3263 = vmatmul.bf16.vlgmr.msrb.gmra.mxu0 %v7785_v39 }
  0x4a   :  { %v6013_v45 = vld [vmem:[%s10828_s1 + $0xbc0] sm:$0xf]  ;;  %v7077_v46 = vld [vmem:[%s10828_s1 + $0xbcc] sm:$0xf0]  ;;  %v5886_v50 = vor.u32 %v7045_v42, %v5885_v41  ;;  %3312 = vmatpush.bf16.msra.mxu0 %v5630_v48 }
  0x4b   :  { %v5613_v51 = vld [vmem:[%s10828_s1 + $0x8a0] sm:$0xf]  ;;  %v6977_v52 = vld [vmem:[%s10828_s1 + $0x8ac] sm:$0xf0]  ;;  %v6014_v54 = vor.u32 %v7077_v46, %v6013_v45  ;;  %3326 = vmatpush.bf16.msra.mxu1 %v5758_v49 }
  0x4c   :  { %v5741_v53 = vld [vmem:[%s10828_s1 + $0x9a0] sm:$0xf]  ;;  %v7009_v55 = vld [vmem:[%s10828_s1 + $0x9ac] sm:$0xf0]  ;;  %v5614_v61 = vor.u32 %v6977_v52, %v5613_v51  ;;  %3340 = vmatpush.bf16.msra.mxu2 %v5886_v50 }
  0x4d   :  { %v5869_v56 = vld [vmem:[%s10828_s1 + $0xaa0] sm:$0xf]  ;;  %v7041_v57 = vld [vmem:[%s10828_s1 + $0xaac] sm:$0xf0]  ;;  %v5742_v62 = vor.u32 %v7009_v55, %v5741_v53  ;;  %3354 = vmatpush.bf16.msra.mxu3 %v6014_v54 }
  0x4e   :  { %v5997_v59 = vld [vmem:[%s10828_s1 + $0xba0] sm:$0xf]  ;;  %v7073_v60 = vld [vmem:[%s10828_s1 + $0xbac] sm:$0xf0]  ;;  %v5870_v63 = vor.u32 %v7041_v57, %v5869_v56  ;;  %3313 = vmatpush.bf16.msra.mxu0 %v5614_v61 }
  0x4f   :  { %v5597_v0 = vld [vmem:[%s10828_s1 + $0x880] sm:$0xf]  ;;  %v6973_v2 = vld [vmem:[%s10828_s1 + $0x88c] sm:$0xf0]  ;;  %v5998_v4 = vor.u32 %v7073_v60, %v5997_v59  ;;  %3327 = vmatpush.bf16.msra.mxu1 %v5742_v62 }
  0x50   :  { %v5725_v3 = vld [vmem:[%s10828_s1 + $0x980] sm:$0xf]  ;;  %v7005_v5 = vld [vmem:[%s10828_s1 + $0x98c] sm:$0xf0]  ;;  %v5598_v11 = vor.u32 %v6973_v2, %v5597_v0  ;;  %3341 = vmatpush.bf16.msra.mxu2 %v5870_v63 }
  0x51   :  { %v5853_v6 = vld [vmem:[%s10828_s1 + $0xa80] sm:$0xf]  ;;  %v7037_v7 = vld [vmem:[%s10828_s1 + $0xa8c] sm:$0xf0]  ;;  %v5726_v12 = vor.u32 %v7005_v5, %v5725_v3  ;;  %3355 = vmatpush.bf16.msra.mxu3 %v5998_v4 }
  0x52   :  { %v5981_v8 = vld [vmem:[%s10828_s1 + $0xb80] sm:$0xf]  ;;  %v7069_v9 = vld [vmem:[%s10828_s1 + $0xb8c] sm:$0xf0]  ;;  %v5854_v13 = vor.u32 %v7037_v7, %v5853_v6  ;;  %3314 = vmatpush.bf16.msra.mxu0 %v5598_v11 }
  0x53   :  { %v5581_v14 = vld [vmem:[%s10828_s1 + $0x860] sm:$0xf]  ;;  %v6969_v15 = vld [vmem:[%s10828_s1 + $0x86c] sm:$0xf0]  ;;  %v5982_v18 = vor.u32 %v7069_v9, %v5981_v8  ;;  %3328 = vmatpush.bf16.msra.mxu1 %v5726_v12 }
  0x54   :  { %v5709_v16 = vld [vmem:[%s10828_s1 + $0x960] sm:$0xf]  ;;  %v7001_v19 = vld [vmem:[%s10828_s1 + $0x96c] sm:$0xf0]  ;;  %v5582_v24 = vor.u32 %v6969_v15, %v5581_v14  ;;  %3342 = vmatpush.bf16.msra.mxu2 %v5854_v13 }
  0x55   :  { %v5837_v20 = vld [vmem:[%s10828_s1 + $0xa60] sm:$0xf]  ;;  %v7033_v21 = vld [vmem:[%s10828_s1 + $0xa6c] sm:$0xf0]  ;;  %v5710_v25 = vor.u32 %v7001_v19, %v5709_v16  ;;  %3356 = vmatpush.bf16.msra.mxu3 %v5982_v18  ;;  %v4485_v16 = vld [vmem:[%s10827_s0 + $0x28] sm:$0xf] }
  0x56   :  { %v5965_v22 = vld [vmem:[%s10828_s1 + $0xb60] sm:$0xf]  ;;  %v7065_v23 = vld [vmem:[%s10828_s1 + $0xb6c] sm:$0xf0]  ;;  %v5838_v26 = vor.u32 %v7033_v21, %v5837_v20  ;;  %3315 = vmatpush.bf16.msra.mxu0 %v5582_v24  ;;  %v6696_v18 = vld [vmem:[%s10827_s0 + $0x64] sm:$0xf0] }
  0x57   :  { %v5565_v27 = vld [vmem:[%s10828_s1 + $0x840] sm:$0xf]  ;;  %v6965_v28 = vld [vmem:[%s10828_s1 + $0x84c] sm:$0xf0]  ;;  %v5966_v30 = vor.u32 %v7065_v23, %v5965_v22  ;;  %3329 = vmatpush.bf16.msra.mxu1 %v5710_v25  ;;  %v6687_v19 = vld [vmem:[%s10827_s0 + $0x24] sm:$0xf] }
  0x58   :  { %v5693_v29 = vld [vmem:[%s10828_s1 + $0x940] sm:$0xf]  ;;  %v6997_v31 = vld [vmem:[%s10828_s1 + $0x94c] sm:$0xf0]  ;;  %v5566_v36 = vor.u32 %v6965_v28, %v5565_v27  ;;  %3343 = vmatpush.bf16.msra.mxu2 %v5838_v26  ;;  %v4479_v22 = vld [vmem:[%s10827_s0 + $0x60] sm:$0xf0] }
  0x59   :  { %v5821_v32 = vld [vmem:[%s10828_s1 + $0xa40] sm:$0xf]  ;;  %v7029_v33 = vld [vmem:[%s10828_s1 + $0xa4c] sm:$0xf0]  ;;  %v5694_v38 = vor.u32 %v6997_v31, %v5693_v29  ;;  %3357 = vmatpush.bf16.msra.mxu3 %v5966_v30  ;;  %v6688_v23 = vld [vmem:[%s10827_s0 + $0x2c] sm:$0xf] }
  0x5a   :  { %v5949_v34 = vld [vmem:[%s10828_s1 + $0xb40] sm:$0xf]  ;;  %v7061_v35 = vld [vmem:[%s10828_s1 + $0xb4c] sm:$0xf0]  ;;  %v5822_v40 = vor.u32 %v7029_v33, %v5821_v32  ;;  %3316 = vmatpush.bf16.msra.mxu0 %v5566_v36  ;;  %v4487_v24 = vld [vmem:[%s10827_s0 + $0x68] sm:$0xf0]  ;;  %v8026_v36 = vor.u32 %v6687_v19, %v4479_v22 }
  0x5b   :  { %v5549_v37 = vld [vmem:[%s10828_s1 + $0x820] sm:$0xf]  ;;  %v6961_v41 = vld [vmem:[%s10828_s1 + $0x82c] sm:$0xf0]  ;;  %v5950_v46 = vor.u32 %v7061_v35, %v5949_v34  ;;  %3330 = vmatpush.bf16.msra.mxu1 %v5694_v38  ;;  %v8024_v35 = vor.u32 %v6696_v18, %v4485_v16 }
  0x5c   :  { %v5677_v42 = vld [vmem:[%s10828_s1 + $0x920] sm:$0xf]  ;;  %v6993_v45 = vld [vmem:[%s10828_s1 + $0x92c] sm:$0xf0]  ;;  %v5550_v54 = vor.u32 %v6961_v41, %v5549_v37  ;;  %3344 = vmatpush.bf16.msra.mxu2 %v5822_v40  ;;  %v8034_v40 = vor.u32 %v6688_v23, %v4487_v24 }
  0x5d   :  { %v5805_v48 = vld [vmem:[%s10828_s1 + $0xa20] sm:$0xf]  ;;  %v7025_v49 = vld [vmem:[%s10828_s1 + $0xa2c] sm:$0xf0]  ;;  %v5678_v60 = vor.u32 %v6993_v45, %v5677_v42  ;;  %3358 = vmatpush.bf16.msra.mxu3 %v5950_v46 }
  0x5e   :  { %v5933_v50 = vld [vmem:[%s10828_s1 + $0xb20] sm:$0xf]  ;;  %v7057_v51 = vld [vmem:[%s10828_s1 + $0xb2c] sm:$0xf0]  ;;  %v5806_v61 = vor.u32 %v7025_v49, %v5805_v48  ;;  %3317 = vmatpush.bf16.msra.mxu0 %v5550_v54 }
  0x5f   :  { %v5533_v52 = vld [vmem:[%s10828_s1 + $0x800] sm:$0xf]  ;;  %v6957_v53 = vld [vmem:[%s10828_s1 + $0x80c] sm:$0xf0]  ;;  %v5934_v2 = vor.u32 %v7057_v51, %v5933_v50  ;;  %3331 = vmatpush.bf16.msra.mxu1 %v5678_v60 }
  0x60   :  { %v5661_v55 = vld [vmem:[%s10828_s1 + $0x900] sm:$0xf]  ;;  %v6989_v56 = vld [vmem:[%s10828_s1 + $0x90c] sm:$0xf0]  ;;  %v5534_v9 = vor.u32 %v6957_v53, %v5533_v52  ;;  %3345 = vmatpush.bf16.msra.mxu2 %v5806_v61 }
  0x61   :  { %v5789_v57 = vld [vmem:[%s10828_s1 + $0xa00] sm:$0xf]  ;;  %v7021_v59 = vld [vmem:[%s10828_s1 + $0xa0c] sm:$0xf0]  ;;  %v5662_v14 = vor.u32 %v6989_v56, %v5661_v55  ;;  %3359 = vmatpush.bf16.msra.mxu3 %v5934_v2 }
  0x62   :  { %v5917_v62 = vld [vmem:[%s10828_s1 + $0xb00] sm:$0xf]  ;;  %v7053_v63 = vld [vmem:[%s10828_s1 + $0xb0c] sm:$0xf0]  ;;  %v5790_v15 = vor.u32 %v7021_v59, %v5789_v57  ;;  %3318 = vmatpush.bf16.msra.mxu0 %v5534_v9 }
  0x63   :  { %v6157_v0 = vld [vmem:[%s10828_s1 + $0xce0] sm:$0xf]  ;;  %v7113_v3 = vld [vmem:[%s10828_s1 + $0xcec] sm:$0xf0]  ;;  %v5918_v20 = vor.u32 %v7053_v63, %v5917_v62  ;;  %3332 = vmatpush.bf16.msra.mxu1 %v5662_v14 }
  0x64   :  { %v6285_v4 = vld [vmem:[%s10828_s1 + $0xde0] sm:$0xf]  ;;  %v7145_v5 = vld [vmem:[%s10828_s1 + $0xdec] sm:$0xf0]  ;;  %v6158_v21 = vor.u32 %v7113_v3, %v6157_v0  ;;  %3346 = vmatpush.bf16.msra.mxu2 %v5790_v15 }
  0x65   :  { %v6413_v6 = vld [vmem:[%s10828_s1 + $0xee0] sm:$0xf]  ;;  %v7177_v7 = vld [vmem:[%s10828_s1 + $0xeec] sm:$0xf0]  ;;  %v6286_v25 = vor.u32 %v7145_v5, %v6285_v4  ;;  %3360 = vmatpush.bf16.msra.mxu3 %v5918_v20 }
  0x66   :  { %v6541_v8 = vld [vmem:[%s10828_s1 + $0xfe0] sm:$0xf]  ;;  %v7209_v11 = vld [vmem:[%s10828_s1 + $0xfec] sm:$0xf0]  ;;  %v6414_v26 = vor.u32 %v7177_v7, %v6413_v6  ;;  %3367 = vmatpush.bf16.msrb.mxu0 %v6158_v21  ;;  %3333 = vmatmul.bf16.vlgmr.msra.gmra.mxu1 %v8026_v36 }
  0x67   :  { %v4477_v12 = vld [vmem:[%s10827_s0 + $0x20] sm:$0xf]  ;;  %v7109_v28 = vld [vmem:[%s10828_s1 + $0xccc] sm:$0xf0]  ;;  %v6542_v30 = vor.u32 %v7209_v11, %v6541_v8  ;;  %3381 = vmatpush.bf16.msrb.mxu1 %v6286_v25  ;;  %3347 = vmatmul.bf16.vlgmr.msra.gmra.mxu2 %v8024_v35 }
  0x68   :  { %v6695_v13 = vld [vmem:[%s10827_s0 + $0x5c] sm:$0xf0]  ;;  %v7141_v32 = vld [vmem:[%s10828_s1 + $0xdcc] sm:$0xf0]  ;;  %3395 = vmatpush.bf16.msrb.mxu2 %v6414_v26  ;;  %3361 = vmatmul.bf16.vlgmr.msra.gmra.mxu3 %v8034_v40 }
  0x69   :  { %v6141_v27 = vld [vmem:[%s10828_s1 + $0xcc0] sm:$0xf]  ;;  %v8013_v31 = vor.u32 %v6695_v13, %v4477_v12  ;;  %v7173_v34 = vld [vmem:[%s10828_s1 + $0xecc] sm:$0xf0]  ;;  %3409 = vmatpush.bf16.msrb.mxu3 %v6542_v30 }
  0x6a   :  { %v6269_v29 = vld [vmem:[%s10828_s1 + $0xdc0] sm:$0xf]  ;;  %v7205_v38 = vld [vmem:[%s10828_s1 + $0xfcc] sm:$0xf0]  ;;  %v6142_v41 = vor.u32 %v7109_v28, %v6141_v27 }
  0x6b   :  { %v6397_v33 = vld [vmem:[%s10828_s1 + $0xec0] sm:$0xf]  ;;  %v6270_v42 = vor.u32 %v7141_v32, %v6269_v29  ;;  %v7105_v48 = vld [vmem:[%s10828_s1 + $0xcac] sm:$0xf0]  ;;  %3319 = vmatmul.bf16.vlgmr.msra.gmra.mxu0 %v8013_v31 }
  0x6c   :  { %v6525_v37 = vld [vmem:[%s10828_s1 + $0xfc0] sm:$0xf]  ;;  %v6398_v45 = vor.u32 %v7173_v34, %v6397_v33  ;;  %v7137_v51 = vld [vmem:[%s10828_s1 + $0xdac] sm:$0xf0]  ;;  %3368 = vmatpush.bf16.msrb.mxu0 %v6142_v41 }
  0x6d   :  { %v6125_v46 = vld [vmem:[%s10828_s1 + $0xca0] sm:$0xf]  ;;  %v6526_v50 = vor.u32 %v7205_v38, %v6525_v37  ;;  %v7169_v53 = vld [vmem:[%s10828_s1 + $0xeac] sm:$0xf0]  ;;  %3382 = vmatpush.bf16.msrb.mxu1 %v6270_v42 }
  0x6e   :  { %v6253_v49 = vld [vmem:[%s10828_s1 + $0xda0] sm:$0xf]  ;;  %v7201_v55 = vld [vmem:[%s10828_s1 + $0xfac] sm:$0xf0]  ;;  %v6126_v56 = vor.u32 %v7105_v48, %v6125_v46  ;;  %3396 = vmatpush.bf16.msrb.mxu2 %v6398_v45 }
  0x6f   :  { %v6381_v52 = vld [vmem:[%s10828_s1 + $0xea0] sm:$0xf]  ;;  %v6254_v57 = vor.u32 %v7137_v51, %v6253_v49  ;;  %v7101_v61 = vld [vmem:[%s10828_s1 + $0xc8c] sm:$0xf0]  ;;  %3410 = vmatpush.bf16.msrb.mxu3 %v6526_v50 }
  0x70   :  { %v6509_v54 = vld [vmem:[%s10828_s1 + $0xfa0] sm:$0xf]  ;;  %v6382_v59 = vor.u32 %v7169_v53, %v6381_v52  ;;  %v7133_v0 = vld [vmem:[%s10828_s1 + $0xd8c] sm:$0xf0]  ;;  %3369 = vmatpush.bf16.msrb.mxu0 %v6126_v56 }
  0x71   :  { %v6109_v60 = vld [vmem:[%s10828_s1 + $0xc80] sm:$0xf]  ;;  %v6510_v63 = vor.u32 %v7201_v55, %v6509_v54  ;;  %v7165_v3 = vld [vmem:[%s10828_s1 + $0xe8c] sm:$0xf0]  ;;  %3383 = vmatpush.bf16.msrb.mxu1 %v6254_v57 }
  0x72   :  { %v6237_v62 = vld [vmem:[%s10828_s1 + $0xd80] sm:$0xf]  ;;  %v7197_v5 = vld [vmem:[%s10828_s1 + $0xf8c] sm:$0xf0]  ;;  %v6110_v6 = vor.u32 %v7101_v61, %v6109_v60  ;;  %3397 = vmatpush.bf16.msrb.mxu2 %v6382_v59 }
  0x73   :  { %v6365_v2 = vld [vmem:[%s10828_s1 + $0xe80] sm:$0xf]  ;;  %v6238_v7 = vor.u32 %v7133_v0, %v6237_v62  ;;  %v7097_v11 = vld [vmem:[%s10828_s1 + $0xc6c] sm:$0xf0]  ;;  %3411 = vmatpush.bf16.msrb.mxu3 %v6510_v63 }
  0x74   :  { %v6493_v4 = vld [vmem:[%s10828_s1 + $0xf80] sm:$0xf]  ;;  %v6366_v8 = vor.u32 %v7165_v3, %v6365_v2  ;;  %v7129_v14 = vld [vmem:[%s10828_s1 + $0xd6c] sm:$0xf0]  ;;  %3370 = vmatpush.bf16.msrb.mxu0 %v6110_v6 }
  0x75   :  { %v6093_v9 = vld [vmem:[%s10828_s1 + $0xc60] sm:$0xf]  ;;  %v6494_v13 = vor.u32 %v7197_v5, %v6493_v4  ;;  %v7161_v16 = vld [vmem:[%s10828_s1 + $0xe6c] sm:$0xf0]  ;;  %3384 = vmatpush.bf16.msrb.mxu1 %v6238_v7 }
  0x76   :  { %v6221_v12 = vld [vmem:[%s10828_s1 + $0xd60] sm:$0xf]  ;;  %v7193_v19 = vld [vmem:[%s10828_s1 + $0xf6c] sm:$0xf0]  ;;  %v6094_v20 = vor.u32 %v7097_v11, %v6093_v9  ;;  %3398 = vmatpush.bf16.msrb.mxu2 %v6366_v8 }
  0x77   :  { %v6349_v15 = vld [vmem:[%s10828_s1 + $0xe60] sm:$0xf]  ;;  %v6222_v21 = vor.u32 %v7129_v14, %v6221_v12  ;;  %v7093_v24 = vld [vmem:[%s10828_s1 + $0xc4c] sm:$0xf0]  ;;  %3412 = vmatpush.bf16.msrb.mxu3 %v6494_v13 }
  0x78   :  { %v6477_v18 = vld [vmem:[%s10828_s1 + $0xf60] sm:$0xf]  ;;  %v6350_v22 = vor.u32 %v7161_v16, %v6349_v15  ;;  %v7125_v27 = vld [vmem:[%s10828_s1 + $0xd4c] sm:$0xf0]  ;;  %3371 = vmatpush.bf16.msrb.mxu0 %v6094_v20 }
  0x79   :  { %v6077_v23 = vld [vmem:[%s10828_s1 + $0xc40] sm:$0xf]  ;;  %v6478_v26 = vor.u32 %v7193_v19, %v6477_v18  ;;  %v7157_v29 = vld [vmem:[%s10828_s1 + $0xe4c] sm:$0xf0]  ;;  %3385 = vmatpush.bf16.msrb.mxu1 %v6222_v21 }
  0x7a   :  { %v6205_v25 = vld [vmem:[%s10828_s1 + $0xd40] sm:$0xf]  ;;  %v7189_v32 = vld [vmem:[%s10828_s1 + $0xf4c] sm:$0xf0]  ;;  %v6078_v33 = vor.u32 %v7093_v24, %v6077_v23  ;;  %3399 = vmatpush.bf16.msrb.mxu2 %v6350_v22 }
  0x7b   :  { %v6333_v28 = vld [vmem:[%s10828_s1 + $0xe40] sm:$0xf]  ;;  %v7089_v37 = vld [vmem:[%s10828_s1 + $0xc2c] sm:$0xf0]  ;;  %v6206_v38 = vor.u32 %v7125_v27, %v6205_v25  ;;  %3413 = vmatpush.bf16.msrb.mxu3 %v6478_v26 }
  0x7c   :  { %v6461_v30 = vld [vmem:[%s10828_s1 + $0xf40] sm:$0xf]  ;;  %v6334_v41 = vor.u32 %v7157_v29, %v6333_v28  ;;  %v7121_v45 = vld [vmem:[%s10828_s1 + $0xd2c] sm:$0xf0] }
  0x7d   :  { %v6061_v34 = vld [vmem:[%s10828_s1 + $0xc20] sm:$0xf]  ;;  %v6462_v48 = vor.u32 %v7189_v32, %v6461_v30  ;;  %v7153_v49 = vld [vmem:[%s10828_s1 + $0xe2c] sm:$0xf0] }
  0x7e   :  { %v6189_v42 = vld [vmem:[%s10828_s1 + $0xd20] sm:$0xf]  ;;  %v7185_v51 = vld [vmem:[%s10828_s1 + $0xf2c] sm:$0xf0] }
  0x7f   :  { %v6317_v46 = vld [vmem:[%s10828_s1 + $0xe20] sm:$0xf]  ;;  %v7085_v53 = vld [vmem:[%s10828_s1 + $0xc0c] sm:$0xf0] }
  0x80   :  { %v6445_v50 = vld [vmem:[%s10828_s1 + $0xf20] sm:$0xf] }
  0x81   :  { %v6045_v52 = vld [vmem:[%s10828_s1 + $0xc00] sm:$0xf] }
  0x82   :  { %10 = vsyncpa [#allocation3], 0  ;;  %3372 = vmatpush.bf16.msrb.mxu0 %v6078_v33  ;;  %v6062_v54 = vor.u32 %v7089_v37, %v6061_v34  ;;  %v6173_v55 = vld [vmem:[%s10828_s1 + $0xd00] sm:$0xf]  ;;  %v7117_v56 = vld [vmem:[%s10828_s1 + $0xd0c] sm:$0xf0]  ;;  %3386 = vmatpush.bf16.msrb.mxu1 %v6206_v38  ;;  %v6190_v60 = vor.u32 %v7121_v45, %v6189_v42  ;;  %v6318_v61 = vor.u32 %v7153_v49, %v6317_v46 }
  0x83   :  { %v6301_v57 = vld [vmem:[%s10828_s1 + $0xe00] sm:$0xf]  ;;  %v7149_v59 = vld [vmem:[%s10828_s1 + $0xe0c] sm:$0xf0]  ;;  %3400 = vmatpush.bf16.msrb.mxu2 %v6334_v41  ;;  %v6727_v0 = vld [vmem:[%s10828_s1 + $0xe4] sm:$0xf]  ;;  %3414 = vmatpush.bf16.msrb.mxu3 %v6462_v48  ;;  %v6446_v2 = vor.u32 %v7185_v51, %v6445_v50  ;;  %v6046_v9 = vor.u32 %v7085_v53, %v6045_v52  ;;  %v6174_v14 = vor.u32 %v7117_v56, %v6173_v55 }
  0x84   :  { %v6429_v62 = vld [vmem:[%s10828_s1 + $0xf00] sm:$0xf]  ;;  %v7181_v63 = vld [vmem:[%s10828_s1 + $0xf0c] sm:$0xf0]  ;;  %v4623_v3 = vld [vmem:[%s10828_s1 + $0xf0] sm:$0xf0]  ;;  %v6302_v15 = vor.u32 %v7149_v59, %v6301_v57 }
  0x85   :  { %v6759_v4 = vld [vmem:[%s10828_s1 + $0x1e4] sm:$0xf]  ;;  %v4751_v5 = vld [vmem:[%s10828_s1 + $0x1f0] sm:$0xf0]  ;;  %v4493_v12 = vld [vmem:[%s10827_s0 + $0x30] sm:$0xf]  ;;  %v6430_v20 = vor.u32 %v7181_v63, %v6429_v62  ;;  %v4626_v21 = vor.u32 %v6727_v0, %v4623_v3 }
  0x86   :  { %v6791_v6 = vld [vmem:[%s10828_s1 + $0x2e4] sm:$0xf]  ;;  %v4879_v7 = vld [vmem:[%s10828_s1 + $0x2f0] sm:$0xf0]  ;;  %3373 = vmatpush.bf16.msrb.mxu0 %v6062_v54  ;;  %v6697_v13 = vld [vmem:[%s10827_s0 + $0x6c] sm:$0xf0]  ;;  %3387 = vmatpush.bf16.msrb.mxu1 %v6190_v60  ;;  %v4754_v25 = vor.u32 %v6759_v4, %v4751_v5 }
  0x87   :  { %v6823_v8 = vld [vmem:[%s10828_s1 + $0x3e4] sm:$0xf]  ;;  %v5007_v11 = vld [vmem:[%s10828_s1 + $0x3f0] sm:$0xf0]  ;;  %3401 = vmatpush.bf16.msrb.mxu2 %v6318_v61  ;;  %v4501_v16 = vld [vmem:[%s10827_s0 + $0x38] sm:$0xf]  ;;  %3415 = vmatpush.bf16.msrb.mxu3 %v6446_v2  ;;  %v4882_v26 = vor.u32 %v6791_v6, %v4879_v7  ;;  %v8241_v32 = vor.u32 %v6697_v13, %v4493_v12 }
  0x88   :  { %v6698_v18 = vld [vmem:[%s10827_s0 + $0x74] sm:$0xf0]  ;;  %v6689_v19 = vld [vmem:[%s10827_s0 + $0x34] sm:$0xf]  ;;  %v6690_v23 = vld [vmem:[%s10827_s0 + $0x3c] sm:$0xf]  ;;  %v5010_v30 = vor.u32 %v6823_v8, %v5007_v11 }
  0x89   :  { %v4495_v22 = vld [vmem:[%s10827_s0 + $0x70] sm:$0xf0]  ;;  %v4503_v24 = vld [vmem:[%s10827_s0 + $0x78] sm:$0xf0]  ;;  %v6723_v27 = vld [vmem:[%s10828_s1 + $0xc4] sm:$0xf]  ;;  %v8252_v38 = vor.u32 %v6698_v18, %v4501_v16 }
  0x8a   :  { %v4607_v28 = vld [vmem:[%s10828_s1 + $0xd0] sm:$0xf0]  ;;  %v6755_v29 = vld [vmem:[%s10828_s1 + $0x1c4] sm:$0xf]  ;;  %3374 = vmatpush.bf16.msrb.mxu0 %v6046_v9  ;;  %3388 = vmatpush.bf16.msrb.mxu1 %v6174_v14  ;;  %v8254_v41 = vor.u32 %v6689_v19, %v4495_v22  ;;  %v8262_v46 = vor.u32 %v6690_v23, %v4503_v24  ;;  %s7275_s30 = smov [#allocation2]   ;;  %s4431_s9 = sshll.u32 %s10832_s5, 4  ;;  %s4432_s9 = int_to_ptr.hbm [resolvable:$true] %s4431_s9 }
  0x8b   :  { %v4735_v33 = vld [vmem:[%s10828_s1 + $0x1d0] sm:$0xf0]  ;;  %v6787_v34 = vld [vmem:[%s10828_s1 + $0x2c4] sm:$0xf]  ;;  %3402 = vmatpush.bf16.msrb.mxu2 %v6302_v15  ;;  %3416 = vmatpush.bf16.msrb.mxu3 %v6430_v20  ;;  %v4610_v48 = vor.u32 %v6723_v27, %v4607_v28  ;;  %s4429_s6 = sshll.u32 %s7275_s30, 4  ;;  %s7277_s10 = smov 8   ;;  %s4430_s6 = int_to_ptr.vmem [resolvable:$true] %s4429_s6 }
  0x8c   :  { %v4863_v37 = vld [vmem:[%s10828_s1 + $0x2d0] sm:$0xf0]  ;;  %v6819_v42 = vld [vmem:[%s10828_s1 + $0x3c4] sm:$0xf]  ;;  %v4738_v49 = vor.u32 %v6755_v29, %v4735_v33 }
  0x8d   :  { %v4991_v45 = vld [vmem:[%s10828_s1 + $0x3d0] sm:$0xf0]  ;;  %v4866_v50 = vor.u32 %v6787_v34, %v4863_v37  ;;  %v6719_v51 = vld [vmem:[%s10828_s1 + $0xa4] sm:$0xf]  ;;  %3375 = vmatmul.bf16.vlgmr.msrb.gmra.mxu0 %v8241_v32  ;;  %3389 = vmatmul.bf16.vlgmr.msrb.gmra.mxu1 %v8254_v41 }
  0x8e   :  { %3423 = vmatpush.bf16.msra.mxu0 %v4626_v21  ;;  %3437 = vmatpush.bf16.msra.mxu1 %v4754_v25  ;;  %v4591_v52 = vld [vmem:[%s10828_s1 + $0xb0] sm:$0xf0]  ;;  %v6751_v53 = vld [vmem:[%s10828_s1 + $0x1a4] sm:$0xf]  ;;  %v4994_v54 = vor.u32 %v6819_v42, %v4991_v45 }
  0x8f   :  { %3451 = vmatpush.bf16.msra.mxu2 %v4882_v26  ;;  %3465 = vmatpush.bf16.msra.mxu3 %v5010_v30  ;;  %v4719_v55 = vld [vmem:[%s10828_s1 + $0x1b0] sm:$0xf0]  ;;  %v6783_v56 = vld [vmem:[%s10828_s1 + $0x2a4] sm:$0xf]  ;;  %v4594_v61 = vor.u32 %v6719_v51, %v4591_v52 }
  0x90   :  { %v4847_v57 = vld [vmem:[%s10828_s1 + $0x2b0] sm:$0xf0]  ;;  %3403 = vmatmul.bf16.vlgmr.msrb.gmra.mxu2 %v8252_v38  ;;  %v6815_v59 = vld [vmem:[%s10828_s1 + $0x3a4] sm:$0xf]  ;;  %3417 = vmatmul.bf16.vlgmr.msrb.gmra.mxu3 %v8262_v46  ;;  %v4722_v62 = vor.u32 %v6751_v53, %v4719_v55 }
  0x91   :  { %v4975_v60 = vld [vmem:[%s10828_s1 + $0x3b0] sm:$0xf0]  ;;  %v4850_v63 = vor.u32 %v6783_v56, %v4847_v57  ;;  %v6715_v0 = vld [vmem:[%s10828_s1 + $0x84] sm:$0xf] }
  0x92   :  { %3424 = vmatpush.bf16.msra.mxu0 %v4610_v48  ;;  %3438 = vmatpush.bf16.msra.mxu1 %v4738_v49  ;;  %v4575_v2 = vld [vmem:[%s10828_s1 + $0x90] sm:$0xf0]  ;;  %v6747_v3 = vld [vmem:[%s10828_s1 + $0x184] sm:$0xf]  ;;  %v4978_v4 = vor.u32 %v6815_v59, %v4975_v60 }
  0x93   :  { %3452 = vmatpush.bf16.msra.mxu2 %v4866_v50  ;;  %3466 = vmatpush.bf16.msra.mxu3 %v4994_v54  ;;  %v4703_v5 = vld [vmem:[%s10828_s1 + $0x190] sm:$0xf0]  ;;  %v6779_v6 = vld [vmem:[%s10828_s1 + $0x284] sm:$0xf]  ;;  %v4578_v11 = vor.u32 %v6715_v0, %v4575_v2 }
  0x94   :  { %v4831_v7 = vld [vmem:[%s10828_s1 + $0x290] sm:$0xf0]  ;;  %v6811_v8 = vld [vmem:[%s10828_s1 + $0x384] sm:$0xf]  ;;  %v4706_v12 = vor.u32 %v6747_v3, %v4703_v5 }
  0x95   :  { %v4959_v9 = vld [vmem:[%s10828_s1 + $0x390] sm:$0xf0]  ;;  %v4834_v13 = vor.u32 %v6779_v6, %v4831_v7  ;;  %v6711_v14 = vld [vmem:[%s10828_s1 + $0x64] sm:$0xf] }
  0x96   :  { %3425 = vmatpush.bf16.msra.mxu0 %v4594_v61  ;;  %3439 = vmatpush.bf16.msra.mxu1 %v4722_v62  ;;  %v4559_v15 = vld [vmem:[%s10828_s1 + $0x70] sm:$0xf0]  ;;  %v6743_v16 = vld [vmem:[%s10828_s1 + $0x164] sm:$0xf]  ;;  %v4962_v18 = vor.u32 %v6811_v8, %v4959_v9 }
  0x97   :  { %3453 = vmatpush.bf16.msra.mxu2 %v4850_v63  ;;  %3467 = vmatpush.bf16.msra.mxu3 %v4978_v4  ;;  %v4687_v19 = vld [vmem:[%s10828_s1 + $0x170] sm:$0xf0]  ;;  %v6775_v20 = vld [vmem:[%s10828_s1 + $0x264] sm:$0xf]  ;;  %v4562_v24 = vor.u32 %v6711_v14, %v4559_v15 }
  0x98   :  { %v4815_v21 = vld [vmem:[%s10828_s1 + $0x270] sm:$0xf0]  ;;  %v6807_v22 = vld [vmem:[%s10828_s1 + $0x364] sm:$0xf]  ;;  %v4690_v25 = vor.u32 %v6743_v16, %v4687_v19 }
  0x99   :  { %v4943_v23 = vld [vmem:[%s10828_s1 + $0x370] sm:$0xf0]  ;;  %v4818_v26 = vor.u32 %v6775_v20, %v4815_v21  ;;  %v6707_v27 = vld [vmem:[%s10828_s1 + $0x44] sm:$0xf] }
  0x9a   :  { %3426 = vmatpush.bf16.msra.mxu0 %v4578_v11  ;;  %3440 = vmatpush.bf16.msra.mxu1 %v4706_v12  ;;  %v4543_v28 = vld [vmem:[%s10828_s1 + $0x50] sm:$0xf0]  ;;  %v6739_v29 = vld [vmem:[%s10828_s1 + $0x144] sm:$0xf]  ;;  %v4946_v30 = vor.u32 %v6807_v22, %v4943_v23 }
  0x9b   :  { %3454 = vmatpush.bf16.msra.mxu2 %v4834_v13  ;;  %3468 = vmatpush.bf16.msra.mxu3 %v4962_v18  ;;  %v4671_v33 = vld [vmem:[%s10828_s1 + $0x150] sm:$0xf0]  ;;  %v6771_v34 = vld [vmem:[%s10828_s1 + $0x244] sm:$0xf]  ;;  %v4546_v48 = vor.u32 %v6707_v27, %v4543_v28 }
  0x9c   :  { %v4799_v37 = vld [vmem:[%s10828_s1 + $0x250] sm:$0xf0]  ;;  %v6803_v42 = vld [vmem:[%s10828_s1 + $0x344] sm:$0xf]  ;;  %v4674_v49 = vor.u32 %v6739_v29, %v4671_v33 }
  0x9d   :  { %v4927_v45 = vld [vmem:[%s10828_s1 + $0x350] sm:$0xf0]  ;;  %v4802_v50 = vor.u32 %v6771_v34, %v4799_v37  ;;  %v6703_v51 = vld [vmem:[%s10828_s1 + $0x24] sm:$0xf] }
  0x9e   :  { %3427 = vmatpush.bf16.msra.mxu0 %v4562_v24  ;;  %3441 = vmatpush.bf16.msra.mxu1 %v4690_v25  ;;  %v4527_v52 = vld [vmem:[%s10828_s1 + $0x30] sm:$0xf0]  ;;  %v6735_v53 = vld [vmem:[%s10828_s1 + $0x124] sm:$0xf]  ;;  %v4930_v54 = vor.u32 %v6803_v42, %v4927_v45 }
  0x9f   :  { %3455 = vmatpush.bf16.msra.mxu2 %v4818_v26  ;;  %3469 = vmatpush.bf16.msra.mxu3 %v4946_v30  ;;  %v4655_v55 = vld [vmem:[%s10828_s1 + $0x130] sm:$0xf0]  ;;  %v6767_v56 = vld [vmem:[%s10828_s1 + $0x224] sm:$0xf]  ;;  %v4530_v61 = vor.u32 %v6703_v51, %v4527_v52 }
  0xa0   :  { %v4783_v57 = vld [vmem:[%s10828_s1 + $0x230] sm:$0xf0]  ;;  %v6799_v59 = vld [vmem:[%s10828_s1 + $0x324] sm:$0xf]  ;;  %v4658_v0 = vor.u32 %v6735_v53, %v4655_v55 }
  0xa1   :  { %v4911_v60 = vld [vmem:[%s10828_s1 + $0x330] sm:$0xf0]  ;;  %v6699_v62 = vld [vmem:[%s10828_s1 + $0x4] sm:$0xf]  ;;  %v4786_v2 = vor.u32 %v6767_v56, %v4783_v57 }
  0xa2   :  { %3428 = vmatpush.bf16.msra.mxu0 %v4546_v48  ;;  %v4511_v63 = vld [vmem:[%s10828_s1 + $0x10] sm:$0xf0]  ;;  %3442 = vmatpush.bf16.msra.mxu1 %v4674_v49  ;;  %v6731_v3 = vld [vmem:[%s10828_s1 + $0x104] sm:$0xf]  ;;  %v4914_v6 = vor.u32 %v6799_v59, %v4911_v60 }
  0xa3   :  { %3456 = vmatpush.bf16.msra.mxu2 %v4802_v50  ;;  %v4639_v4 = vld [vmem:[%s10828_s1 + $0x110] sm:$0xf0]  ;;  %v6763_v5 = vld [vmem:[%s10828_s1 + $0x204] sm:$0xf]  ;;  %3470 = vmatpush.bf16.msra.mxu3 %v4930_v54  ;;  %v4514_v14 = vor.u32 %v6699_v62, %v4511_v63  ;;  %v8472_v54 = vld [vmem:[%s10829_s2] sm:$0xf] }
  0xa4   :  { %v4767_v7 = vld [vmem:[%s10828_s1 + $0x210] sm:$0xf0]  ;;  %v6795_v8 = vld [vmem:[%s10828_s1 + $0x304] sm:$0xf]  ;;  %v4642_v19 = vor.u32 %v6731_v3, %v4639_v4  ;;  %v551_v63 = vperm.slane %v8472_v54, 0 }
  0xa5   :  { %v4895_v9 = vld [vmem:[%s10828_s1 + $0x310] sm:$0xf0]  ;;  %v6855_v11 = vld [vmem:[%s10828_s1 + $0x4e4] sm:$0xf]  ;;  %v4770_v20 = vor.u32 %v6763_v5, %v4767_v7  ;;  %v7136_v54 = vld [vmem:[%s10828_s1 + $0xdac] sm:$0xf] }
  0xa6   :  { %v5135_v12 = vld [vmem:[%s10828_s1 + $0x4f0] sm:$0xf0]  ;;  %v6887_v13 = vld [vmem:[%s10828_s1 + $0x5e4] sm:$0xf]  ;;  %3429 = vmatpush.bf16.msra.mxu0 %v4530_v61  ;;  %3443 = vmatpush.bf16.msra.mxu1 %v4658_v0  ;;  %v4898_v23 = vor.u32 %v6795_v8, %v4895_v9 }
  0xa7   :  { %v5263_v15 = vld [vmem:[%s10828_s1 + $0x5f0] sm:$0xf0]  ;;  %v6919_v16 = vld [vmem:[%s10828_s1 + $0x6e4] sm:$0xf]  ;;  %3457 = vmatpush.bf16.msra.mxu2 %v4786_v2  ;;  %3471 = vmatpush.bf16.msra.mxu3 %v4914_v6  ;;  %v5138_v24 = vor.u32 %v6855_v11, %v5135_v12 }
  0xa8   :  { %v5391_v18 = vld [vmem:[%s10828_s1 + $0x6f0] sm:$0xf0]  ;;  %v6951_v21 = vld [vmem:[%s10828_s1 + $0x7e4] sm:$0xf]  ;;  %v5266_v25 = vor.u32 %v6887_v13, %v5263_v15 }
  0xa9   :  { %v5519_v22 = vld [vmem:[%s10828_s1 + $0x7f0] sm:$0xf0]  ;;  %v5394_v26 = vor.u32 %v6919_v16, %v5391_v18  ;;  %v6851_v27 = vld [vmem:[%s10828_s1 + $0x4c4] sm:$0xf] }
  0xaa   :  { %v5119_v28 = vld [vmem:[%s10828_s1 + $0x4d0] sm:$0xf0]  ;;  %v6883_v29 = vld [vmem:[%s10828_s1 + $0x5c4] sm:$0xf]  ;;  %3430 = vmatpush.bf16.msra.mxu0 %v4514_v14  ;;  %v5522_v30 = vor.u32 %v6951_v21, %v5519_v22  ;;  %3444 = vmatpush.bf16.msra.mxu1 %v4642_v19  ;;  %v3208_v13 = vpop.f32.mrf.mxu0 }
  0xab   :  { %v5247_v33 = vld [vmem:[%s10828_s1 + $0x5d0] sm:$0xf0]  ;;  %v6915_v34 = vld [vmem:[%s10828_s1 + $0x6c4] sm:$0xf]  ;;  %3458 = vmatpush.bf16.msra.mxu2 %v4770_v20  ;;  %3472 = vmatpush.bf16.msra.mxu3 %v4898_v23  ;;  %v5122_v48 = vor.u32 %v6851_v27, %v5119_v28  ;;  %v3209_v15 = vadd.f32 %v3208_v13, %v551_v63  ;;  %v3222_v28 = vpop.f32.mrf.mxu1 }
  0xac   :  { %v5375_v37 = vld [vmem:[%s10828_s1 + $0x6d0] sm:$0xf0]  ;;  %v6947_v42 = vld [vmem:[%s10828_s1 + $0x7c4] sm:$0xf]  ;;  %v5250_v50 = vor.u32 %v6883_v29, %v5247_v33 }
  0xad   :  { %v5503_v45 = vld [vmem:[%s10828_s1 + $0x7d0] sm:$0xf0]  ;;  %v6847_v49 = vld [vmem:[%s10828_s1 + $0x4a4] sm:$0xf]  ;;  %v5378_v51 = vor.u32 %v6915_v34, %v5375_v37  ;;  %3431 = vmatmul.bf16.vlgmr.msra.gmra.mxu0 %v7563_v58  ;;  %3445 = vmatmul.bf16.vlgmr.msra.gmra.mxu1 %v7599_v10 }
  0xae   :  { %3479 = vmatpush.bf16.msrb.mxu0 %v5138_v24  ;;  %3493 = vmatpush.bf16.msrb.mxu1 %v5266_v25  ;;  %v5103_v52 = vld [vmem:[%s10828_s1 + $0x4b0] sm:$0xf0]  ;;  %v6879_v53 = vld [vmem:[%s10828_s1 + $0x5a4] sm:$0xf]  ;;  %v5506_v55 = vor.u32 %v6947_v42, %v5503_v45 }
  0xaf   :  { %3507 = vmatpush.bf16.msrb.mxu2 %v5394_v26  ;;  %3521 = vmatpush.bf16.msrb.mxu3 %v5522_v30  ;;  %v5231_v56 = vld [vmem:[%s10828_s1 + $0x5b0] sm:$0xf0]  ;;  %v6911_v57 = vld [vmem:[%s10828_s1 + $0x6a4] sm:$0xf]  ;;  %v5106_v62 = vor.u32 %v6847_v49, %v5103_v52  ;;  %v3223_v30 = vadd.f32 %v3222_v28, %v3209_v15  ;;  %v3236_v52 = vpop.f32.mrf.mxu2 }
  0xb0   :  { %v5359_v59 = vld [vmem:[%s10828_s1 + $0x6b0] sm:$0xf0]  ;;  %v6943_v60 = vld [vmem:[%s10828_s1 + $0x7a4] sm:$0xf]  ;;  %3459 = vmatmul.bf16.vlgmr.msra.gmra.mxu2 %v7577_v1  ;;  %3473 = vmatmul.bf16.vlgmr.msra.gmra.mxu3 %v7613_v17  ;;  %v5234_v0 = vor.u32 %v6879_v53, %v5231_v56 }
  0xb1   :  { %v5487_v61 = vld [vmem:[%s10828_s1 + $0x7b0] sm:$0xf0]  ;;  %v5362_v2 = vor.u32 %v6911_v57, %v5359_v59  ;;  %v6843_v3 = vld [vmem:[%s10828_s1 + $0x484] sm:$0xf]  ;;  %v3237_v56 = vadd.f32 %v3236_v52, %v3223_v30 }
  0xb2   :  { %3480 = vmatpush.bf16.msrb.mxu0 %v5122_v48  ;;  %3494 = vmatpush.bf16.msrb.mxu1 %v5250_v50  ;;  %v5087_v4 = vld [vmem:[%s10828_s1 + $0x490] sm:$0xf0]  ;;  %v6875_v5 = vld [vmem:[%s10828_s1 + $0x584] sm:$0xf]  ;;  %v5490_v6 = vor.u32 %v6943_v60, %v5487_v61 }
  0xb3   :  { %3508 = vmatpush.bf16.msrb.mxu2 %v5378_v51  ;;  %3522 = vmatpush.bf16.msrb.mxu3 %v5506_v55  ;;  %v5215_v7 = vld [vmem:[%s10828_s1 + $0x590] sm:$0xf0]  ;;  %v6907_v8 = vld [vmem:[%s10828_s1 + $0x684] sm:$0xf]  ;;  %v5090_v14 = vor.u32 %v6843_v3, %v5087_v4 }
  0xb4   :  { %v5343_v9 = vld [vmem:[%s10828_s1 + $0x690] sm:$0xf0]  ;;  %v6939_v11 = vld [vmem:[%s10828_s1 + $0x784] sm:$0xf]  ;;  %v5218_v16 = vor.u32 %v6875_v5, %v5215_v7 }
  0xb5   :  { %v5471_v12 = vld [vmem:[%s10828_s1 + $0x790] sm:$0xf0]  ;;  %v5346_v18 = vor.u32 %v6907_v8, %v5343_v9  ;;  %v6839_v19 = vld [vmem:[%s10828_s1 + $0x464] sm:$0xf] }
  0xb6   :  { %3481 = vmatpush.bf16.msrb.mxu0 %v5106_v62  ;;  %3495 = vmatpush.bf16.msrb.mxu1 %v5234_v0  ;;  %v5071_v20 = vld [vmem:[%s10828_s1 + $0x470] sm:$0xf0]  ;;  %v6871_v21 = vld [vmem:[%s10828_s1 + $0x564] sm:$0xf]  ;;  %v5474_v22 = vor.u32 %v6939_v11, %v5471_v12 }
  0xb7   :  { %3509 = vmatpush.bf16.msrb.mxu2 %v5362_v2  ;;  %3523 = vmatpush.bf16.msrb.mxu3 %v5490_v6  ;;  %v5199_v23 = vld [vmem:[%s10828_s1 + $0x570] sm:$0xf0]  ;;  %v6903_v24 = vld [vmem:[%s10828_s1 + $0x664] sm:$0xf]  ;;  %v5074_v29 = vor.u32 %v6839_v19, %v5071_v20  ;;  %v3250_v6 = vpop.f32.mrf.mxu3 }
  0xb8   :  { %v5327_v25 = vld [vmem:[%s10828_s1 + $0x670] sm:$0xf0]  ;;  %v6935_v26 = vld [vmem:[%s10828_s1 + $0x764] sm:$0xf]  ;;  %v5202_v33 = vor.u32 %v6871_v21, %v5199_v23  ;;  %v8592_v9 = vadd.f32 %v3250_v6, %v3237_v56 }
  0xb9   :  { %v5455_v27 = vld [vmem:[%s10828_s1 + $0x770] sm:$0xf0]  ;;  %v5330_v34 = vor.u32 %v6903_v24, %v5327_v25  ;;  %v6835_v37 = vld [vmem:[%s10828_s1 + $0x444] sm:$0xf] }
  0xba   :  { %3482 = vmatpush.bf16.msrb.mxu0 %v5090_v14  ;;  %3496 = vmatpush.bf16.msrb.mxu1 %v5218_v16  ;;  %v5055_v42 = vld [vmem:[%s10828_s1 + $0x450] sm:$0xf0]  ;;  %v6867_v45 = vld [vmem:[%s10828_s1 + $0x544] sm:$0xf]  ;;  %v5458_v48 = vor.u32 %v6935_v26, %v5455_v27 }
  0xbb   :  { %3510 = vmatpush.bf16.msrb.mxu2 %v5346_v18  ;;  %3524 = vmatpush.bf16.msrb.mxu3 %v5474_v22  ;;  %v5183_v49 = vld [vmem:[%s10828_s1 + $0x550] sm:$0xf0]  ;;  %v6899_v50 = vld [vmem:[%s10828_s1 + $0x644] sm:$0xf]  ;;  %v5058_v57 = vor.u32 %v6835_v37, %v5055_v42 }
  0xbc   :  { %v5311_v51 = vld [vmem:[%s10828_s1 + $0x650] sm:$0xf0]  ;;  %v6931_v53 = vld [vmem:[%s10828_s1 + $0x744] sm:$0xf]  ;;  %v5186_v59 = vor.u32 %v6867_v45, %v5183_v49 }
  0xbd   :  { %v5439_v55 = vld [vmem:[%s10828_s1 + $0x750] sm:$0xf0]  ;;  %v5314_v60 = vor.u32 %v6899_v50, %v5311_v51  ;;  %v6831_v61 = vld [vmem:[%s10828_s1 + $0x424] sm:$0xf]  ;;  %v8642_v51 = vpop.f32.mrf.mxu0 }
  0xbe   :  { %3483 = vmatpush.bf16.msrb.mxu0 %v5074_v29  ;;  %3497 = vmatpush.bf16.msrb.mxu1 %v5202_v33  ;;  %v5039_v62 = vld [vmem:[%s10828_s1 + $0x430] sm:$0xf0]  ;;  %v6863_v0 = vld [vmem:[%s10828_s1 + $0x524] sm:$0xf]  ;;  %v5442_v2 = vor.u32 %v6931_v53, %v5439_v55 }
  0xbf   :  { %3511 = vmatpush.bf16.msrb.mxu2 %v5330_v34  ;;  %3525 = vmatpush.bf16.msrb.mxu3 %v5458_v48  ;;  %v5167_v3 = vld [vmem:[%s10828_s1 + $0x530] sm:$0xf0]  ;;  %v6895_v4 = vld [vmem:[%s10828_s1 + $0x624] sm:$0xf]  ;;  %v5042_v11 = vor.u32 %v6831_v61, %v5039_v62 }
  0xc0   :  { %v5295_v5 = vld [vmem:[%s10828_s1 + $0x630] sm:$0xf0]  ;;  %v6927_v7 = vld [vmem:[%s10828_s1 + $0x724] sm:$0xf]  ;;  %v5170_v14 = vor.u32 %v6863_v0, %v5167_v3  ;;  %v8668_v0 = vpop.f32.mrf.mxu1 }
  0xc1   :  { %v5423_v8 = vld [vmem:[%s10828_s1 + $0x730] sm:$0xf0]  ;;  %v6827_v12 = vld [vmem:[%s10828_s1 + $0x404] sm:$0xf]  ;;  %v5298_v15 = vor.u32 %v6895_v4, %v5295_v5 }
  0xc2   :  { %3484 = vmatpush.bf16.msrb.mxu0 %v5058_v57  ;;  %v5023_v13 = vld [vmem:[%s10828_s1 + $0x410] sm:$0xf0]  ;;  %3498 = vmatpush.bf16.msrb.mxu1 %v5186_v59  ;;  %v6859_v16 = vld [vmem:[%s10828_s1 + $0x504] sm:$0xf]  ;;  %v5426_v20 = vor.u32 %v6927_v7, %v5423_v8 }
  0xc3   :  { %3512 = vmatpush.bf16.msrb.mxu2 %v5314_v60  ;;  %v5151_v18 = vld [vmem:[%s10828_s1 + $0x510] sm:$0xf0]  ;;  %v6891_v19 = vld [vmem:[%s10828_s1 + $0x604] sm:$0xf]  ;;  %3526 = vmatpush.bf16.msrb.mxu3 %v5442_v2  ;;  %v5026_v27 = vor.u32 %v6827_v12, %v5023_v13 }
  0xc4   :  { %v5279_v21 = vld [vmem:[%s10828_s1 + $0x610] sm:$0xf0]  ;;  %v6923_v22 = vld [vmem:[%s10828_s1 + $0x704] sm:$0xf]  ;;  %v5154_v33 = vor.u32 %v6859_v16, %v5151_v18  ;;  %v8698_v18 = vpop.f32.mrf.mxu2 }
  0xc5   :  { %v5407_v23 = vld [vmem:[%s10828_s1 + $0x710] sm:$0xf0]  ;;  %v6983_v24 = vld [vmem:[%s10828_s1 + $0x8e4] sm:$0xf]  ;;  %v5282_v34 = vor.u32 %v6891_v19, %v5279_v21 }
  0xc6   :  { %v5647_v25 = vld [vmem:[%s10828_s1 + $0x8f0] sm:$0xf0]  ;;  %v7015_v26 = vld [vmem:[%s10828_s1 + $0x9e4] sm:$0xf]  ;;  %3485 = vmatpush.bf16.msrb.mxu0 %v5042_v11  ;;  %3499 = vmatpush.bf16.msrb.mxu1 %v5170_v14  ;;  %v5410_v45 = vor.u32 %v6923_v22, %v5407_v23 }
  0xc7   :  { %v5775_v28 = vld [vmem:[%s10828_s1 + $0x9f0] sm:$0xf0]  ;;  %v7047_v29 = vld [vmem:[%s10828_s1 + $0xae4] sm:$0xf]  ;;  %3513 = vmatpush.bf16.msrb.mxu2 %v5298_v15  ;;  %3527 = vmatpush.bf16.msrb.mxu3 %v5426_v20  ;;  %v5650_v48 = vor.u32 %v6983_v24, %v5647_v25  ;;  %v8709_v25 = vpop.f32.mrf.mxu3 }
  0xc8   :  { %v5903_v30 = vld [vmem:[%s10828_s1 + $0xaf0] sm:$0xf0]  ;;  %v7079_v37 = vld [vmem:[%s10828_s1 + $0xbe4] sm:$0xf]  ;;  %v5778_v49 = vor.u32 %v7015_v26, %v5775_v28 }
  0xc9   :  { %v6031_v42 = vld [vmem:[%s10828_s1 + $0xbf0] sm:$0xf0]  ;;  %v5906_v50 = vor.u32 %v7047_v29, %v5903_v30  ;;  %v6979_v52 = vld [vmem:[%s10828_s1 + $0x8c4] sm:$0xf]  ;;  %v3264_v29 = vpop.f32.mrf.mxu0 }
  0xca   :  { %v5631_v53 = vld [vmem:[%s10828_s1 + $0x8d0] sm:$0xf0]  ;;  %v7011_v55 = vld [vmem:[%s10828_s1 + $0x9c4] sm:$0xf]  ;;  %3486 = vmatpush.bf16.msrb.mxu0 %v5026_v27  ;;  %v6034_v56 = vor.u32 %v7079_v37, %v6031_v42  ;;  %3500 = vmatpush.bf16.msrb.mxu1 %v5154_v33 }
  0xcb   :  { %v5759_v57 = vld [vmem:[%s10828_s1 + $0x9d0] sm:$0xf0]  ;;  %v7043_v59 = vld [vmem:[%s10828_s1 + $0xac4] sm:$0xf]  ;;  %3514 = vmatpush.bf16.msrb.mxu2 %v5282_v34  ;;  %3528 = vmatpush.bf16.msrb.mxu3 %v5410_v45  ;;  %v5634_v2 = vor.u32 %v6979_v52, %v5631_v53  ;;  %v3265_v34 = vadd.f32 %v3264_v29, %v8592_v9 }
  0xcc   :  { %v5887_v60 = vld [vmem:[%s10828_s1 + $0xad0] sm:$0xf0]  ;;  %v7075_v61 = vld [vmem:[%s10828_s1 + $0xbc4] sm:$0xf]  ;;  %v5762_v3 = vor.u32 %v7011_v55, %v5759_v57 }
  0xcd   :  { %v6015_v62 = vld [vmem:[%s10828_s1 + $0xbd0] sm:$0xf0]  ;;  %v5890_v4 = vor.u32 %v7043_v59, %v5887_v60  ;;  %v6975_v5 = vld [vmem:[%s10828_s1 + $0x8a4] sm:$0xf]  ;;  %3487 = vmatmul.bf16.vlgmr.msrb.gmra.mxu0 %v7785_v39  ;;  %3501 = vmatmul.bf16.vlgmr.msrb.gmra.mxu1 %v7798_v44 }
  0xce   :  { %3535 = vmatpush.bf16.msra.mxu0 %v5650_v48  ;;  %3549 = vmatpush.bf16.msra.mxu1 %v5778_v49  ;;  %v5615_v6 = vld [vmem:[%s10828_s1 + $0x8b0] sm:$0xf0]  ;;  %v7007_v7 = vld [vmem:[%s10828_s1 + $0x9a4] sm:$0xf]  ;;  %v6018_v8 = vor.u32 %v7075_v61, %v6015_v62  ;;  %v3278_v48 = vpop.f32.mrf.mxu1 }
  0xcf   :  { %3563 = vmatpush.bf16.msra.mxu2 %v5906_v50  ;;  %3577 = vmatpush.bf16.msra.mxu3 %v6034_v56  ;;  %v5743_v11 = vld [vmem:[%s10828_s1 + $0x9b0] sm:$0xf0]  ;;  %v7039_v12 = vld [vmem:[%s10828_s1 + $0xaa4] sm:$0xf]  ;;  %v5618_v16 = vor.u32 %v6975_v5, %v5615_v6  ;;  %v3279_v53 = vadd.f32 %v3278_v48, %v3265_v34 }
  0xd0   :  { %v5871_v13 = vld [vmem:[%s10828_s1 + $0xab0] sm:$0xf0]  ;;  %3515 = vmatmul.bf16.vlgmr.msrb.gmra.mxu2 %v7796_v43  ;;  %v7071_v14 = vld [vmem:[%s10828_s1 + $0xba4] sm:$0xf]  ;;  %3529 = vmatmul.bf16.vlgmr.msrb.gmra.mxu3 %v7806_v47  ;;  %v5746_v19 = vor.u32 %v7007_v7, %v5743_v11  ;;  %v3292_v7 = vpop.f32.mrf.mxu2 }
  0xd1   :  { %v5999_v15 = vld [vmem:[%s10828_s1 + $0xbb0] sm:$0xf0]  ;;  %v5874_v20 = vor.u32 %v7039_v12, %v5871_v13  ;;  %v6971_v21 = vld [vmem:[%s10828_s1 + $0x884] sm:$0xf]  ;;  %v3293_v13 = vadd.f32 %v3292_v7, %v3279_v53 }
  0xd2   :  { %3536 = vmatpush.bf16.msra.mxu0 %v5634_v2  ;;  %3550 = vmatpush.bf16.msra.mxu1 %v5762_v3  ;;  %v5599_v22 = vld [vmem:[%s10828_s1 + $0x890] sm:$0xf0]  ;;  %v7003_v23 = vld [vmem:[%s10828_s1 + $0x984] sm:$0xf]  ;;  %v6002_v24 = vor.u32 %v7071_v14, %v5999_v15 }
  0xd3   :  { %3564 = vmatpush.bf16.msra.mxu2 %v5890_v4  ;;  %3578 = vmatpush.bf16.msra.mxu3 %v6018_v8  ;;  %v5727_v26 = vld [vmem:[%s10828_s1 + $0x990] sm:$0xf0]  ;;  %v7035_v27 = vld [vmem:[%s10828_s1 + $0xa84] sm:$0xf]  ;;  %v5602_v37 = vor.u32 %v6971_v21, %v5599_v22 }
  0xd4   :  { %v5855_v28 = vld [vmem:[%s10828_s1 + $0xa90] sm:$0xf0]  ;;  %v7067_v30 = vld [vmem:[%s10828_s1 + $0xb84] sm:$0xf]  ;;  %v5730_v42 = vor.u32 %v7003_v23, %v5727_v26 }
  0xd5   :  { %v5983_v33 = vld [vmem:[%s10828_s1 + $0xb90] sm:$0xf0]  ;;  %v5858_v45 = vor.u32 %v7035_v27, %v5855_v28  ;;  %v6967_v49 = vld [vmem:[%s10828_s1 + $0x864] sm:$0xf] }
  0xd6   :  { %3537 = vmatpush.bf16.msra.mxu0 %v5618_v16  ;;  %3551 = vmatpush.bf16.msra.mxu1 %v5746_v19  ;;  %v5583_v50 = vld [vmem:[%s10828_s1 + $0x870] sm:$0xf0]  ;;  %v6999_v52 = vld [vmem:[%s10828_s1 + $0x964] sm:$0xf]  ;;  %v5986_v9 = vor.u32 %v7067_v30, %v5983_v33  ;;  %v3306_v16 = vpop.f32.mrf.mxu3 }
  0xd7   :  { %3565 = vmatpush.bf16.msra.mxu2 %v5874_v20  ;;  %3579 = vmatpush.bf16.msra.mxu3 %v6002_v24  ;;  %v5711_v55 = vld [vmem:[%s10828_s1 + $0x970] sm:$0xf0]  ;;  %v7031_v56 = vld [vmem:[%s10828_s1 + $0xa64] sm:$0xf]  ;;  %v5586_v61 = vor.u32 %v6967_v49, %v5583_v50  ;;  %v8775_v20 = vadd.f32 %v3306_v16, %v3293_v13 }
  0xd8   :  { %v5839_v57 = vld [vmem:[%s10828_s1 + $0xa70] sm:$0xf0]  ;;  %v7063_v59 = vld [vmem:[%s10828_s1 + $0xb64] sm:$0xf]  ;;  %v5714_v62 = vor.u32 %v6999_v52, %v5711_v55 }
  0xd9   :  { %v5967_v60 = vld [vmem:[%s10828_s1 + $0xb70] sm:$0xf0]  ;;  %v5842_v2 = vor.u32 %v7031_v56, %v5839_v57  ;;  %v6963_v3 = vld [vmem:[%s10828_s1 + $0x844] sm:$0xf] }
  0xda   :  { %3538 = vmatpush.bf16.msra.mxu0 %v5602_v37  ;;  %3552 = vmatpush.bf16.msra.mxu1 %v5730_v42  ;;  %v5567_v4 = vld [vmem:[%s10828_s1 + $0x850] sm:$0xf0]  ;;  %v6995_v5 = vld [vmem:[%s10828_s1 + $0x944] sm:$0xf]  ;;  %v5970_v6 = vor.u32 %v7063_v59, %v5967_v60 }
  0xdb   :  { %3566 = vmatpush.bf16.msra.mxu2 %v5858_v45  ;;  %3580 = vmatpush.bf16.msra.mxu3 %v5986_v9  ;;  %v5695_v8 = vld [vmem:[%s10828_s1 + $0x950] sm:$0xf0]  ;;  %v7027_v11 = vld [vmem:[%s10828_s1 + $0xa44] sm:$0xf]  ;;  %v5570_v19 = vor.u32 %v6963_v3, %v5567_v4 }
  0xdc   :  { %v5823_v12 = vld [vmem:[%s10828_s1 + $0xa50] sm:$0xf0]  ;;  %v7059_v14 = vld [vmem:[%s10828_s1 + $0xb44] sm:$0xf]  ;;  %v5698_v21 = vor.u32 %v6995_v5, %v5695_v8 }
  0xdd   :  { %v5951_v15 = vld [vmem:[%s10828_s1 + $0xb50] sm:$0xf0]  ;;  %v5826_v22 = vor.u32 %v7027_v11, %v5823_v12  ;;  %v6959_v23 = vld [vmem:[%s10828_s1 + $0x824] sm:$0xf] }
  0xde   :  { %3539 = vmatpush.bf16.msra.mxu0 %v5586_v61  ;;  %3553 = vmatpush.bf16.msra.mxu1 %v5714_v62  ;;  %v5551_v24 = vld [vmem:[%s10828_s1 + $0x830] sm:$0xf0]  ;;  %v6991_v26 = vld [vmem:[%s10828_s1 + $0x924] sm:$0xf]  ;;  %v5954_v27 = vor.u32 %v7059_v14, %v5951_v15 }
  0xdf   :  { %3567 = vmatpush.bf16.msra.mxu2 %v5842_v2  ;;  %3581 = vmatpush.bf16.msra.mxu3 %v5970_v6  ;;  %v5679_v28 = vld [vmem:[%s10828_s1 + $0x930] sm:$0xf0]  ;;  %v7023_v29 = vld [vmem:[%s10828_s1 + $0xa24] sm:$0xf]  ;;  %v5554_v37 = vor.u32 %v6959_v23, %v5551_v24 }
  0xe0   :  { %v5807_v30 = vld [vmem:[%s10828_s1 + $0xa30] sm:$0xf0]  ;;  %v7055_v33 = vld [vmem:[%s10828_s1 + $0xb24] sm:$0xf]  ;;  %v5682_v48 = vor.u32 %v6991_v26, %v5679_v28  ;;  %v8867_v26 = vpop.f32.mrf.mxu0 }
  0xe1   :  { %v5935_v34 = vld [vmem:[%s10828_s1 + $0xb30] sm:$0xf0]  ;;  %v6955_v42 = vld [vmem:[%s10828_s1 + $0x804] sm:$0xf]  ;;  %v5810_v49 = vor.u32 %v7023_v29, %v5807_v30  ;;  %v8875_v29 = vpop.f32.mrf.mxu1 }
  0xe2   :  { %3540 = vmatpush.bf16.msra.mxu0 %v5570_v19  ;;  %v5535_v45 = vld [vmem:[%s10828_s1 + $0x810] sm:$0xf0]  ;;  %3554 = vmatpush.bf16.msra.mxu1 %v5698_v21  ;;  %v6987_v50 = vld [vmem:[%s10828_s1 + $0x904] sm:$0xf]  ;;  %v5938_v53 = vor.u32 %v7055_v33, %v5935_v34 }
  0xe3   :  { %3568 = vmatpush.bf16.msra.mxu2 %v5826_v22  ;;  %v5663_v52 = vld [vmem:[%s10828_s1 + $0x910] sm:$0xf0]  ;;  %v7019_v9 = vld [vmem:[%s10828_s1 + $0xa04] sm:$0xf]  ;;  %3582 = vmatpush.bf16.msra.mxu3 %v5954_v27  ;;  %v5538_v62 = vor.u32 %v6955_v42, %v5535_v45 }
  0xe4   :  { %v5791_v55 = vld [vmem:[%s10828_s1 + $0xa10] sm:$0xf0]  ;;  %v7051_v56 = vld [vmem:[%s10828_s1 + $0xb04] sm:$0xf]  ;;  %v5666_v5 = vor.u32 %v6987_v50, %v5663_v52 }
  0xe5   :  { %v5919_v57 = vld [vmem:[%s10828_s1 + $0xb10] sm:$0xf0]  ;;  %v7111_v59 = vld [vmem:[%s10828_s1 + $0xce4] sm:$0xf]  ;;  %v5794_v6 = vor.u32 %v7019_v9, %v5791_v55 }
  0xe6   :  { %v6159_v60 = vld [vmem:[%s10828_s1 + $0xcf0] sm:$0xf0]  ;;  %v7143_v61 = vld [vmem:[%s10828_s1 + $0xde4] sm:$0xf]  ;;  %3541 = vmatpush.bf16.msra.mxu0 %v5554_v37  ;;  %3555 = vmatpush.bf16.msra.mxu1 %v5682_v48  ;;  %v5922_v11 = vor.u32 %v7051_v56, %v5919_v57 }
  0xe7   :  { %v6287_v2 = vld [vmem:[%s10828_s1 + $0xdf0] sm:$0xf0]  ;;  %v7175_v3 = vld [vmem:[%s10828_s1 + $0xee4] sm:$0xf]  ;;  %3569 = vmatpush.bf16.msra.mxu2 %v5810_v49  ;;  %3583 = vmatpush.bf16.msra.mxu3 %v5938_v53  ;;  %v6162_v12 = vor.u32 %v7111_v59, %v6159_v60 }
  0xe8   :  { %v6415_v4 = vld [vmem:[%s10828_s1 + $0xef0] sm:$0xf0]  ;;  %v7207_v7 = vld [vmem:[%s10828_s1 + $0xfe4] sm:$0xf]  ;;  %v6290_v13 = vor.u32 %v7143_v61, %v6287_v2 }
  0xe9   :  { %v6543_v8 = vld [vmem:[%s10828_s1 + $0xff0] sm:$0xf0]  ;;  %v6418_v14 = vor.u32 %v7175_v3, %v6415_v4  ;;  %v7107_v15 = vld [vmem:[%s10828_s1 + $0xcc4] sm:$0xf] }
  0xea   :  { %v6143_v16 = vld [vmem:[%s10828_s1 + $0xcd0] sm:$0xf0]  ;;  %v7139_v19 = vld [vmem:[%s10828_s1 + $0xdc4] sm:$0xf]  ;;  %3542 = vmatpush.bf16.msra.mxu0 %v5538_v62  ;;  %v6546_v21 = vor.u32 %v7207_v7, %v6543_v8  ;;  %3556 = vmatpush.bf16.msra.mxu1 %v5666_v5  ;;  %v8914_v62 = vpop.f32.mrf.mxu2  ;;  %v3320_v7 = vpop.f32.mrf.mxu0 }
  0xeb   :  { %v6271_v22 = vld [vmem:[%s10828_s1 + $0xdd0] sm:$0xf0]  ;;  %v7171_v23 = vld [vmem:[%s10828_s1 + $0xec4] sm:$0xf]  ;;  %3570 = vmatpush.bf16.msra.mxu2 %v5794_v6  ;;  %3584 = vmatpush.bf16.msra.mxu3 %v5922_v11  ;;  %v6146_v30 = vor.u32 %v7107_v15, %v6143_v16  ;;  %v8925_v6 = vpop.f32.mrf.mxu3 }
  0xec   :  { %v6399_v24 = vld [vmem:[%s10828_s1 + $0xed0] sm:$0xf0]  ;;  %v7203_v27 = vld [vmem:[%s10828_s1 + $0xfc4] sm:$0xf]  ;;  %v6274_v33 = vor.u32 %v7139_v19, %v6271_v22 }
  0xed   :  { %v6527_v28 = vld [vmem:[%s10828_s1 + $0xfd0] sm:$0xf0]  ;;  %v6402_v34 = vor.u32 %v7171_v23, %v6399_v24  ;;  %v7103_v37 = vld [vmem:[%s10828_s1 + $0xca4] sm:$0xf]  ;;  %3543 = vmatmul.bf16.vlgmr.msra.gmra.mxu0 %v8013_v31  ;;  %3557 = vmatmul.bf16.vlgmr.msra.gmra.mxu1 %v8026_v36 }
  0xee   :  { %3591 = vmatpush.bf16.msrb.mxu0 %v6162_v12  ;;  %3605 = vmatpush.bf16.msrb.mxu1 %v6290_v13  ;;  %v6127_v42 = vld [vmem:[%s10828_s1 + $0xcb0] sm:$0xf0]  ;;  %v7135_v45 = vld [vmem:[%s10828_s1 + $0xda4] sm:$0xf]  ;;  %v6530_v48 = vor.u32 %v7203_v27, %v6527_v28  ;;  %v3321_v12 = vadd.f32 %v3320_v7, %v8775_v20 }
  0xef   :  { %3619 = vmatpush.bf16.msrb.mxu2 %v6418_v14  ;;  %3633 = vmatpush.bf16.msrb.mxu3 %v6546_v21  ;;  %v6255_v49 = vld [vmem:[%s10828_s1 + $0xdb0] sm:$0xf0]  ;;  %v7167_v50 = vld [vmem:[%s10828_s1 + $0xea4] sm:$0xf]  ;;  %v6130_v55 = vor.u32 %v7103_v37, %v6127_v42  ;;  %v3334_v14 = vpop.f32.mrf.mxu1 }
  0xf0   :  { %v6383_v52 = vld [vmem:[%s10828_s1 + $0xeb0] sm:$0xf0]  ;;  %3571 = vmatmul.bf16.vlgmr.msra.gmra.mxu2 %v8024_v35  ;;  %v7199_v9 = vld [vmem:[%s10828_s1 + $0xfa4] sm:$0xf]  ;;  %3585 = vmatmul.bf16.vlgmr.msra.gmra.mxu3 %v8034_v40  ;;  %v6258_v56 = vor.u32 %v7135_v45, %v6255_v49  ;;  %v3335_v23 = vadd.f32 %v3334_v14, %v3321_v12 }
  0xf1   :  { %v6511_v53 = vld [vmem:[%s10828_s1 + $0xfb0] sm:$0xf0]  ;;  %v6386_v57 = vor.u32 %v7167_v50, %v6383_v52  ;;  %v7099_v59 = vld [vmem:[%s10828_s1 + $0xc84] sm:$0xf] }
  0xf2   :  { %3592 = vmatpush.bf16.msrb.mxu0 %v6146_v30  ;;  %3606 = vmatpush.bf16.msrb.mxu1 %v6274_v33  ;;  %v6111_v60 = vld [vmem:[%s10828_s1 + $0xc90] sm:$0xf0]  ;;  %v7131_v61 = vld [vmem:[%s10828_s1 + $0xd84] sm:$0xf]  ;;  %v6514_v2 = vor.u32 %v7199_v9, %v6511_v53  ;;  %v3348_v52 = vpop.f32.mrf.mxu2 }
  0xf3   :  { %3620 = vmatpush.bf16.msrb.mxu2 %v6402_v34  ;;  %3634 = vmatpush.bf16.msrb.mxu3 %v6530_v48  ;;  %v6239_v3 = vld [vmem:[%s10828_s1 + $0xd90] sm:$0xf0]  ;;  %v7163_v4 = vld [vmem:[%s10828_s1 + $0xe84] sm:$0xf]  ;;  %v6114_v13 = vor.u32 %v7099_v59, %v6111_v60 }
  0xf4   :  { %v6367_v5 = vld [vmem:[%s10828_s1 + $0xe90] sm:$0xf0]  ;;  %v7195_v8 = vld [vmem:[%s10828_s1 + $0xf84] sm:$0xf]  ;;  %v6242_v15 = vor.u32 %v7131_v61, %v6239_v3 }
  0xf5   :  { %v6495_v11 = vld [vmem:[%s10828_s1 + $0xf90] sm:$0xf0]  ;;  %v6370_v16 = vor.u32 %v7163_v4, %v6367_v5  ;;  %v7095_v19 = vld [vmem:[%s10828_s1 + $0xc64] sm:$0xf] }
  0xf6   :  { %3593 = vmatpush.bf16.msrb.mxu0 %v6130_v55  ;;  %3607 = vmatpush.bf16.msrb.mxu1 %v6258_v56  ;;  %v6095_v21 = vld [vmem:[%s10828_s1 + $0xc70] sm:$0xf0]  ;;  %v7127_v22 = vld [vmem:[%s10828_s1 + $0xd64] sm:$0xf]  ;;  %v6498_v20 = vor.u32 %v7195_v8, %v6495_v11  ;;  %v3349_v56 = vadd.f32 %v3348_v52, %v3335_v23  ;;  %v4885_v52 = vld [vmem:[%s10828_s1 + $0x2e8] sm:$0xf] }
  0xf7   :  { %3621 = vmatpush.bf16.msrb.mxu2 %v6386_v57  ;;  %3635 = vmatpush.bf16.msrb.mxu3 %v6514_v2  ;;  %v6223_v24 = vld [vmem:[%s10828_s1 + $0xd70] sm:$0xf0]  ;;  %v7159_v27 = vld [vmem:[%s10828_s1 + $0xe64] sm:$0xf]  ;;  %v6098_v34 = vor.u32 %v7095_v19, %v6095_v21  ;;  %v3362_v57 = vpop.f32.mrf.mxu3 }
  0xf8   :  { %v6351_v28 = vld [vmem:[%s10828_s1 + $0xe70] sm:$0xf0]  ;;  %v7191_v30 = vld [vmem:[%s10828_s1 + $0xf64] sm:$0xf]  ;;  %v6226_v37 = vor.u32 %v7127_v22, %v6223_v24  ;;  %v8982_v2 = vadd.f32 %v3362_v57, %v3349_v56  ;;  %v5013_v56 = vld [vmem:[%s10828_s1 + $0x3e8] sm:$0xf] }
  0xf9   :  { %v6479_v33 = vld [vmem:[%s10828_s1 + $0xf70] sm:$0xf0]  ;;  %v6354_v42 = vor.u32 %v7159_v27, %v6351_v28  ;;  %v7091_v45 = vld [vmem:[%s10828_s1 + $0xc44] sm:$0xf]  ;;  %v6826_v57 = vld [vmem:[%s10828_s1 + $0x3f4] sm:$0xf0] }
  0xfa   :  { %3594 = vmatpush.bf16.msrb.mxu0 %v6114_v13  ;;  %3608 = vmatpush.bf16.msrb.mxu1 %v6242_v15  ;;  %v6079_v48 = vld [vmem:[%s10828_s1 + $0xc50] sm:$0xf0]  ;;  %v7123_v49 = vld [vmem:[%s10828_s1 + $0xd44] sm:$0xf]  ;;  %v6482_v50 = vor.u32 %v7191_v30, %v6479_v33 }
  0xfb   :  { %3622 = vmatpush.bf16.msrb.mxu2 %v6370_v16  ;;  %3636 = vmatpush.bf16.msrb.mxu3 %v6498_v20  ;;  %v6207_v9 = vld [vmem:[%s10828_s1 + $0xd50] sm:$0xf0]  ;;  %v7155_v53 = vld [vmem:[%s10828_s1 + $0xe44] sm:$0xf]  ;;  %v6082_v61 = vor.u32 %v7091_v45, %v6079_v48  ;;  %v6730_v45 = vld [vmem:[%s10828_s1 + $0xf4] sm:$0xf0] }
  0xfc   :  { %v6335_v55 = vld [vmem:[%s10828_s1 + $0xe50] sm:$0xf0]  ;;  %v7187_v59 = vld [vmem:[%s10828_s1 + $0xf44] sm:$0xf]  ;;  %v6210_v3 = vor.u32 %v7123_v49, %v6207_v9  ;;  %v4757_v48 = vld [vmem:[%s10828_s1 + $0x1e8] sm:$0xf] }
  0xfd   :  { %v6463_v60 = vld [vmem:[%s10828_s1 + $0xf50] sm:$0xf0]  ;;  %v6338_v4 = vor.u32 %v7155_v53, %v6335_v55  ;;  %v7087_v5 = vld [vmem:[%s10828_s1 + $0xc24] sm:$0xf]  ;;  %v6794_v9 = vld [vmem:[%s10828_s1 + $0x2f4] sm:$0xf0] }
  0xfe   :  { %3595 = vmatpush.bf16.msrb.mxu0 %v6098_v34  ;;  %3609 = vmatpush.bf16.msrb.mxu1 %v6226_v37  ;;  %v6063_v7 = vld [vmem:[%s10828_s1 + $0xc30] sm:$0xf0]  ;;  %v7119_v8 = vld [vmem:[%s10828_s1 + $0xd24] sm:$0xf]  ;;  %v6466_v11 = vor.u32 %v7187_v59, %v6463_v60 }
  0xff   :  { %3623 = vmatpush.bf16.msrb.mxu2 %v6354_v42  ;;  %3637 = vmatpush.bf16.msrb.mxu3 %v6482_v50  ;;  %v6191_v12 = vld [vmem:[%s10828_s1 + $0xd30] sm:$0xf0]  ;;  %v7151_v13 = vld [vmem:[%s10828_s1 + $0xe24] sm:$0xf]  ;;  %v6066_v19 = vor.u32 %v7087_v5, %v6063_v7  ;;  %v4629_v42 = vld [vmem:[%s10828_s1 + $0xe8] sm:$0xf] }
 0x100   :  { %v6319_v14 = vld [vmem:[%s10828_s1 + $0xe30] sm:$0xf0]  ;;  %v7183_v15 = vld [vmem:[%s10828_s1 + $0xf24] sm:$0xf]  ;;  %v6194_v20 = vor.u32 %v7119_v8, %v6191_v12  ;;  %v6762_v50 = vld [vmem:[%s10828_s1 + $0x1f4] sm:$0xf0]  ;;  %v4630_v60 = vor.u32 %v6730_v45, %v4629_v42  ;;  %v5014_v8 = vor.u32 %v6826_v57, %v5013_v56 }
 0x101   :  { %v6447_v16 = vld [vmem:[%s10828_s1 + $0xf30] sm:$0xf0]  ;;  %v7083_v21 = vld [vmem:[%s10828_s1 + $0xc04] sm:$0xf]  ;;  %v6322_v23 = vor.u32 %v7151_v13, %v6319_v14  ;;  %v6726_v5 = vld [vmem:[%s10828_s1 + $0xd4] sm:$0xf0]  ;;  %v9074_v14 = vpop.f32.mrf.mxu0 }
 0x102   :  { %3596 = vmatpush.bf16.msrb.mxu0 %v6082_v61  ;;  %v6047_v22 = vld [vmem:[%s10828_s1 + $0xc10] sm:$0xf0]  ;;  %3610 = vmatpush.bf16.msrb.mxu1 %v6210_v3  ;;  %v7115_v24 = vld [vmem:[%s10828_s1 + $0xd04] sm:$0xf]  ;;  %v6450_v30 = vor.u32 %v7183_v15, %v6447_v16  ;;  %v4758_v61 = vor.u32 %v6762_v50, %v4757_v48  ;;  %v4886_v3 = vor.u32 %v6794_v9, %v4885_v52  ;;  %v4741_v7 = vld [vmem:[%s10828_s1 + $0x1c8] sm:$0xf] }
 0x103   :  { %3624 = vmatpush.bf16.msrb.mxu2 %v6338_v4  ;;  %v6175_v27 = vld [vmem:[%s10828_s1 + $0xd10] sm:$0xf0]  ;;  %v7147_v28 = vld [vmem:[%s10828_s1 + $0xe04] sm:$0xf]  ;;  %3638 = vmatpush.bf16.msrb.mxu3 %v6466_v11  ;;  %v6050_v49 = vor.u32 %v7083_v21, %v6047_v22  ;;  %v4613_v4 = vld [vmem:[%s10828_s1 + $0xc8] sm:$0xf] }
 0x104   :  { %v6303_v33 = vld [vmem:[%s10828_s1 + $0xe10] sm:$0xf0]  ;;  %v7179_v34 = vld [vmem:[%s10828_s1 + $0xf04] sm:$0xf]  ;;  %v6178_v53 = vor.u32 %v7115_v24, %v6175_v27  ;;  %v6758_v11 = vld [vmem:[%s10828_s1 + $0x1d4] sm:$0xf0]  ;;  %v4614_v21 = vor.u32 %v6726_v5, %v4613_v4 }
 0x105   :  { %v6431_v37 = vld [vmem:[%s10828_s1 + $0xf10] sm:$0xf0]  ;;  %v6306_v55 = vor.u32 %v7147_v28, %v6303_v33  ;;  %v4869_v12 = vld [vmem:[%s10828_s1 + $0x2c8] sm:$0xf]  ;;  %v6790_v13 = vld [vmem:[%s10828_s1 + $0x2d4] sm:$0xf0]  ;;  %v4742_v22 = vor.u32 %v6758_v11, %v4741_v7 }
 0x106   :  { %3597 = vmatpush.bf16.msrb.mxu0 %v6066_v19  ;;  %3611 = vmatpush.bf16.msrb.mxu1 %v6194_v20  ;;  %v6434_v59 = vor.u32 %v7179_v34, %v6431_v37  ;;  %v4997_v15 = vld [vmem:[%s10828_s1 + $0x3c8] sm:$0xf]  ;;  %v6822_v16 = vld [vmem:[%s10828_s1 + $0x3d4] sm:$0xf0]  ;;  %v9082_v19 = vpop.f32.mrf.mxu1  ;;  %v4870_v20 = vor.u32 %v6790_v13, %v4869_v12 }
 0x107   :  { %3625 = vmatpush.bf16.msrb.mxu2 %v6322_v23  ;;  %3639 = vmatpush.bf16.msrb.mxu3 %v6450_v30  ;;  %v4597_v23 = vld [vmem:[%s10828_s1 + $0xa8] sm:$0xf]  ;;  %v6722_v24 = vld [vmem:[%s10828_s1 + $0xb4] sm:$0xf0]  ;;  %v4998_v28 = vor.u32 %v6822_v16, %v4997_v15 }
 0x108   :  { %v4725_v27 = vld [vmem:[%s10828_s1 + $0x1a8] sm:$0xf]  ;;  %v6754_v30 = vld [vmem:[%s10828_s1 + $0x1b4] sm:$0xf0]  ;;  %v4598_v45 = vor.u32 %v6722_v24, %v4597_v23 }
 0x109   :  { %v4853_v33 = vld [vmem:[%s10828_s1 + $0x2a8] sm:$0xf]  ;;  %v6786_v34 = vld [vmem:[%s10828_s1 + $0x2b4] sm:$0xf0]  ;;  %v4726_v48 = vor.u32 %v6754_v30, %v4725_v27 }
 0x10a   :  { %3598 = vmatpush.bf16.msrb.mxu0 %v6050_v49  ;;  %3612 = vmatpush.bf16.msrb.mxu1 %v6178_v53  ;;  %v4981_v37 = vld [vmem:[%s10828_s1 + $0x3a8] sm:$0xf]  ;;  %v6818_v42 = vld [vmem:[%s10828_s1 + $0x3b4] sm:$0xf0]  ;;  %v4854_v49 = vor.u32 %v6786_v34, %v4853_v33  ;;  %v9121_v53 = vpop.f32.mrf.mxu2 }
 0x10b   :  { %3626 = vmatpush.bf16.msrb.mxu2 %v6306_v55  ;;  %3640 = vmatpush.bf16.msrb.mxu3 %v6434_v59  ;;  %v4581_v50 = vld [vmem:[%s10828_s1 + $0x88] sm:$0xf]  ;;  %v6718_v52 = vld [vmem:[%s10828_s1 + $0x94] sm:$0xf0]  ;;  %v4982_v55 = vor.u32 %v6818_v42, %v4981_v37 }
 0x10c   :  { %v4709_v9 = vld [vmem:[%s10828_s1 + $0x188] sm:$0xf]  ;;  %v6750_v56 = vld [vmem:[%s10828_s1 + $0x194] sm:$0xf0]  ;;  %v4582_v7 = vor.u32 %v6718_v52, %v4581_v50 }
 0x10d   :  { %3599 = vmatmul.bf16.vlgmr.msrb.gmra.mxu0 %v8241_v32  ;;  %3613 = vmatmul.bf16.vlgmr.msrb.gmra.mxu1 %v8254_v41  ;;  %v4837_v57 = vld [vmem:[%s10828_s1 + $0x288] sm:$0xf]  ;;  %v6782_v59 = vld [vmem:[%s10828_s1 + $0x294] sm:$0xf0]  ;;  %v4710_v11 = vor.u32 %v6750_v56, %v4709_v9 }
 0x10e   :  { %3647 = vmatpush.bf16.msra.mxu0 %v4630_v60  ;;  %3661 = vmatpush.bf16.msra.mxu1 %v4758_v61  ;;  %v9132_v60 = vpop.f32.mrf.mxu3  ;;  %v3376_v61 = vpop.f32.mrf.mxu0  ;;  %v6814_v4 = vld [vmem:[%s10828_s1 + $0x394] sm:$0xf0]  ;;  %v4838_v12 = vor.u32 %v6782_v59, %v4837_v57  ;;  %v4565_v13 = vld [vmem:[%s10828_s1 + $0x68] sm:$0xf] }
 0x10f   :  { %3675 = vmatpush.bf16.msra.mxu2 %v4886_v3  ;;  %3689 = vmatpush.bf16.msra.mxu3 %v5014_v8  ;;  %v4965_v3 = vld [vmem:[%s10828_s1 + $0x388] sm:$0xf]  ;;  %v3377_v5 = vadd.f32 %v3376_v61, %v8982_v2  ;;  %v3390_v8 = vpop.f32.mrf.mxu1  ;;  %v6714_v15 = vld [vmem:[%s10828_s1 + $0x74] sm:$0xf0] }
 0x110   :  { %3627 = vmatmul.bf16.vlgmr.msrb.gmra.mxu2 %v8252_v38  ;;  %3641 = vmatmul.bf16.vlgmr.msrb.gmra.mxu3 %v8262_v46  ;;  %v4693_v16 = vld [vmem:[%s10828_s1 + $0x168] sm:$0xf]  ;;  %v4966_v2 = vor.u32 %v6814_v4, %v4965_v3  ;;  %v6778_v23 = vld [vmem:[%s10828_s1 + $0x274] sm:$0xf0] }
 0x111   :  { %v4949_v24 = vld [vmem:[%s10828_s1 + $0x368] sm:$0xf]  ;;  %v6810_v27 = vld [vmem:[%s10828_s1 + $0x374] sm:$0xf0] }
 0x112   :  { %3648 = vmatpush.bf16.msra.mxu0 %v4614_v21  ;;  %3662 = vmatpush.bf16.msra.mxu1 %v4742_v22  ;;  %v3391_v21 = vadd.f32 %v3390_v8, %v3377_v5  ;;  %v6746_v22 = vld [vmem:[%s10828_s1 + $0x174] sm:$0xf0]  ;;  %v4549_v34 = vld [vmem:[%s10828_s1 + $0x48] sm:$0xf] }
 0x113   :  { %3676 = vmatpush.bf16.msra.mxu2 %v4870_v20  ;;  %3690 = vmatpush.bf16.msra.mxu3 %v4998_v28  ;;  %v4821_v20 = vld [vmem:[%s10828_s1 + $0x268] sm:$0xf]  ;;  %v4566_v28 = vor.u32 %v6714_v15, %v4565_v13  ;;  %v4694_v30 = vor.u32 %v6746_v22, %v4693_v16  ;;  %v6710_v37 = vld [vmem:[%s10828_s1 + $0x54] sm:$0xf0] }
 0x114   :  { %v4822_v33 = vor.u32 %v6778_v23, %v4821_v20  ;;  %v4677_v42 = vld [vmem:[%s10828_s1 + $0x148] sm:$0xf]  ;;  %v6774_v52 = vld [vmem:[%s10828_s1 + $0x254] sm:$0xf0]  ;;  %v4550_v59 = vor.u32 %v6710_v37, %v4549_v34 }
 0x115   :  { %v4805_v50 = vld [vmem:[%s10828_s1 + $0x248] sm:$0xf]  ;;  %v6806_v57 = vld [vmem:[%s10828_s1 + $0x354] sm:$0xf0] }
 0x116   :  { %3649 = vmatpush.bf16.msra.mxu0 %v4598_v45  ;;  %3663 = vmatpush.bf16.msra.mxu1 %v4726_v48  ;;  %v4950_v45 = vor.u32 %v6810_v27, %v4949_v24  ;;  %v3404_v48 = vpop.f32.mrf.mxu2  ;;  %v4933_v56 = vld [vmem:[%s10828_s1 + $0x348] sm:$0xf]  ;;  %v4806_v4 = vor.u32 %v6774_v52, %v4805_v50  ;;  %v6770_v15 = vld [vmem:[%s10828_s1 + $0x234] sm:$0xf0] }
 0x117   :  { %3677 = vmatpush.bf16.msra.mxu2 %v4854_v49  ;;  %3691 = vmatpush.bf16.msra.mxu3 %v4982_v55  ;;  %v6742_v49 = vld [vmem:[%s10828_s1 + $0x154] sm:$0xf0]  ;;  %v3405_v9 = vadd.f32 %v3404_v48, %v3391_v21  ;;  %v3418_v55 = vpop.f32.mrf.mxu3  ;;  %v4533_v5 = vld [vmem:[%s10828_s1 + $0x28] sm:$0xf] }
 0x118   :  { %v4678_v3 = vor.u32 %v6742_v49, %v4677_v42  ;;  %v4661_v8 = vld [vmem:[%s10828_s1 + $0x128] sm:$0xf]  ;;  %v6702_v20 = vld [vmem:[%s10828_s1 + $0x14] sm:$0xf0] }
 0x119   :  { %v9189_v61 = vadd.f32 %v3418_v55, %v3405_v9  ;;  %v4789_v13 = vld [vmem:[%s10828_s1 + $0x228] sm:$0xf]  ;;  %v6766_v34 = vld [vmem:[%s10828_s1 + $0x214] sm:$0xf0] }
 0x11a   :  { %3650 = vmatpush.bf16.msra.mxu0 %v4582_v7  ;;  %3664 = vmatpush.bf16.msra.mxu1 %v4710_v11  ;;  %v6706_v7 = vld [vmem:[%s10828_s1 + $0x34] sm:$0xf0]  ;;  %v4934_v11 = vor.u32 %v6806_v57, %v4933_v56  ;;  %v4917_v16 = vld [vmem:[%s10828_s1 + $0x328] sm:$0xf]  ;;  %v4790_v24 = vor.u32 %v6770_v15, %v4789_v13 }
 0x11b   :  { %3678 = vmatpush.bf16.msra.mxu2 %v4838_v12  ;;  %3692 = vmatpush.bf16.msra.mxu3 %v4966_v2  ;;  %v6738_v12 = vld [vmem:[%s10828_s1 + $0x134] sm:$0xf0]  ;;  %v4534_v21 = vor.u32 %v6706_v7, %v4533_v5  ;;  %v4517_v22 = vld [vmem:[%s10828_s1 + $0x8] sm:$0xf] }
 0x11c   :  { %v6802_v2 = vld [vmem:[%s10828_s1 + $0x334] sm:$0xf0]  ;;  %v4662_v23 = vor.u32 %v6738_v12, %v4661_v8  ;;  %v4645_v27 = vld [vmem:[%s10828_s1 + $0x108] sm:$0xf]  ;;  %v4518_v50 = vor.u32 %v6702_v20, %v4517_v22  ;;  %v9281_v22 = vpop.f32.mrf.mxu0 }
 0x11d   :  { %v4901_v37 = vld [vmem:[%s10828_s1 + $0x308] sm:$0xf]  ;;  %v6798_v42 = vld [vmem:[%s10828_s1 + $0x314] sm:$0xf0] }
 0x11e   :  { %3651 = vmatpush.bf16.msra.mxu0 %v4566_v28  ;;  %3665 = vmatpush.bf16.msra.mxu1 %v4694_v30  ;;  %v6734_v28 = vld [vmem:[%s10828_s1 + $0x114] sm:$0xf0]  ;;  %v4773_v30 = vld [vmem:[%s10828_s1 + $0x208] sm:$0xf] }
 0x11f   :  { %3679 = vmatpush.bf16.msra.mxu2 %v4822_v33  ;;  %3693 = vmatpush.bf16.msra.mxu3 %v4950_v45  ;;  %v4918_v33 = vor.u32 %v6802_v2, %v4917_v16  ;;  %v5141_v45 = vld [vmem:[%s10828_s1 + $0x4e8] sm:$0xf]  ;;  %v6858_v48 = vld [vmem:[%s10828_s1 + $0x4f4] sm:$0xf0]  ;;  %v4646_v56 = vor.u32 %v6734_v28, %v4645_v27  ;;  %v4774_v57 = vor.u32 %v6766_v34, %v4773_v30  ;;  %v9289_v27 = vpop.f32.mrf.mxu1 }
 0x120   :  { %v5269_v49 = vld [vmem:[%s10828_s1 + $0x5e8] sm:$0xf]  ;;  %v6890_v52 = vld [vmem:[%s10828_s1 + $0x5f4] sm:$0xf0]  ;;  %v5142_v5 = vor.u32 %v6858_v48, %v5141_v45 }
 0x121   :  { %v5397_v9 = vld [vmem:[%s10828_s1 + $0x6e8] sm:$0xf]  ;;  %v6922_v55 = vld [vmem:[%s10828_s1 + $0x6f4] sm:$0xf0]  ;;  %v5270_v7 = vor.u32 %v6890_v52, %v5269_v49 }
 0x122   :  { %3652 = vmatpush.bf16.msra.mxu0 %v4550_v59  ;;  %3666 = vmatpush.bf16.msra.mxu1 %v4678_v3  ;;  %v5525_v59 = vld [vmem:[%s10828_s1 + $0x7e8] sm:$0xf]  ;;  %v6954_v3 = vld [vmem:[%s10828_s1 + $0x7f4] sm:$0xf0]  ;;  %v5398_v8 = vor.u32 %v6922_v55, %v5397_v9  ;;  %v9322_v55 = vld [vmem:[%s10829_s2] sm:$0xf] }
 0x123   :  { %3680 = vmatpush.bf16.msra.mxu2 %v4806_v4  ;;  %3694 = vmatpush.bf16.msra.mxu3 %v4934_v11  ;;  %v4902_v4 = vor.u32 %v6798_v42, %v4901_v37  ;;  %v5125_v11 = vld [vmem:[%s10828_s1 + $0x4c8] sm:$0xf]  ;;  %v6854_v12 = vld [vmem:[%s10828_s1 + $0x4d4] sm:$0xf0]  ;;  %v5526_v15 = vor.u32 %v6954_v3, %v5525_v59 }
 0x124   :  { %v5253_v13 = vld [vmem:[%s10828_s1 + $0x5c8] sm:$0xf]  ;;  %v6886_v16 = vld [vmem:[%s10828_s1 + $0x5d4] sm:$0xf0] }
 0x125   :  { %v5381_v2 = vld [vmem:[%s10828_s1 + $0x6c8] sm:$0xf]  ;;  %v5254_v28 = vor.u32 %v6886_v16, %v5253_v13  ;;  %v6850_v34 = vld [vmem:[%s10828_s1 + $0x4b4] sm:$0xf0] }
 0x126   :  { %3653 = vmatpush.bf16.msra.mxu0 %v4534_v21  ;;  %3667 = vmatpush.bf16.msra.mxu1 %v4662_v23  ;;  %v6918_v21 = vld [vmem:[%s10828_s1 + $0x6d4] sm:$0xf0]  ;;  %v5509_v20 = vld [vmem:[%s10828_s1 + $0x7c8] sm:$0xf] }
 0x127   :  { %3681 = vmatpush.bf16.msra.mxu2 %v4790_v24  ;;  %3695 = vmatpush.bf16.msra.mxu3 %v4918_v33  ;;  %v6950_v23 = vld [vmem:[%s10828_s1 + $0x7d4] sm:$0xf0]  ;;  %v5126_v24 = vor.u32 %v6854_v12, %v5125_v11  ;;  %v5382_v30 = vor.u32 %v6918_v21, %v5381_v2  ;;  %v5109_v33 = vld [vmem:[%s10828_s1 + $0x4a8] sm:$0xf]  ;;  %v9351_v21 = vpop.f32.mrf.mxu3 }
 0x128   :  { %v5237_v37 = vld [vmem:[%s10828_s1 + $0x5a8] sm:$0xf]  ;;  %v5510_v42 = vor.u32 %v6950_v23, %v5509_v20  ;;  %v6882_v45 = vld [vmem:[%s10828_s1 + $0x5b4] sm:$0xf0]  ;;  %v5110_v9 = vor.u32 %v6850_v34, %v5109_v33 }
 0x129   :  { %v5365_v48 = vld [vmem:[%s10828_s1 + $0x6a8] sm:$0xf]  ;;  %v6914_v49 = vld [vmem:[%s10828_s1 + $0x6b4] sm:$0xf0] }
 0x12a   :  { %3654 = vmatpush.bf16.msra.mxu0 %v4518_v50  ;;  %3668 = vmatpush.bf16.msra.mxu1 %v4646_v56  ;;  %v5493_v50 = vld [vmem:[%s10828_s1 + $0x7a8] sm:$0xf]  ;;  %v6946_v52 = vld [vmem:[%s10828_s1 + $0x7b4] sm:$0xf0]  ;;  %v552_v56 = vperm.slane %v9322_v55, 1  ;;  %v5366_v59 = vor.u32 %v6914_v49, %v5365_v48  ;;  %v3432_v2 = vpop.f32.mrf.mxu0 }
 0x12b   :  { %3682 = vmatpush.bf16.msra.mxu2 %v4774_v57  ;;  %3696 = vmatpush.bf16.msra.mxu3 %v4902_v4  ;;  %v5238_v57 = vor.u32 %v6882_v45, %v5237_v37  ;;  %v5093_v3 = vld [vmem:[%s10828_s1 + $0x488] sm:$0xf]  ;;  %v6846_v4 = vld [vmem:[%s10828_s1 + $0x494] sm:$0xf0]  ;;  %v3446_v37 = vpop.f32.mrf.mxu1 }
 0x12c   :  { %v6878_v11 = vld [vmem:[%s10828_s1 + $0x594] sm:$0xf0]  ;;  %v5349_v12 = vld [vmem:[%s10828_s1 + $0x688] sm:$0xf]  ;;  %v5094_v20 = vor.u32 %v6846_v4, %v5093_v3  ;;  %v3433_v23 = vadd.f32 %v3432_v2, %v552_v56 }
 0x12d   :  { %3655 = vmatmul.bf16.vlgmr.msra.gmra.mxu0 %v7563_v58  ;;  %3669 = vmatmul.bf16.vlgmr.msra.gmra.mxu1 %v7599_v10  ;;  %v6910_v13 = vld [vmem:[%s10828_s1 + $0x694] sm:$0xf0]  ;;  %v5205_v34 = vld [vmem:[%s10828_s1 + $0x568] sm:$0xf] }
 0x12e   :  { %3703 = vmatpush.bf16.msrb.mxu0 %v5142_v5  ;;  %3717 = vmatpush.bf16.msrb.mxu1 %v5270_v7  ;;  %v5221_v5 = vld [vmem:[%s10828_s1 + $0x588] sm:$0xf]  ;;  %v9334_v7 = vpop.f32.mrf.mxu2  ;;  %v6942_v16 = vld [vmem:[%s10828_s1 + $0x794] sm:$0xf0] }
 0x12f   :  { %3731 = vmatpush.bf16.msrb.mxu2 %v5398_v8  ;;  %3745 = vmatpush.bf16.msrb.mxu3 %v5526_v15  ;;  %v5494_v8 = vor.u32 %v6946_v52, %v5493_v50  ;;  %v5477_v15 = vld [vmem:[%s10828_s1 + $0x788] sm:$0xf]  ;;  %v6842_v33 = vld [vmem:[%s10828_s1 + $0x474] sm:$0xf0]  ;;  %v3447_v50 = vadd.f32 %v3446_v37, %v3433_v23 }
 0x130   :  { %3683 = vmatmul.bf16.vlgmr.msra.gmra.mxu2 %v7577_v1  ;;  %3697 = vmatmul.bf16.vlgmr.msra.gmra.mxu3 %v7613_v17  ;;  %v6874_v45 = vld [vmem:[%s10828_s1 + $0x574] sm:$0xf0]  ;;  %v5333_v48 = vld [vmem:[%s10828_s1 + $0x668] sm:$0xf] }
 0x131   :  { %v6906_v49 = vld [vmem:[%s10828_s1 + $0x674] sm:$0xf0]  ;;  %v5461_v52 = vld [vmem:[%s10828_s1 + $0x768] sm:$0xf] }
 0x132   :  { %3704 = vmatpush.bf16.msrb.mxu0 %v5126_v24  ;;  %3718 = vmatpush.bf16.msrb.mxu1 %v5254_v28  ;;  %v5222_v24 = vor.u32 %v6878_v11, %v5221_v5  ;;  %v5350_v28 = vor.u32 %v6910_v13, %v5349_v12  ;;  %v5334_v3 = vor.u32 %v6906_v49, %v5333_v48  ;;  %v5061_v4 = vld [vmem:[%s10828_s1 + $0x448] sm:$0xf]  ;;  %v6838_v5 = vld [vmem:[%s10828_s1 + $0x454] sm:$0xf0] }
 0x133   :  { %3732 = vmatpush.bf16.msrb.mxu2 %v5382_v30  ;;  %3746 = vmatpush.bf16.msrb.mxu3 %v5510_v42  ;;  %v5077_v30 = vld [vmem:[%s10828_s1 + $0x468] sm:$0xf]  ;;  %v5478_v42 = vor.u32 %v6942_v16, %v5477_v15  ;;  %v6870_v12 = vld [vmem:[%s10828_s1 + $0x554] sm:$0xf0] }
 0x134   :  { %v5317_v13 = vld [vmem:[%s10828_s1 + $0x648] sm:$0xf]  ;;  %v6902_v15 = vld [vmem:[%s10828_s1 + $0x654] sm:$0xf0] }
 0x135   :  { %v5445_v2 = vld [vmem:[%s10828_s1 + $0x748] sm:$0xf]  ;;  %v6834_v37 = vld [vmem:[%s10828_s1 + $0x434] sm:$0xf0] }
 0x136   :  { %3705 = vmatpush.bf16.msrb.mxu0 %v5110_v9  ;;  %3719 = vmatpush.bf16.msrb.mxu1 %v5238_v57  ;;  %v6938_v9 = vld [vmem:[%s10828_s1 + $0x774] sm:$0xf0]  ;;  %v5078_v57 = vor.u32 %v6842_v33, %v5077_v30  ;;  %v3460_v16 = vpop.f32.mrf.mxu2  ;;  %v5318_v33 = vor.u32 %v6902_v15, %v5317_v13  ;;  %v5285_v13 = vld [vmem:[%s10828_s1 + $0x608] sm:$0xf] }
 0x137   :  { %3733 = vmatpush.bf16.msrb.mxu2 %v5366_v59  ;;  %3747 = vmatpush.bf16.msrb.mxu3 %v5494_v8  ;;  %v5206_v59 = vor.u32 %v6874_v45, %v5205_v34  ;;  %v5189_v8 = vld [vmem:[%s10828_s1 + $0x548] sm:$0xf]  ;;  %v5462_v11 = vor.u32 %v6938_v9, %v5461_v52  ;;  %v3461_v23 = vadd.f32 %v3460_v16, %v3447_v50  ;;  %v6866_v49 = vld [vmem:[%s10828_s1 + $0x534] sm:$0xf0] }
 0x138   :  { %v5190_v30 = vor.u32 %v6870_v12, %v5189_v8  ;;  %v5045_v34 = vld [vmem:[%s10828_s1 + $0x428] sm:$0xf]  ;;  %v6898_v52 = vld [vmem:[%s10828_s1 + $0x634] sm:$0xf0] }
 0x139   :  { %v5301_v50 = vld [vmem:[%s10828_s1 + $0x628] sm:$0xf]  ;;  %v6862_v12 = vld [vmem:[%s10828_s1 + $0x514] sm:$0xf0] }
 0x13a   :  { %3706 = vmatpush.bf16.msrb.mxu0 %v5094_v20  ;;  %3720 = vmatpush.bf16.msrb.mxu1 %v5222_v24  ;;  %v6934_v20 = vld [vmem:[%s10828_s1 + $0x754] sm:$0xf0]  ;;  %v5062_v24 = vor.u32 %v6838_v5, %v5061_v4  ;;  %v5429_v9 = vld [vmem:[%s10828_s1 + $0x728] sm:$0xf]  ;;  %v5302_v8 = vor.u32 %v6898_v52, %v5301_v50 }
 0x13b   :  { %3734 = vmatpush.bf16.msrb.mxu2 %v5350_v28  ;;  %3748 = vmatpush.bf16.msrb.mxu3 %v5478_v42  ;;  %v3474_v28 = vpop.f32.mrf.mxu3  ;;  %v5173_v42 = vld [vmem:[%s10828_s1 + $0x528] sm:$0xf]  ;;  %v5446_v48 = vor.u32 %v6934_v20, %v5445_v2  ;;  %v6830_v4 = vld [vmem:[%s10828_s1 + $0x414] sm:$0xf0] }
 0x13c   :  { %v9412_v45 = vadd.f32 %v3474_v28, %v3461_v23  ;;  %v5174_v5 = vor.u32 %v6866_v49, %v5173_v42  ;;  %v6894_v16 = vld [vmem:[%s10828_s1 + $0x614] sm:$0xf0]  ;;  %v5413_v2 = vld [vmem:[%s10828_s1 + $0x708] sm:$0xf] }
 0x13d   :  { %v6926_v20 = vld [vmem:[%s10828_s1 + $0x714] sm:$0xf0]  ;;  %v5653_v23 = vld [vmem:[%s10828_s1 + $0x8e8] sm:$0xf] }
 0x13e   :  { %3707 = vmatpush.bf16.msrb.mxu0 %v5078_v57  ;;  %3721 = vmatpush.bf16.msrb.mxu1 %v5206_v59  ;;  %v6930_v57 = vld [vmem:[%s10828_s1 + $0x734] sm:$0xf0]  ;;  %v5046_v59 = vor.u32 %v6834_v37, %v5045_v34  ;;  %v5781_v28 = vld [vmem:[%s10828_s1 + $0x9e8] sm:$0xf]  ;;  %v5414_v52 = vor.u32 %v6926_v20, %v5413_v2 }
 0x13f   :  { %3735 = vmatpush.bf16.msrb.mxu2 %v5334_v3  ;;  %3749 = vmatpush.bf16.msrb.mxu3 %v5462_v11  ;;  %v5029_v3 = vld [vmem:[%s10828_s1 + $0x408] sm:$0xf]  ;;  %v5430_v15 = vor.u32 %v6930_v57, %v5429_v9  ;;  %v7050_v37 = vld [vmem:[%s10828_s1 + $0xaf4] sm:$0xf0] }
 0x140   :  { %v5157_v11 = vld [vmem:[%s10828_s1 + $0x508] sm:$0xf]  ;;  %v7082_v50 = vld [vmem:[%s10828_s1 + $0xbf4] sm:$0xf0] }
 0x141   :  { %v5909_v34 = vld [vmem:[%s10828_s1 + $0xae8] sm:$0xf]  ;;  %v5158_v42 = vor.u32 %v6862_v12, %v5157_v11  ;;  %v7014_v12 = vld [vmem:[%s10828_s1 + $0x9d4] sm:$0xf0] }
 0x142   :  { %3708 = vmatpush.bf16.msrb.mxu0 %v5062_v24  ;;  %3722 = vmatpush.bf16.msrb.mxu1 %v5190_v30  ;;  %v6986_v24 = vld [vmem:[%s10828_s1 + $0x8f4] sm:$0xf0]  ;;  %v5030_v30 = vor.u32 %v6830_v4, %v5029_v3  ;;  %v6037_v49 = vld [vmem:[%s10828_s1 + $0xbe8] sm:$0xf]  ;;  %v3434_v3 = vpop.f32.mrf.mxu0 }
 0x143   :  { %3736 = vmatpush.bf16.msrb.mxu2 %v5318_v33  ;;  %3750 = vmatpush.bf16.msrb.mxu3 %v5446_v48  ;;  %v7018_v33 = vld [vmem:[%s10828_s1 + $0x9f4] sm:$0xf0]  ;;  %v5286_v48 = vor.u32 %v6894_v16, %v5285_v13  ;;  %v5654_v9 = vor.u32 %v6986_v24, %v5653_v23  ;;  %v5637_v4 = vld [vmem:[%s10828_s1 + $0x8c8] sm:$0xf]  ;;  %v6038_v11 = vor.u32 %v7082_v50, %v6037_v49  ;;  %v3448_v16 = vpop.f32.mrf.mxu1 }
 0x144   :  { %v5782_v57 = vor.u32 %v7018_v33, %v5781_v28  ;;  %v5893_v13 = vld [vmem:[%s10828_s1 + $0xac8] sm:$0xf]  ;;  %v7078_v20 = vld [vmem:[%s10828_s1 + $0xbd4] sm:$0xf0]  ;;  %v3435_v23 = vadd.f32 %v3434_v3, %v552_v56 }
 0x145   :  { %v6021_v2 = vld [vmem:[%s10828_s1 + $0xbc8] sm:$0xf]  ;;  %v7010_v56 = vld [vmem:[%s10828_s1 + $0x9b4] sm:$0xf0] }
 0x146   :  { %3709 = vmatpush.bf16.msrb.mxu0 %v5046_v59  ;;  %3723 = vmatpush.bf16.msrb.mxu1 %v5174_v5  ;;  %v5910_v59 = vor.u32 %v7050_v37, %v5909_v34  ;;  %v6982_v5 = vld [vmem:[%s10828_s1 + $0x8d4] sm:$0xf0]  ;;  %v5621_v33 = vld [vmem:[%s10828_s1 + $0x8a8] sm:$0xf]  ;;  %v6022_v55 = vor.u32 %v7078_v20, %v6021_v2 }
 0x147   :  { %3737 = vmatpush.bf16.msrb.mxu2 %v5302_v8  ;;  %3751 = vmatpush.bf16.msrb.mxu3 %v5430_v15  ;;  %v5765_v8 = vld [vmem:[%s10828_s1 + $0x9c8] sm:$0xf]  ;;  %v7046_v15 = vld [vmem:[%s10828_s1 + $0xad4] sm:$0xf0]  ;;  %v5638_v24 = vor.u32 %v6982_v5, %v5637_v4  ;;  %v3476_v4 = vpop.f32.mrf.mxu3 }
 0x148   :  { %v5766_v28 = vor.u32 %v7014_v12, %v5765_v8  ;;  %v6978_v34 = vld [vmem:[%s10828_s1 + $0x8b4] sm:$0xf0]  ;;  %v5749_v37 = vld [vmem:[%s10828_s1 + $0x9a8] sm:$0xf] }
 0x149   :  { %v6005_v49 = vld [vmem:[%s10828_s1 + $0xba8] sm:$0xf]  ;;  %v7074_v50 = vld [vmem:[%s10828_s1 + $0xbb4] sm:$0xf0] }
 0x14a   :  { %3710 = vmatpush.bf16.msrb.mxu0 %v5030_v30  ;;  %3724 = vmatpush.bf16.msrb.mxu1 %v5158_v42  ;;  %v5894_v30 = vor.u32 %v7046_v15, %v5893_v13  ;;  %v5877_v42 = vld [vmem:[%s10828_s1 + $0xaa8] sm:$0xf]  ;;  %v6974_v8 = vld [vmem:[%s10828_s1 + $0x894] sm:$0xf0]  ;;  %v6006_v12 = vor.u32 %v7074_v50, %v6005_v49  ;;  %v3488_v2 = vpop.f32.mrf.mxu0 }
 0x14b   :  { %3738 = vmatpush.bf16.msrb.mxu2 %v5286_v48  ;;  %3752 = vmatpush.bf16.msrb.mxu3 %v5414_v52  ;;  %v7042_v48 = vld [vmem:[%s10828_s1 + $0xab4] sm:$0xf0]  ;;  %v3449_v52 = vadd.f32 %v3448_v16, %v3435_v23  ;;  %v5605_v5 = vld [vmem:[%s10828_s1 + $0x888] sm:$0xf] }
 0x14c   :  { %v5878_v3 = vor.u32 %v7042_v48, %v5877_v42  ;;  %v7006_v13 = vld [vmem:[%s10828_s1 + $0x994] sm:$0xf0]  ;;  %v5861_v15 = vld [vmem:[%s10828_s1 + $0xa88] sm:$0xf] }
 0x14d   :  { %3711 = vmatmul.bf16.vlgmr.msrb.gmra.mxu0 %v7785_v39  ;;  %3725 = vmatmul.bf16.vlgmr.msrb.gmra.mxu1 %v7798_v44  ;;  %v7038_v16 = vld [vmem:[%s10828_s1 + $0xa94] sm:$0xf0]  ;;  %v5989_v20 = vld [vmem:[%s10828_s1 + $0xb88] sm:$0xf] }
 0x14e   :  { %3759 = vmatpush.bf16.msra.mxu0 %v5654_v9  ;;  %3773 = vmatpush.bf16.msra.mxu1 %v5782_v57  ;;  %v5622_v9 = vor.u32 %v6978_v34, %v5621_v33  ;;  %v3462_v57 = vpop.f32.mrf.mxu2  ;;  %v7070_v23 = vld [vmem:[%s10828_s1 + $0xb94] sm:$0xf0]  ;;  %v3502_v33 = vpop.f32.mrf.mxu1  ;;  %v5717_v42 = vld [vmem:[%s10828_s1 + $0x968] sm:$0xf] }
 0x14f   :  { %3787 = vmatpush.bf16.msra.mxu2 %v5910_v59  ;;  %3801 = vmatpush.bf16.msra.mxu3 %v6038_v11  ;;  %v5750_v59 = vor.u32 %v7010_v56, %v5749_v37  ;;  %v5733_v11 = vld [vmem:[%s10828_s1 + $0x988] sm:$0xf]  ;;  %v5862_v37 = vor.u32 %v7038_v16, %v5861_v15  ;;  %v6970_v56 = vld [vmem:[%s10828_s1 + $0x874] sm:$0xf0] }
 0x150   :  { %3739 = vmatmul.bf16.vlgmr.msrb.gmra.mxu2 %v7796_v43  ;;  %3753 = vmatmul.bf16.vlgmr.msrb.gmra.mxu3 %v7806_v47  ;;  %v5734_v34 = vor.u32 %v7006_v13, %v5733_v11  ;;  %v7002_v49 = vld [vmem:[%s10828_s1 + $0x974] sm:$0xf0]  ;;  %v5845_v50 = vld [vmem:[%s10828_s1 + $0xa68] sm:$0xf] }
 0x151   :  { %v5573_v11 = vld [vmem:[%s10828_s1 + $0x848] sm:$0xf]  ;;  %v6998_v16 = vld [vmem:[%s10828_s1 + $0x954] sm:$0xf0] }
 0x152   :  { %3760 = vmatpush.bf16.msra.mxu0 %v5638_v24  ;;  %3774 = vmatpush.bf16.msra.mxu1 %v5766_v28  ;;  %v3463_v24 = vadd.f32 %v3462_v57, %v3449_v52  ;;  %v3489_v28 = vadd.f32 %v3488_v2, %v9412_v45  ;;  %v5990_v45 = vor.u32 %v7070_v23, %v5989_v20  ;;  %v7034_v52 = vld [vmem:[%s10828_s1 + $0xa74] sm:$0xf0]  ;;  %v5701_v13 = vld [vmem:[%s10828_s1 + $0x948] sm:$0xf] }
 0x153   :  { %3788 = vmatpush.bf16.msra.mxu2 %v5894_v30  ;;  %3802 = vmatpush.bf16.msra.mxu3 %v6022_v55  ;;  %v5606_v30 = vor.u32 %v6974_v8, %v5605_v5  ;;  %v5589_v55 = vld [vmem:[%s10828_s1 + $0x868] sm:$0xf]  ;;  %v7066_v57 = vld [vmem:[%s10828_s1 + $0xb74] sm:$0xf0]  ;;  %v5718_v5 = vor.u32 %v7002_v49, %v5717_v42  ;;  %v5846_v8 = vor.u32 %v7034_v52, %v5845_v50 }
 0x154   :  { %v3503_v48 = vadd.f32 %v3502_v33, %v3489_v28  ;;  %v5829_v2 = vld [vmem:[%s10828_s1 + $0xa48] sm:$0xf]  ;;  %v7030_v20 = vld [vmem:[%s10828_s1 + $0xa54] sm:$0xf0]  ;;  %v3530_v28 = vpop.f32.mrf.mxu3  ;;  %v5702_v42 = vor.u32 %v6998_v16, %v5701_v13 }
 0x155   :  { %v7062_v33 = vld [vmem:[%s10828_s1 + $0xb54] sm:$0xf0]  ;;  %v5685_v50 = vld [vmem:[%s10828_s1 + $0x928] sm:$0xf] }
 0x156   :  { %3761 = vmatpush.bf16.msra.mxu0 %v5622_v9  ;;  %3775 = vmatpush.bf16.msra.mxu1 %v5750_v59  ;;  %v5973_v9 = vld [vmem:[%s10828_s1 + $0xb68] sm:$0xf]  ;;  %v3477_v59 = vadd.f32 %v3476_v4, %v3463_v24  ;;  %v3516_v15 = vpop.f32.mrf.mxu2  ;;  %v3490_v24 = vpop.f32.mrf.mxu0  ;;  %v6962_v49 = vld [vmem:[%s10828_s1 + $0x834] sm:$0xf0] }
 0x157   :  { %3789 = vmatpush.bf16.msra.mxu2 %v5878_v3  ;;  %3803 = vmatpush.bf16.msra.mxu3 %v6006_v12  ;;  %v5590_v3 = vor.u32 %v6970_v56, %v5589_v55  ;;  %v6966_v12 = vld [vmem:[%s10828_s1 + $0x854] sm:$0xf0]  ;;  %v5974_v4 = vor.u32 %v7066_v57, %v5973_v9  ;;  %v3517_v23 = vadd.f32 %v3516_v15, %v3503_v48  ;;  %v3504_v55 = vpop.f32.mrf.mxu1  ;;  %v5557_v48 = vld [vmem:[%s10828_s1 + $0x828] sm:$0xf] }
 0x158   :  { %v6994_v57 = vld [vmem:[%s10828_s1 + $0x934] sm:$0xf0]  ;;  %v5669_v16 = vld [vmem:[%s10828_s1 + $0x908] sm:$0xf] }
 0x159   :  { %v9604_v56 = vadd.f32 %v3530_v28, %v3517_v23  ;;  %v6958_v13 = vld [vmem:[%s10828_s1 + $0x814] sm:$0xf0] }
 0x15a   :  { %3762 = vmatpush.bf16.msra.mxu0 %v5606_v30  ;;  %3776 = vmatpush.bf16.msra.mxu1 %v5734_v34  ;;  %v5957_v30 = vld [vmem:[%s10828_s1 + $0xb48] sm:$0xf]  ;;  %v3491_v34 = vadd.f32 %v3490_v24, %v3477_v59  ;;  %v7022_v28 = vld [vmem:[%s10828_s1 + $0xa14] sm:$0xf0] }
 0x15b   :  { %3790 = vmatpush.bf16.msra.mxu2 %v5862_v37  ;;  %3804 = vmatpush.bf16.msra.mxu3 %v5990_v45  ;;  %v5574_v37 = vor.u32 %v6966_v12, %v5573_v11  ;;  %v5830_v45 = vor.u32 %v7030_v20, %v5829_v2  ;;  %v5958_v52 = vor.u32 %v7062_v33, %v5957_v30  ;;  %v5813_v59 = vld [vmem:[%s10828_s1 + $0xa28] sm:$0xf]  ;;  %v6990_v2 = vld [vmem:[%s10828_s1 + $0x914] sm:$0xf0] }
 0x15c   :  { %v3505_v9 = vadd.f32 %v3504_v55, %v3491_v34  ;;  %v5558_v11 = vor.u32 %v6962_v49, %v5557_v48  ;;  %v5541_v12 = vld [vmem:[%s10828_s1 + $0x808] sm:$0xf]  ;;  %v7054_v33 = vld [vmem:[%s10828_s1 + $0xb14] sm:$0xf0] }
 0x15d   :  { %v5797_v20 = vld [vmem:[%s10828_s1 + $0xa08] sm:$0xf]  ;;  %v5542_v48 = vor.u32 %v6958_v13, %v5541_v12  ;;  %v7146_v49 = vld [vmem:[%s10828_s1 + $0xdf4] sm:$0xf0] }
 0x15e   :  { %3763 = vmatpush.bf16.msra.mxu0 %v5590_v3  ;;  %3777 = vmatpush.bf16.msra.mxu1 %v5718_v5  ;;  %v7026_v3 = vld [vmem:[%s10828_s1 + $0xa34] sm:$0xf0]  ;;  %v5941_v5 = vld [vmem:[%s10828_s1 + $0xb28] sm:$0xf]  ;;  %v3518_v24 = vpop.f32.mrf.mxu2 }
 0x15f   :  { %3791 = vmatpush.bf16.msra.mxu2 %v5846_v8  ;;  %3805 = vmatpush.bf16.msra.mxu3 %v5974_v4  ;;  %v7058_v8 = vld [vmem:[%s10828_s1 + $0xb34] sm:$0xf0]  ;;  %v5686_v4 = vor.u32 %v6994_v57, %v5685_v50  ;;  %v5814_v15 = vor.u32 %v7026_v3, %v5813_v59  ;;  %v5925_v30 = vld [vmem:[%s10828_s1 + $0xb08] sm:$0xf]  ;;  %v3519_v34 = vadd.f32 %v3518_v24, %v3505_v9 }
 0x160   :  { %v5942_v23 = vor.u32 %v7058_v8, %v5941_v5  ;;  %v6165_v55 = vld [vmem:[%s10828_s1 + $0xce8] sm:$0xf]  ;;  %v5670_v57 = vor.u32 %v6990_v2, %v5669_v16  ;;  %v5798_v59 = vor.u32 %v7022_v28, %v5797_v20  ;;  %v7210_v5 = vld [vmem:[%s10828_s1 + $0xff4] sm:$0xf0]  ;;  %v5926_v8 = vor.u32 %v7054_v33, %v5925_v30 }
 0x161   :  { %v6421_v50 = vld [vmem:[%s10828_s1 + $0xee8] sm:$0xf]  ;;  %v7142_v20 = vld [vmem:[%s10828_s1 + $0xdd4] sm:$0xf0] }
 0x162   :  { %3764 = vmatpush.bf16.msra.mxu0 %v5574_v37  ;;  %3778 = vmatpush.bf16.msra.mxu1 %v5702_v42  ;;  %v3532_v37 = vpop.f32.mrf.mxu3  ;;  %v7114_v42 = vld [vmem:[%s10828_s1 + $0xcf4] sm:$0xf0]  ;;  %v6549_v3 = vld [vmem:[%s10828_s1 + $0xfe8] sm:$0xf] }
 0x163   :  { %3792 = vmatpush.bf16.msra.mxu2 %v5830_v45  ;;  %3806 = vmatpush.bf16.msra.mxu3 %v5958_v52  ;;  %v6293_v45 = vld [vmem:[%s10828_s1 + $0xde8] sm:$0xf]  ;;  %v7178_v52 = vld [vmem:[%s10828_s1 + $0xef4] sm:$0xf0]  ;;  %v9672_v9 = vadd.f32 %v3532_v37, %v3519_v34  ;;  %v6550_v2 = vor.u32 %v7210_v5, %v6549_v3 }
 0x164   :  { %v6294_v12 = vor.u32 %v7146_v49, %v6293_v45  ;;  %v6422_v13 = vor.u32 %v7178_v52, %v6421_v50  ;;  %v6277_v16 = vld [vmem:[%s10828_s1 + $0xdc8] sm:$0xf]  ;;  %v7174_v24 = vld [vmem:[%s10828_s1 + $0xed4] sm:$0xf0] }
 0x165   :  { %v6533_v28 = vld [vmem:[%s10828_s1 + $0xfc8] sm:$0xf]  ;;  %v7206_v30 = vld [vmem:[%s10828_s1 + $0xfd4] sm:$0xf0]  ;;  %v6278_v34 = vor.u32 %v7142_v20, %v6277_v16 }
 0x166   :  { %3765 = vmatpush.bf16.msra.mxu0 %v5558_v11  ;;  %3779 = vmatpush.bf16.msra.mxu1 %v5686_v4  ;;  %v6166_v11 = vor.u32 %v7114_v42, %v6165_v55  ;;  %v6149_v4 = vld [vmem:[%s10828_s1 + $0xcc8] sm:$0xf]  ;;  %v7106_v42 = vld [vmem:[%s10828_s1 + $0xcb4] sm:$0xf0] }
 0x167   :  { %3793 = vmatpush.bf16.msra.mxu2 %v5814_v15  ;;  %3807 = vmatpush.bf16.msra.mxu3 %v5942_v23  ;;  %v7110_v15 = vld [vmem:[%s10828_s1 + $0xcd4] sm:$0xf0]  ;;  %v6405_v23 = vld [vmem:[%s10828_s1 + $0xec8] sm:$0xf] }
 0x168   :  { %v6150_v33 = vor.u32 %v7110_v15, %v6149_v4  ;;  %v6406_v37 = vor.u32 %v7174_v24, %v6405_v23  ;;  %v6133_v55 = vld [vmem:[%s10828_s1 + $0xca8] sm:$0xf]  ;;  %v7138_v49 = vld [vmem:[%s10828_s1 + $0xdb4] sm:$0xf0] }
 0x169   :  { %v6261_v45 = vld [vmem:[%s10828_s1 + $0xda8] sm:$0xf]  ;;  %v7170_v52 = vld [vmem:[%s10828_s1 + $0xeb4] sm:$0xf0]  ;;  %v6134_v3 = vor.u32 %v7106_v42, %v6133_v55 }
 0x16a   :  { %3766 = vmatpush.bf16.msra.mxu0 %v5542_v48  ;;  %3780 = vmatpush.bf16.msra.mxu1 %v5670_v57  ;;  %v6534_v48 = vor.u32 %v7206_v30, %v6533_v28  ;;  %v6389_v50 = vld [vmem:[%s10828_s1 + $0xea8] sm:$0xf]  ;;  %v6262_v5 = vor.u32 %v7138_v49, %v6261_v45  ;;  %v7134_v15 = vld [vmem:[%s10828_s1 + $0xd94] sm:$0xf0]  ;;  %v3544_v20 = vpop.f32.mrf.mxu0 }
 0x16b   :  { %3794 = vmatpush.bf16.msra.mxu2 %v5798_v59  ;;  %3808 = vmatpush.bf16.msra.mxu3 %v5926_v8  ;;  %v6517_v57 = vld [vmem:[%s10828_s1 + $0xfa8] sm:$0xf]  ;;  %v7202_v59 = vld [vmem:[%s10828_s1 + $0xfb4] sm:$0xf0]  ;;  %v6390_v8 = vor.u32 %v7170_v52, %v6389_v50  ;;  %v3545_v28 = vadd.f32 %v3544_v20, %v9604_v56 }
 0x16c   :  { %v6518_v4 = vor.u32 %v7202_v59, %v6517_v57  ;;  %v6373_v16 = vld [vmem:[%s10828_s1 + $0xe88] sm:$0xf]  ;;  %v7198_v24 = vld [vmem:[%s10828_s1 + $0xf94] sm:$0xf0] }
 0x16d   :  { %3767 = vmatmul.bf16.vlgmr.msra.gmra.mxu0 %v8013_v31  ;;  %3781 = vmatmul.bf16.vlgmr.msra.gmra.mxu1 %v8026_v36  ;;  %v6501_v23 = vld [vmem:[%s10828_s1 + $0xf88] sm:$0xf]  ;;  %v7098_v42 = vld [vmem:[%s10828_s1 + $0xc74] sm:$0xf0] }
 0x16e   :  { %3815 = vmatpush.bf16.msrb.mxu0 %v6166_v11  ;;  %3829 = vmatpush.bf16.msrb.mxu1 %v6294_v12  ;;  %v6117_v11 = vld [vmem:[%s10828_s1 + $0xc88] sm:$0xf]  ;;  %v7102_v12 = vld [vmem:[%s10828_s1 + $0xc94] sm:$0xf0]  ;;  %v6502_v56 = vor.u32 %v7198_v24, %v6501_v23 }
 0x16f   :  { %3843 = vmatpush.bf16.msrb.mxu2 %v6422_v13  ;;  %3857 = vmatpush.bf16.msrb.mxu3 %v6550_v2  ;;  %v6245_v13 = vld [vmem:[%s10828_s1 + $0xd88] sm:$0xf]  ;;  %v7166_v2 = vld [vmem:[%s10828_s1 + $0xe94] sm:$0xf0]  ;;  %v6118_v30 = vor.u32 %v7102_v12, %v6117_v11 }
 0x170   :  { %3795 = vmatmul.bf16.vlgmr.msra.gmra.mxu2 %v8024_v35  ;;  %3809 = vmatmul.bf16.vlgmr.msra.gmra.mxu3 %v8034_v40  ;;  %v6101_v55 = vld [vmem:[%s10828_s1 + $0xc68] sm:$0xf]  ;;  %v7130_v49 = vld [vmem:[%s10828_s1 + $0xd74] sm:$0xf0] }
 0x171   :  { %v6229_v45 = vld [vmem:[%s10828_s1 + $0xd68] sm:$0xf]  ;;  %v7162_v52 = vld [vmem:[%s10828_s1 + $0xe74] sm:$0xf0] }
 0x172   :  { %3816 = vmatpush.bf16.msrb.mxu0 %v6150_v33  ;;  %3830 = vmatpush.bf16.msrb.mxu1 %v6278_v34  ;;  %v3558_v33 = vpop.f32.mrf.mxu1  ;;  %v6246_v34 = vor.u32 %v7134_v15, %v6245_v13  ;;  %v6357_v50 = vld [vmem:[%s10828_s1 + $0xe68] sm:$0xf]  ;;  %v7194_v59 = vld [vmem:[%s10828_s1 + $0xf74] sm:$0xf0]  ;;  %v3546_v24 = vpop.f32.mrf.mxu0 }
 0x173   :  { %3844 = vmatpush.bf16.msrb.mxu2 %v6406_v37  ;;  %3858 = vmatpush.bf16.msrb.mxu3 %v6534_v48  ;;  %v6374_v37 = vor.u32 %v7166_v2, %v6373_v16  ;;  %v3559_v48 = vadd.f32 %v3558_v33, %v3545_v28  ;;  %v6485_v57 = vld [vmem:[%s10828_s1 + $0xf68] sm:$0xf]  ;;  %v7094_v12 = vld [vmem:[%s10828_s1 + $0xc54] sm:$0xf0]  ;;  %v3572_v15 = vpop.f32.mrf.mxu2  ;;  %v3586_v28 = vpop.f32.mrf.mxu3 }
 0x174   :  { %v6085_v11 = vld [vmem:[%s10828_s1 + $0xc48] sm:$0xf]  ;;  %v7126_v16 = vld [vmem:[%s10828_s1 + $0xd54] sm:$0xf0] }
 0x175   :  { %v6213_v13 = vld [vmem:[%s10828_s1 + $0xd48] sm:$0xf]  ;;  %v7158_v20 = vld [vmem:[%s10828_s1 + $0xe54] sm:$0xf0]  ;;  %v3573_v23 = vadd.f32 %v3572_v15, %v3559_v48 }
 0x176   :  { %3817 = vmatpush.bf16.msrb.mxu0 %v6134_v3  ;;  %3831 = vmatpush.bf16.msrb.mxu1 %v6262_v5  ;;  %v6102_v3 = vor.u32 %v7098_v42, %v6101_v55  ;;  %v6230_v5 = vor.u32 %v7130_v49, %v6229_v45  ;;  %v6341_v2 = vld [vmem:[%s10828_s1 + $0xe48] sm:$0xf]  ;;  %v7190_v33 = vld [vmem:[%s10828_s1 + $0xf54] sm:$0xf0]  ;;  %v6214_v45 = vor.u32 %v7126_v16, %v6213_v13 }
 0x177   :  { %3845 = vmatpush.bf16.msrb.mxu2 %v6390_v8  ;;  %3859 = vmatpush.bf16.msrb.mxu3 %v6518_v4  ;;  %v6358_v8 = vor.u32 %v7162_v52, %v6357_v50  ;;  %v6486_v4 = vor.u32 %v7194_v59, %v6485_v57  ;;  %v9806_v42 = vadd.f32 %v3586_v28, %v3573_v23  ;;  %v6069_v48 = vld [vmem:[%s10828_s1 + $0xc28] sm:$0xf]  ;;  %v7090_v49 = vld [vmem:[%s10828_s1 + $0xc34] sm:$0xf0] }
 0x178   :  { %v7122_v57 = vld [vmem:[%s10828_s1 + $0xd34] sm:$0xf0]  ;;  %v6325_v59 = vld [vmem:[%s10828_s1 + $0xe28] sm:$0xf] }
 0x179   :  { %v7086_v13 = vld [vmem:[%s10828_s1 + $0xc14] sm:$0xf0]  ;;  %v6181_v16 = vld [vmem:[%s10828_s1 + $0xd08] sm:$0xf] }
 0x17a   :  { %3818 = vmatpush.bf16.msrb.mxu0 %v6118_v30  ;;  %3832 = vmatpush.bf16.msrb.mxu1 %v6246_v34  ;;  %v6469_v30 = vld [vmem:[%s10828_s1 + $0xf48] sm:$0xf]  ;;  %v3547_v34 = vadd.f32 %v3546_v24, %v9672_v9  ;;  %v3560_v55 = vpop.f32.mrf.mxu1  ;;  %v7150_v28 = vld [vmem:[%s10828_s1 + $0xe14] sm:$0xf0] }
 0x17b   :  { %3846 = vmatpush.bf16.msrb.mxu2 %v6374_v37  ;;  %3860 = vmatpush.bf16.msrb.mxu3 %v6502_v56  ;;  %v6086_v37 = vor.u32 %v7094_v12, %v6085_v11  ;;  %v6342_v56 = vor.u32 %v7158_v20, %v6341_v2  ;;  %v6197_v9 = vld [vmem:[%s10828_s1 + $0xd28] sm:$0xf]  ;;  %v6470_v50 = vor.u32 %v7190_v33, %v6469_v30  ;;  %v7118_v2 = vld [vmem:[%s10828_s1 + $0xd14] sm:$0xf0]  ;;  %v3574_v24 = vpop.f32.mrf.mxu2 }
 0x17c   :  { %v3561_v52 = vadd.f32 %v3560_v55, %v3547_v34  ;;  %v6070_v11 = vor.u32 %v7090_v49, %v6069_v48  ;;  %v6053_v12 = vld [vmem:[%s10828_s1 + $0xc08] sm:$0xf]  ;;  %v7182_v33 = vld [vmem:[%s10828_s1 + $0xf14] sm:$0xf0]  ;;  %v6728_v55 = vld [vmem:[%s10828_s1 + $0xec] sm:$0xf] }
 0x17d   :  { %v6309_v20 = vld [vmem:[%s10828_s1 + $0xe08] sm:$0xf]  ;;  %v6054_v48 = vor.u32 %v7086_v13, %v6053_v12  ;;  %v4759_v49 = vld [vmem:[%s10828_s1 + $0x1f8] sm:$0xf0] }
 0x17e   :  { %3819 = vmatpush.bf16.msrb.mxu0 %v6102_v3  ;;  %3833 = vmatpush.bf16.msrb.mxu1 %v6230_v5  ;;  %v7154_v3 = vld [vmem:[%s10828_s1 + $0xe34] sm:$0xf0]  ;;  %v6453_v5 = vld [vmem:[%s10828_s1 + $0xf28] sm:$0xf]  ;;  %v3575_v34 = vadd.f32 %v3574_v24, %v3561_v52  ;;  %v4871_v24 = vld [vmem:[%s10828_s1 + $0x2d8] sm:$0xf0] }
 0x17f   :  { %3847 = vmatpush.bf16.msrb.mxu2 %v6358_v8  ;;  %3861 = vmatpush.bf16.msrb.mxu3 %v6486_v4  ;;  %v7186_v8 = vld [vmem:[%s10828_s1 + $0xf34] sm:$0xf0]  ;;  %v6198_v4 = vor.u32 %v7122_v57, %v6197_v9  ;;  %v6326_v15 = vor.u32 %v7154_v3, %v6325_v59  ;;  %v6437_v30 = vld [vmem:[%s10828_s1 + $0xf08] sm:$0xf]  ;;  %v6792_v9 = vld [vmem:[%s10828_s1 + $0x2ec] sm:$0xf]  ;;  %v6182_v57 = vor.u32 %v7118_v2, %v6181_v16 }
 0x180   :  { %v6454_v23 = vor.u32 %v7186_v8, %v6453_v5  ;;  %v6310_v59 = vor.u32 %v7150_v28, %v6309_v20  ;;  %v6824_v3 = vld [vmem:[%s10828_s1 + $0x3ec] sm:$0xf]  ;;  %v5015_v5 = vld [vmem:[%s10828_s1 + $0x3f8] sm:$0xf0]  ;;  %v6438_v8 = vor.u32 %v7182_v33, %v6437_v30 }
 0x181   :  { %v6756_v16 = vld [vmem:[%s10828_s1 + $0x1cc] sm:$0xf]  ;;  %v5018_v2 = vor.u32 %v6824_v3, %v5015_v5  ;;  %v4743_v20 = vld [vmem:[%s10828_s1 + $0x1d8] sm:$0xf0] }
 0x182   :  { %3820 = vmatpush.bf16.msrb.mxu0 %v6086_v37  ;;  %3834 = vmatpush.bf16.msrb.mxu1 %v6214_v45  ;;  %v3588_v37 = vpop.f32.mrf.mxu3  ;;  %v4631_v45 = vld [vmem:[%s10828_s1 + $0xf8] sm:$0xf0]  ;;  %v6820_v28 = vld [vmem:[%s10828_s1 + $0x3cc] sm:$0xf] }
 0x183   :  { %3848 = vmatpush.bf16.msrb.mxu2 %v6342_v56  ;;  %3862 = vmatpush.bf16.msrb.mxu3 %v6470_v50  ;;  %v6760_v56 = vld [vmem:[%s10828_s1 + $0x1ec] sm:$0xf]  ;;  %v4887_v50 = vld [vmem:[%s10828_s1 + $0x2f8] sm:$0xf0]  ;;  %v9874_v52 = vadd.f32 %v3588_v37, %v3575_v34  ;;  %v4746_v34 = vor.u32 %v6756_v16, %v4743_v20 }
 0x184   :  { %v4762_v12 = vor.u32 %v6760_v56, %v4759_v49  ;;  %v4890_v13 = vor.u32 %v6792_v9, %v4887_v50  ;;  %v4999_v30 = vld [vmem:[%s10828_s1 + $0x3d8] sm:$0xf0]  ;;  %v6752_v56 = vld [vmem:[%s10828_s1 + $0x1ac] sm:$0xf] }
 0x185   :  { %v4727_v49 = vld [vmem:[%s10828_s1 + $0x1b8] sm:$0xf0]  ;;  %v6784_v9 = vld [vmem:[%s10828_s1 + $0x2ac] sm:$0xf] }
 0x186   :  { %3821 = vmatpush.bf16.msrb.mxu0 %v6070_v11  ;;  %3835 = vmatpush.bf16.msrb.mxu1 %v6198_v4  ;;  %v4634_v11 = vor.u32 %v6728_v55, %v4631_v45  ;;  %v6724_v4 = vld [vmem:[%s10828_s1 + $0xcc] sm:$0xf]  ;;  %v4599_v45 = vld [vmem:[%s10828_s1 + $0xb8] sm:$0xf0]  ;;  %v4730_v5 = vor.u32 %v6752_v56, %v4727_v49 }
 0x187   :  { %3849 = vmatpush.bf16.msrb.mxu2 %v6326_v15  ;;  %3863 = vmatpush.bf16.msrb.mxu3 %v6454_v23  ;;  %v4615_v15 = vld [vmem:[%s10828_s1 + $0xd8] sm:$0xf0]  ;;  %v6788_v23 = vld [vmem:[%s10828_s1 + $0x2cc] sm:$0xf] }
 0x188   :  { %v4618_v33 = vor.u32 %v6724_v4, %v4615_v15  ;;  %v4874_v37 = vor.u32 %v6788_v23, %v4871_v24  ;;  %v6720_v55 = vld [vmem:[%s10828_s1 + $0xac] sm:$0xf]  ;;  %v4855_v50 = vld [vmem:[%s10828_s1 + $0x2b8] sm:$0xf0] }
 0x189   :  { %v4602_v3 = vor.u32 %v6720_v55, %v4599_v45  ;;  %v4711_v15 = vld [vmem:[%s10828_s1 + $0x198] sm:$0xf0]  ;;  %v6780_v16 = vld [vmem:[%s10828_s1 + $0x28c] sm:$0xf] }
 0x18a   :  { %3822 = vmatpush.bf16.msrb.mxu0 %v6054_v48  ;;  %3836 = vmatpush.bf16.msrb.mxu1 %v6182_v57  ;;  %v5002_v48 = vor.u32 %v6820_v28, %v4999_v30  ;;  %v6816_v57 = vld [vmem:[%s10828_s1 + $0x3ac] sm:$0xf]  ;;  %v3600_v20 = vpop.f32.mrf.mxu0  ;;  %v4967_v24 = vld [vmem:[%s10828_s1 + $0x398] sm:$0xf0] }
 0x18b   :  { %3850 = vmatpush.bf16.msrb.mxu2 %v6310_v59  ;;  %3864 = vmatpush.bf16.msrb.mxu3 %v6438_v8  ;;  %v4983_v59 = vld [vmem:[%s10828_s1 + $0x3b8] sm:$0xf0]  ;;  %v4858_v8 = vor.u32 %v6784_v9, %v4855_v50  ;;  %v6812_v23 = vld [vmem:[%s10828_s1 + $0x38c] sm:$0xf]  ;;  %v3601_v28 = vadd.f32 %v3600_v20, %v9806_v42 }
 0x18c   :  { %v4986_v4 = vor.u32 %v6816_v57, %v4983_v59  ;;  %v6712_v55 = vld [vmem:[%s10828_s1 + $0x6c] sm:$0xf]  ;;  %v4567_v45 = vld [vmem:[%s10828_s1 + $0x78] sm:$0xf0]  ;;  %v4970_v42 = vor.u32 %v6812_v23, %v4967_v24 }
 0x18d   :  { %3823 = vmatmul.bf16.vlgmr.msrb.gmra.mxu0 %v8241_v32  ;;  %3837 = vmatmul.bf16.vlgmr.msrb.gmra.mxu1 %v8254_v41  ;;  %v6744_v56 = vld [vmem:[%s10828_s1 + $0x16c] sm:$0xf]  ;;  %v4695_v49 = vld [vmem:[%s10828_s1 + $0x178] sm:$0xf0] }
 0x18e   :  { %3871 = vmatpush.bf16.msra.mxu0 %v4634_v11  ;;  %3885 = vmatpush.bf16.msra.mxu1 %v4762_v12  ;;  %v6716_v11 = vld [vmem:[%s10828_s1 + $0x8c] sm:$0xf]  ;;  %v4583_v12 = vld [vmem:[%s10828_s1 + $0x98] sm:$0xf0] }
 0x18f   :  { %3899 = vmatpush.bf16.msra.mxu2 %v4890_v13  ;;  %3913 = vmatpush.bf16.msra.mxu3 %v5018_v2  ;;  %v6748_v13 = vld [vmem:[%s10828_s1 + $0x18c] sm:$0xf]  ;;  %v4839_v2 = vld [vmem:[%s10828_s1 + $0x298] sm:$0xf0]  ;;  %v4586_v30 = vor.u32 %v6716_v11, %v4583_v12 }
 0x190   :  { %3851 = vmatmul.bf16.vlgmr.msrb.gmra.mxu2 %v8252_v38  ;;  %3865 = vmatmul.bf16.vlgmr.msrb.gmra.mxu3 %v8262_v46  ;;  %v6776_v9 = vld [vmem:[%s10828_s1 + $0x26c] sm:$0xf]  ;;  %v4823_v50 = vld [vmem:[%s10828_s1 + $0x278] sm:$0xf0] }
 0x191   :  { %v6808_v57 = vld [vmem:[%s10828_s1 + $0x36c] sm:$0xf]  ;;  %v4951_v59 = vld [vmem:[%s10828_s1 + $0x378] sm:$0xf0]  ;;  %v4826_v11 = vor.u32 %v6776_v9, %v4823_v50 }
 0x192   :  { %3872 = vmatpush.bf16.msra.mxu0 %v4618_v33  ;;  %3886 = vmatpush.bf16.msra.mxu1 %v4746_v34  ;;  %v3614_v33 = vpop.f32.mrf.mxu1  ;;  %v4714_v34 = vor.u32 %v6748_v13, %v4711_v15  ;;  %v4551_v12 = vld [vmem:[%s10828_s1 + $0x58] sm:$0xf0]  ;;  %v6740_v13 = vld [vmem:[%s10828_s1 + $0x14c] sm:$0xf]  ;;  %v4954_v15 = vor.u32 %v6808_v57, %v4951_v59  ;;  %v3602_v24 = vpop.f32.mrf.mxu0 }
 0x193   :  { %3900 = vmatpush.bf16.msra.mxu2 %v4874_v37  ;;  %3914 = vmatpush.bf16.msra.mxu3 %v5002_v48  ;;  %v4842_v37 = vor.u32 %v6780_v16, %v4839_v2  ;;  %v3615_v48 = vadd.f32 %v3614_v33, %v3601_v28  ;;  %v3628_v16 = vpop.f32.mrf.mxu2  ;;  %v6772_v2 = vld [vmem:[%s10828_s1 + $0x24c] sm:$0xf]  ;;  %v4807_v20 = vld [vmem:[%s10828_s1 + $0x258] sm:$0xf0]  ;;  %v3642_v28 = vpop.f32.mrf.mxu3 }
 0x194   :  { %v4935_v33 = vld [vmem:[%s10828_s1 + $0x358] sm:$0xf0]  ;;  %v6768_v57 = vld [vmem:[%s10828_s1 + $0x22c] sm:$0xf] }
 0x195   :  { %v3629_v23 = vadd.f32 %v3628_v16, %v3615_v48  ;;  %v4535_v48 = vld [vmem:[%s10828_s1 + $0x38] sm:$0xf0]  ;;  %v6732_v16 = vld [vmem:[%s10828_s1 + $0x10c] sm:$0xf] }
 0x196   :  { %3873 = vmatpush.bf16.msra.mxu0 %v4602_v3  ;;  %3887 = vmatpush.bf16.msra.mxu1 %v4730_v5  ;;  %v4570_v3 = vor.u32 %v6712_v55, %v4567_v45  ;;  %v6708_v5 = vld [vmem:[%s10828_s1 + $0x4c] sm:$0xf]  ;;  %v3603_v55 = vadd.f32 %v3602_v24, %v9874_v52  ;;  %v4663_v52 = vld [vmem:[%s10828_s1 + $0x138] sm:$0xf0] }
 0x197   :  { %3901 = vmatpush.bf16.msra.mxu2 %v4858_v8  ;;  %3915 = vmatpush.bf16.msra.mxu3 %v4986_v4  ;;  %v4698_v8 = vor.u32 %v6744_v56, %v4695_v49  ;;  %v4679_v4 = vld [vmem:[%s10828_s1 + $0x158] sm:$0xf0]  ;;  %v10008_v45 = vadd.f32 %v3642_v28, %v3629_v23  ;;  %v4810_v56 = vor.u32 %v6772_v2, %v4807_v20  ;;  %v6736_v49 = vld [vmem:[%s10828_s1 + $0x12c] sm:$0xf] }
 0x198   :  { %v4791_v59 = vld [vmem:[%s10828_s1 + $0x238] sm:$0xf0]  ;;  %v6764_v20 = vld [vmem:[%s10828_s1 + $0x20c] sm:$0xf] }
 0x199   :  { %v4647_v2 = vld [vmem:[%s10828_s1 + $0x118] sm:$0xf0] }
 0x19a   :  { %3874 = vmatpush.bf16.msra.mxu0 %v4586_v30  ;;  %3888 = vmatpush.bf16.msra.mxu1 %v4714_v34  ;;  %v6804_v30 = vld [vmem:[%s10828_s1 + $0x34c] sm:$0xf]  ;;  %v4554_v34 = vor.u32 %v6708_v5, %v4551_v12  ;;  %v3616_v50 = vpop.f32.mrf.mxu1  ;;  %v4919_v5 = vld [vmem:[%s10828_s1 + $0x338] sm:$0xf0] }
 0x19b   :  { %3902 = vmatpush.bf16.msra.mxu2 %v4842_v37  ;;  %3916 = vmatpush.bf16.msra.mxu3 %v4970_v42  ;;  %v4682_v37 = vor.u32 %v6740_v13, %v4679_v4  ;;  %v6704_v42 = vld [vmem:[%s10828_s1 + $0x2c] sm:$0xf]  ;;  %v4938_v9 = vor.u32 %v6804_v30, %v4935_v33  ;;  %v4519_v12 = vld [vmem:[%s10828_s1 + $0x18] sm:$0xf0]  ;;  %v3617_v13 = vadd.f32 %v3616_v50, %v3603_v55  ;;  %v3630_v24 = vpop.f32.mrf.mxu2 }
 0x19c   :  { %v4666_v4 = vor.u32 %v6736_v49, %v4663_v52  ;;  %v4775_v28 = vld [vmem:[%s10828_s1 + $0x218] sm:$0xf0]  ;;  %v6796_v30 = vld [vmem:[%s10828_s1 + $0x30c] sm:$0xf] }
 0x19d   :  { %v4903_v33 = vld [vmem:[%s10828_s1 + $0x318] sm:$0xf0]  ;;  %v6856_v55 = vld [vmem:[%s10828_s1 + $0x4ec] sm:$0xf] }
 0x19e   :  { %3875 = vmatpush.bf16.msra.mxu0 %v4570_v3  ;;  %3889 = vmatpush.bf16.msra.mxu1 %v4698_v8  ;;  %v6800_v3 = vld [vmem:[%s10828_s1 + $0x32c] sm:$0xf]  ;;  %v4538_v8 = vor.u32 %v6704_v42, %v4535_v48  ;;  %v5271_v49 = vld [vmem:[%s10828_s1 + $0x5f8] sm:$0xf0] }
 0x19f   :  { %3903 = vmatpush.bf16.msra.mxu2 %v4826_v11  ;;  %3917 = vmatpush.bf16.msra.mxu3 %v4954_v15  ;;  %v6700_v11 = vld [vmem:[%s10828_s1 + $0xc] sm:$0xf]  ;;  %v4794_v15 = vor.u32 %v6768_v57, %v4791_v59  ;;  %v4922_v23 = vor.u32 %v6800_v3, %v4919_v5  ;;  %v5399_v50 = vld [vmem:[%s10828_s1 + $0x6f8] sm:$0xf0]  ;;  %v4650_v57 = vor.u32 %v6732_v16, %v4647_v2 }
 0x1a0   :  { %v6888_v42 = vld [vmem:[%s10828_s1 + $0x5ec] sm:$0xf]  ;;  %v4522_v48 = vor.u32 %v6700_v11, %v4519_v12  ;;  %v4778_v59 = vor.u32 %v6764_v20, %v4775_v28  ;;  %v5527_v5 = vld [vmem:[%s10828_s1 + $0x7f8] sm:$0xf0] }
 0x1a1   :  { %v6952_v3 = vld [vmem:[%s10828_s1 + $0x7ec] sm:$0xf]  ;;  %v5127_v2 = vld [vmem:[%s10828_s1 + $0x4d8] sm:$0xf0] }
 0x1a2   :  { %3876 = vmatpush.bf16.msra.mxu0 %v4554_v34  ;;  %3890 = vmatpush.bf16.msra.mxu1 %v4682_v37  ;;  %v3631_v34 = vadd.f32 %v3630_v24, %v3617_v13  ;;  %v3644_v37 = vpop.f32.mrf.mxu3  ;;  %v6852_v12 = vld [vmem:[%s10828_s1 + $0x4cc] sm:$0xf]  ;;  %v4096_v13 = vmax.f32 %v10008_v45, 0.0  ;;  %v5255_v24 = vld [vmem:[%s10828_s1 + $0x5d8] sm:$0xf0] }
 0x1a3   :  { %3904 = vmatpush.bf16.msra.mxu2 %v4810_v56  ;;  %3918 = vmatpush.bf16.msra.mxu3 %v4938_v9  ;;  %v5143_v56 = vld [vmem:[%s10828_s1 + $0x4f8] sm:$0xf0]  ;;  %v6920_v9 = vld [vmem:[%s10828_s1 + $0x6ec] sm:$0xf] }
 0x1a4   :  { %v3645_v52 = vadd.f32 %v3644_v37, %v3631_v34  ;;  %v5146_v11 = vor.u32 %v6856_v55, %v5143_v56  ;;  %v5402_v16 = vor.u32 %v6920_v9, %v5399_v50  ;;  %v6884_v20 = vld [vmem:[%s10828_s1 + $0x5cc] sm:$0xf]  ;;  %v5383_v28 = vld [vmem:[%s10828_s1 + $0x6d8] sm:$0xf0]  ;;  %v5130_v37 = vor.u32 %v6852_v12, %v5127_v2 }
 0x1a5   :  { %v6916_v45 = vld [vmem:[%s10828_s1 + $0x6cc] sm:$0xf]  ;;  %v5511_v34 = vld [vmem:[%s10828_s1 + $0x7d8] sm:$0xf0]  ;;  %v5258_v55 = vor.u32 %v6884_v20, %v5255_v24 }
 0x1a6   :  { %3877 = vmatpush.bf16.msra.mxu0 %v4538_v8  ;;  %3891 = vmatpush.bf16.msra.mxu1 %v4666_v4  ;;  %v4906_v8 = vor.u32 %v6796_v30, %v4903_v33  ;;  %v4100_v4 = vmax.f32 %v3645_v52, 0.0  ;;  %v6948_v33 = vld [vmem:[%s10828_s1 + $0x7cc] sm:$0xf]  ;;  %v5386_v56 = vor.u32 %v6916_v45, %v5383_v28  ;;  %v5239_v50 = vld [vmem:[%s10828_s1 + $0x5b8] sm:$0xf0] }
 0x1a7   :  { %3905 = vmatpush.bf16.msra.mxu2 %v4794_v15  ;;  %3919 = vmatpush.bf16.msra.mxu3 %v4922_v23  ;;  %v5274_v15 = vor.u32 %v6888_v42, %v5271_v49  ;;  %v5530_v23 = vor.u32 %v6952_v3, %v5527_v5  ;;  %v6848_v42 = vld [vmem:[%s10828_s1 + $0x4ac] sm:$0xf]  ;;  %v5514_v9 = vor.u32 %v6948_v33, %v5511_v34  ;;  %v5495_v3 = vld [vmem:[%s10828_s1 + $0x7b8] sm:$0xf0] }
 0x1a8   :  { %v10101_v30 = vpack.c.bf16 %v4100_v4, %v4096_v13  ;;  %v6880_v49 = vld [vmem:[%s10828_s1 + $0x5ac] sm:$0xf]  ;;  %v5095_v12 = vld [vmem:[%s10828_s1 + $0x498] sm:$0xf0] }
 0x1a9   :  { %v6912_v52 = vld [vmem:[%s10828_s1 + $0x6ac] sm:$0xf]  ;;  %v5351_v4 = vld [vmem:[%s10828_s1 + $0x698] sm:$0xf0] }
 0x1aa   :  { %3878 = vmatpush.bf16.msra.mxu0 %v4522_v48  ;;  %3892 = vmatpush.bf16.msra.mxu1 %v4650_v57  ;;  %v5111_v48 = vld [vmem:[%s10828_s1 + $0x4b8] sm:$0xf0]  ;;  %v6908_v13 = vld [vmem:[%s10828_s1 + $0x68c] sm:$0xf] }
 0x1ab   :  { %3906 = vmatpush.bf16.msra.mxu2 %v4778_v59  ;;  %3920 = vmatpush.bf16.msra.mxu3 %v4906_v8  ;;  %v5367_v57 = vld [vmem:[%s10828_s1 + $0x6b8] sm:$0xf0]  ;;  %v6944_v59 = vld [vmem:[%s10828_s1 + $0x7ac] sm:$0xf]  ;;  %v5114_v5 = vor.u32 %v6848_v42, %v5111_v48  ;;  %v5242_v8 = vor.u32 %v6880_v49, %v5239_v50 }
 0x1ac   :  { %v6840_v24 = vld [vmem:[%s10828_s1 + $0x46c] sm:$0xf]  ;;  %v5079_v45 = vld [vmem:[%s10828_s1 + $0x478] sm:$0xf0] }
 0x1ad   :  { %3879 = vmatmul.bf16.vlgmr.msra.gmra.mxu0 %v7563_v58  ;;  %3893 = vmatmul.bf16.vlgmr.msra.gmra.mxu1 %v7599_v10  ;;  %v5370_v58 = vor.u32 %v6912_v52, %v5367_v57  ;;  %v5498_v10 = vor.u32 %v6944_v59, %v5495_v3  ;;  %v6872_v28 = vld [vmem:[%s10828_s1 + $0x56c] sm:$0xf]  ;;  %v5207_v34 = vld [vmem:[%s10828_s1 + $0x578] sm:$0xf0]  ;;  %v5082_v48 = vor.u32 %v6840_v24, %v5079_v45 }
 0x1ae   :  { %3927 = vmatpush.bf16.msrb.mxu0 %v5146_v11  ;;  %3941 = vmatpush.bf16.msrb.mxu1 %v5274_v15  ;;  %v6844_v11 = vld [vmem:[%s10828_s1 + $0x48c] sm:$0xf]  ;;  %v5463_v42 = vld [vmem:[%s10828_s1 + $0x778] sm:$0xf0]  ;;  %v5210_v49 = vor.u32 %v6872_v28, %v5207_v34 }
 0x1af   :  { %3955 = vmatpush.bf16.msrb.mxu2 %v5402_v16  ;;  %3969 = vmatpush.bf16.msrb.mxu3 %v5530_v23  ;;  %v6940_v15 = vld [vmem:[%s10828_s1 + $0x78c] sm:$0xf]  ;;  %v5479_v16 = vld [vmem:[%s10828_s1 + $0x798] sm:$0xf0]  ;;  %v5098_v2 = vor.u32 %v6844_v11, %v5095_v12  ;;  %v5354_v23 = vor.u32 %v6908_v13, %v5351_v4 }
 0x1b0   :  { %3907 = vmatmul.bf16.vlgmr.msra.gmra.mxu2 %v7577_v1  ;;  %3921 = vmatmul.bf16.vlgmr.msra.gmra.mxu3 %v7613_v17  ;;  %v6876_v1 = vld [vmem:[%s10828_s1 + $0x58c] sm:$0xf]  ;;  %v5223_v17 = vld [vmem:[%s10828_s1 + $0x598] sm:$0xf0]  ;;  %v5482_v33 = vor.u32 %v6940_v15, %v5479_v16 }
 0x1b1   :  { %v5226_v20 = vor.u32 %v6876_v1, %v5223_v17  ;;  %v6836_v50 = vld [vmem:[%s10828_s1 + $0x44c] sm:$0xf]  ;;  %v5063_v52 = vld [vmem:[%s10828_s1 + $0x458] sm:$0xf0] }
 0x1b2   :  { %3928 = vmatpush.bf16.msrb.mxu0 %v5130_v37  ;;  %3942 = vmatpush.bf16.msrb.mxu1 %v5258_v55  ;;  %v6904_v37 = vld [vmem:[%s10828_s1 + $0x66c] sm:$0xf]  ;;  %v5335_v55 = vld [vmem:[%s10828_s1 + $0x678] sm:$0xf0]  ;;  %v5066_v12 = vor.u32 %v6836_v50, %v5063_v52 }
 0x1b3   :  { %3956 = vmatpush.bf16.msrb.mxu2 %v5386_v56  ;;  %3970 = vmatpush.bf16.msrb.mxu3 %v5514_v9  ;;  %v6936_v56 = vld [vmem:[%s10828_s1 + $0x76c] sm:$0xf]  ;;  %v5338_v9 = vor.u32 %v6904_v37, %v5335_v55  ;;  %v5191_v3 = vld [vmem:[%s10828_s1 + $0x558] sm:$0xf0] }
 0x1b4   :  { %v6868_v57 = vld [vmem:[%s10828_s1 + $0x54c] sm:$0xf]  ;;  %v5466_v59 = vor.u32 %v6936_v56, %v5463_v42  ;;  %v5447_v11 = vld [vmem:[%s10828_s1 + $0x758] sm:$0xf0] }
 0x1b5   :  { %v5194_v1 = vor.u32 %v6868_v57, %v5191_v3  ;;  %v6832_v17 = vld [vmem:[%s10828_s1 + $0x42c] sm:$0xf]  ;;  %v5047_v13 = vld [vmem:[%s10828_s1 + $0x438] sm:$0xf0] }
 0x1b6   :  { %3929 = vmatpush.bf16.msrb.mxu0 %v5114_v5  ;;  %3943 = vmatpush.bf16.msrb.mxu1 %v5242_v8  ;;  %v6900_v5 = vld [vmem:[%s10828_s1 + $0x64c] sm:$0xf]  ;;  %v5319_v8 = vld [vmem:[%s10828_s1 + $0x658] sm:$0xf0]  ;;  %v5050_v45 = vor.u32 %v6832_v17, %v5047_v13 }
 0x1b7   :  { %3957 = vmatpush.bf16.msrb.mxu2 %v5370_v58  ;;  %3971 = vmatpush.bf16.msrb.mxu3 %v5498_v10  ;;  %v6932_v58 = vld [vmem:[%s10828_s1 + $0x74c] sm:$0xf]  ;;  %v5322_v10 = vor.u32 %v6900_v5, %v5319_v8  ;;  %v5175_v16 = vld [vmem:[%s10828_s1 + $0x538] sm:$0xf0] }
 0x1b8   :  { %v6864_v4 = vld [vmem:[%s10828_s1 + $0x52c] sm:$0xf]  ;;  %v5450_v15 = vor.u32 %v6932_v58, %v5447_v11  ;;  %v5431_v24 = vld [vmem:[%s10828_s1 + $0x738] sm:$0xf0] }
 0x1b9   :  { %v6828_v28 = vld [vmem:[%s10828_s1 + $0x40c] sm:$0xf]  ;;  %v5178_v34 = vor.u32 %v6864_v4, %v5175_v16  ;;  %v5159_v56 = vld [vmem:[%s10828_s1 + $0x518] sm:$0xf0] }
 0x1ba   :  { %3930 = vmatpush.bf16.msrb.mxu0 %v5098_v2  ;;  %3944 = vmatpush.bf16.msrb.mxu1 %v5226_v20  ;;  %v6896_v2 = vld [vmem:[%s10828_s1 + $0x62c] sm:$0xf]  ;;  %v5303_v20 = vld [vmem:[%s10828_s1 + $0x638] sm:$0xf0] }
 0x1bb   :  { %3958 = vmatpush.bf16.msrb.mxu2 %v5354_v23  ;;  %3972 = vmatpush.bf16.msrb.mxu3 %v5482_v33  ;;  %v6928_v23 = vld [vmem:[%s10828_s1 + $0x72c] sm:$0xf]  ;;  %v5031_v33 = vld [vmem:[%s10828_s1 + $0x418] sm:$0xf0]  ;;  %v5306_v37 = vor.u32 %v6896_v2, %v5303_v20 }
 0x1bc   :  { %v6860_v55 = vld [vmem:[%s10828_s1 + $0x50c] sm:$0xf]  ;;  %v5415_v50 = vld [vmem:[%s10828_s1 + $0x718] sm:$0xf0]  ;;  %v5034_v3 = vor.u32 %v6828_v28, %v5031_v33 }
 0x1bd   :  { %v6892_v42 = vld [vmem:[%s10828_s1 + $0x60c] sm:$0xf]  ;;  %v5655_v57 = vld [vmem:[%s10828_s1 + $0x8f8] sm:$0xf0]  ;;  %v5162_v11 = vor.u32 %v6860_v55, %v5159_v56 }
 0x1be   :  { %3931 = vmatpush.bf16.msrb.mxu0 %v5082_v48  ;;  %3945 = vmatpush.bf16.msrb.mxu1 %v5210_v49  ;;  %v5434_v48 = vor.u32 %v6928_v23, %v5431_v24  ;;  %v5287_v49 = vld [vmem:[%s10828_s1 + $0x618] sm:$0xf0]  ;;  %v6984_v52 = vld [vmem:[%s10828_s1 + $0x8ec] sm:$0xf] }
 0x1bf   :  { %3959 = vmatpush.bf16.msrb.mxu2 %v5338_v9  ;;  %3973 = vmatpush.bf16.msrb.mxu3 %v5466_v59  ;;  %v6924_v9 = vld [vmem:[%s10828_s1 + $0x70c] sm:$0xf]  ;;  %v5783_v5 = vld [vmem:[%s10828_s1 + $0x9f8] sm:$0xf0]  ;;  %v5658_v13 = vor.u32 %v6984_v52, %v5655_v57 }
 0x1c0   :  { %v7016_v59 = vld [vmem:[%s10828_s1 + $0x9ec] sm:$0xf]  ;;  %v5911_v58 = vld [vmem:[%s10828_s1 + $0xaf8] sm:$0xf0]  ;;  %v5418_v17 = vor.u32 %v6924_v9, %v5415_v50 }
 0x1c1   :  { %v7048_v8 = vld [vmem:[%s10828_s1 + $0xaec] sm:$0xf]  ;;  %v5786_v4 = vor.u32 %v7016_v59, %v5783_v5  ;;  %v5639_v2 = vld [vmem:[%s10828_s1 + $0x8d8] sm:$0xf0] }
 0x1c2   :  { %3932 = vmatpush.bf16.msrb.mxu0 %v5066_v12  ;;  %3946 = vmatpush.bf16.msrb.mxu1 %v5194_v1  ;;  %v5290_v12 = vor.u32 %v6892_v42, %v5287_v49  ;;  %v7080_v1 = vld [vmem:[%s10828_s1 + $0xbec] sm:$0xf]  ;;  %v5767_v24 = vld [vmem:[%s10828_s1 + $0x9d8] sm:$0xf0] }
 0x1c3   :  { %3960 = vmatpush.bf16.msrb.mxu2 %v5322_v10  ;;  %3974 = vmatpush.bf16.msrb.mxu3 %v5450_v15  ;;  %v6039_v10 = vld [vmem:[%s10828_s1 + $0xbf8] sm:$0xf0]  ;;  %v5914_v15 = vor.u32 %v7048_v8, %v5911_v58  ;;  %v6980_v16 = vld [vmem:[%s10828_s1 + $0x8cc] sm:$0xf] }
 0x1c4   :  { %v7012_v20 = vld [vmem:[%s10828_s1 + $0x9cc] sm:$0xf]  ;;  %v6042_v23 = vor.u32 %v7080_v1, %v6039_v10  ;;  %v5895_v28 = vld [vmem:[%s10828_s1 + $0xad8] sm:$0xf0] }
 0x1c5   :  { %v7076_v33 = vld [vmem:[%s10828_s1 + $0xbcc] sm:$0xf]  ;;  %v5770_v55 = vor.u32 %v7012_v20, %v5767_v24  ;;  %v5751_v50 = vld [vmem:[%s10828_s1 + $0x9b8] sm:$0xf0] }
 0x1c6   :  { %3933 = vmatpush.bf16.msrb.mxu0 %v5050_v45  ;;  %3947 = vmatpush.bf16.msrb.mxu1 %v5178_v34  ;;  %v7044_v45 = vld [vmem:[%s10828_s1 + $0xacc] sm:$0xf]  ;;  %v6023_v34 = vld [vmem:[%s10828_s1 + $0xbd8] sm:$0xf0] }
 0x1c7   :  { %3961 = vmatpush.bf16.msrb.mxu2 %v5306_v37  ;;  %3975 = vmatpush.bf16.msrb.mxu3 %v5434_v48  ;;  %v5642_v37 = vor.u32 %v6980_v16, %v5639_v2  ;;  %v5898_v56 = vor.u32 %v7044_v45, %v5895_v28  ;;  %v6976_v42 = vld [vmem:[%s10828_s1 + $0x8ac] sm:$0xf]  ;;  %v5623_v48 = vld [vmem:[%s10828_s1 + $0x8b8] sm:$0xf0]  ;;  %v6026_v9 = vor.u32 %v7076_v33, %v6023_v34  ;;  %v10375_v33 = vpop.f32.mrf.mxu0 }
 0x1c8   :  { %v7008_v49 = vld [vmem:[%s10828_s1 + $0x9ac] sm:$0xf]  ;;  %v5879_v57 = vld [vmem:[%s10828_s1 + $0xab8] sm:$0xf0] }
 0x1c9   :  { %v7040_v52 = vld [vmem:[%s10828_s1 + $0xaac] sm:$0xf]  ;;  %v6007_v59 = vld [vmem:[%s10828_s1 + $0xbb8] sm:$0xf0]  ;;  %v5754_v5 = vor.u32 %v7008_v49, %v5751_v50 }
 0x1ca   :  { %3934 = vmatpush.bf16.msrb.mxu0 %v5034_v3  ;;  %3948 = vmatpush.bf16.msrb.mxu1 %v5162_v11  ;;  %v5626_v3 = vor.u32 %v6976_v42, %v5623_v48  ;;  %v5882_v8 = vor.u32 %v7040_v52, %v5879_v57  ;;  %v7004_v58 = vld [vmem:[%s10828_s1 + $0x98c] sm:$0xf]  ;;  %v5735_v11 = vld [vmem:[%s10828_s1 + $0x998] sm:$0xf0] }
 0x1cb   :  { %3962 = vmatpush.bf16.msrb.mxu2 %v5290_v12  ;;  %3976 = vmatpush.bf16.msrb.mxu3 %v5418_v17  ;;  %v7036_v12 = vld [vmem:[%s10828_s1 + $0xa8c] sm:$0xf]  ;;  %v5863_v1 = vld [vmem:[%s10828_s1 + $0xa98] sm:$0xf0] }
 0x1cc   :  { %v7068_v10 = vld [vmem:[%s10828_s1 + $0xb8c] sm:$0xf]  ;;  %v5991_v17 = vld [vmem:[%s10828_s1 + $0xb98] sm:$0xf0] }
 0x1cd   :  { %3935 = vmatmul.bf16.vlgmr.msrb.gmra.mxu0 %v7785_v39  ;;  %3949 = vmatmul.bf16.vlgmr.msrb.gmra.mxu1 %v7798_v44  ;;  %v7072_v39 = vld [vmem:[%s10828_s1 + $0xbac] sm:$0xf]  ;;  %v5607_v44 = vld [vmem:[%s10828_s1 + $0x898] sm:$0xf0] }
 0x1ce   :  { %3983 = vmatpush.bf16.msra.mxu0 %v5658_v13  ;;  %3997 = vmatpush.bf16.msra.mxu1 %v5786_v4  ;;  %v5738_v4 = vor.u32 %v7004_v58, %v5735_v11  ;;  %v6968_v16 = vld [vmem:[%s10828_s1 + $0x86c] sm:$0xf]  ;;  %v5591_v2 = vld [vmem:[%s10828_s1 + $0x878] sm:$0xf0] }
 0x1cf   :  { %4011 = vmatpush.bf16.msra.mxu2 %v5914_v15  ;;  %4025 = vmatpush.bf16.msra.mxu3 %v6042_v23  ;;  %v5866_v15 = vor.u32 %v7036_v12, %v5863_v1  ;;  %v7000_v20 = vld [vmem:[%s10828_s1 + $0x96c] sm:$0xf]  ;;  %v5994_v23 = vor.u32 %v7068_v10, %v5991_v17  ;;  %v5719_v24 = vld [vmem:[%s10828_s1 + $0x978] sm:$0xf0]  ;;  %v10418_v12 = vpop.f32.mrf.mxu2 }
 0x1d0   :  { %3963 = vmatmul.bf16.vlgmr.msrb.gmra.mxu2 %v7796_v43  ;;  %3977 = vmatmul.bf16.vlgmr.msrb.gmra.mxu3 %v7806_v47  ;;  %v6972_v43 = vld [vmem:[%s10828_s1 + $0x88c] sm:$0xf]  ;;  %v6010_v47 = vor.u32 %v7072_v39, %v6007_v59  ;;  %v5847_v28 = vld [vmem:[%s10828_s1 + $0xa78] sm:$0xf0]  ;;  %v5722_v42 = vor.u32 %v7000_v20, %v5719_v24  ;;  %v10443_v24 = vpop.f32.mrf.mxu0 }
 0x1d1   :  { %v5610_v13 = vor.u32 %v6972_v43, %v5607_v44  ;;  %v7032_v45 = vld [vmem:[%s10828_s1 + $0xa6c] sm:$0xf]  ;;  %v5703_v57 = vld [vmem:[%s10828_s1 + $0x958] sm:$0xf0] }
 0x1d2   :  { %3984 = vmatpush.bf16.msra.mxu0 %v5642_v37  ;;  %3998 = vmatpush.bf16.msra.mxu1 %v5770_v55  ;;  %v7064_v34 = vld [vmem:[%s10828_s1 + $0xb6c] sm:$0xf]  ;;  %v5975_v37 = vld [vmem:[%s10828_s1 + $0xb78] sm:$0xf0]  ;;  %v10383_v55 = vpop.f32.mrf.mxu1  ;;  %v5850_v48 = vor.u32 %v7032_v45, %v5847_v28 }
 0x1d3   :  { %4012 = vmatpush.bf16.msra.mxu2 %v5898_v56  ;;  %4026 = vmatpush.bf16.msra.mxu3 %v6026_v9  ;;  %v5594_v56 = vor.u32 %v6968_v16, %v5591_v2  ;;  %v6964_v49 = vld [vmem:[%s10828_s1 + $0x84c] sm:$0xf]  ;;  %v5575_v9 = vld [vmem:[%s10828_s1 + $0x858] sm:$0xf0]  ;;  %v5978_v52 = vor.u32 %v7064_v34, %v5975_v37 }
 0x1d4   :  { %v6996_v50 = vld [vmem:[%s10828_s1 + $0x94c] sm:$0xf]  ;;  %v5831_v59 = vld [vmem:[%s10828_s1 + $0xa58] sm:$0xf0] }
 0x1d5   :  { %v7028_v39 = vld [vmem:[%s10828_s1 + $0xa4c] sm:$0xf]  ;;  %v5706_v43 = vor.u32 %v6996_v50, %v5703_v57  ;;  %v5687_v10 = vld [vmem:[%s10828_s1 + $0x938] sm:$0xf0] }
 0x1d6   :  { %3985 = vmatpush.bf16.msra.mxu0 %v5626_v3  ;;  %3999 = vmatpush.bf16.msra.mxu1 %v5754_v5  ;;  %v7060_v3 = vld [vmem:[%s10828_s1 + $0xb4c] sm:$0xf]  ;;  %v5959_v5 = vld [vmem:[%s10828_s1 + $0xb58] sm:$0xf0]  ;;  %v5834_v44 = vor.u32 %v7028_v39, %v5831_v59 }
 0x1d7   :  { %4013 = vmatpush.bf16.msra.mxu2 %v5882_v8  ;;  %4027 = vmatpush.bf16.msra.mxu3 %v6010_v47  ;;  %v5578_v8 = vor.u32 %v6964_v49, %v5575_v9  ;;  %v6960_v58 = vld [vmem:[%s10828_s1 + $0x82c] sm:$0xf]  ;;  %v5559_v47 = vld [vmem:[%s10828_s1 + $0x838] sm:$0xf0]  ;;  %v5962_v1 = vor.u32 %v7060_v3, %v5959_v5 }
 0x1d8   :  { %v6992_v11 = vld [vmem:[%s10828_s1 + $0x92c] sm:$0xf]  ;;  %v5943_v16 = vld [vmem:[%s10828_s1 + $0xb38] sm:$0xf0]  ;;  %v5562_v2 = vor.u32 %v6960_v58, %v5559_v47 }
 0x1d9   :  { %v7024_v17 = vld [vmem:[%s10828_s1 + $0xa2c] sm:$0xf]  ;;  %v5690_v45 = vor.u32 %v6992_v11, %v5687_v10  ;;  %v5671_v37 = vld [vmem:[%s10828_s1 + $0x918] sm:$0xf0]  ;;  %v10492_v11 = vld [vmem:[%s10829_s2] sm:$0xf] }
 0x1da   :  { %3986 = vmatpush.bf16.msra.mxu0 %v5610_v13  ;;  %4000 = vmatpush.bf16.msra.mxu1 %v5738_v4  ;;  %v5815_v13 = vld [vmem:[%s10828_s1 + $0xa38] sm:$0xf0]  ;;  %v10429_v4 = vpop.f32.mrf.mxu3  ;;  %v6956_v20 = vld [vmem:[%s10828_s1 + $0x80c] sm:$0xf] }
 0x1db   :  { %4014 = vmatpush.bf16.msra.mxu2 %v5866_v15  ;;  %4028 = vmatpush.bf16.msra.mxu3 %v5994_v23  ;;  %v7056_v15 = vld [vmem:[%s10828_s1 + $0xb2c] sm:$0xf]  ;;  %v5543_v23 = vld [vmem:[%s10828_s1 + $0x818] sm:$0xf0]  ;;  %v5818_v28 = vor.u32 %v7024_v17, %v5815_v13 }
 0x1dc   :  { %v6988_v34 = vld [vmem:[%s10828_s1 + $0x90c] sm:$0xf]  ;;  %v5799_v49 = vld [vmem:[%s10828_s1 + $0xa18] sm:$0xf0]  ;;  %v5546_v59 = vor.u32 %v6956_v20, %v5543_v23  ;;  %v10504_v23 = vpop.f32.mrf.mxu2 }
 0x1dd   :  { %v7052_v9 = vld [vmem:[%s10828_s1 + $0xb0c] sm:$0xf]  ;;  %v5927_v50 = vld [vmem:[%s10828_s1 + $0xb18] sm:$0xf0] }
 0x1de   :  { %3987 = vmatpush.bf16.msra.mxu0 %v5594_v56  ;;  %4001 = vmatpush.bf16.msra.mxu1 %v5722_v42  ;;  %v7020_v56 = vld [vmem:[%s10828_s1 + $0xa0c] sm:$0xf]  ;;  %v10454_v42 = vpop.f32.mrf.mxu1  ;;  %v6167_v57 = vld [vmem:[%s10828_s1 + $0xcf8] sm:$0xf0]  ;;  %v5930_v10 = vor.u32 %v7052_v9, %v5927_v50  ;;  %v3211_v50 = vadd.f32 %v8642_v51, %v551_v63 }
 0x1df   :  { %4015 = vmatpush.bf16.msra.mxu2 %v5850_v48  ;;  %4029 = vmatpush.bf16.msra.mxu3 %v5978_v52  ;;  %v5946_v48 = vor.u32 %v7056_v15, %v5943_v16  ;;  %v7112_v52 = vld [vmem:[%s10828_s1 + $0xcec] sm:$0xf]  ;;  %v6295_v3 = vld [vmem:[%s10828_s1 + $0xdf8] sm:$0xf0] }
 0x1e0   :  { %v7144_v39 = vld [vmem:[%s10828_s1 + $0xdec] sm:$0xf]  ;;  %v6551_v47 = vld [vmem:[%s10828_s1 + $0xff8] sm:$0xf0]  ;;  %v6170_v17 = vor.u32 %v7112_v52, %v6167_v57  ;;  %v10526_v52 = vpop.f32.mrf.mxu0 }
 0x1e1   :  { %v7176_v5 = vld [vmem:[%s10828_s1 + $0xeec] sm:$0xf]  ;;  %v6298_v13 = vor.u32 %v7144_v39, %v6295_v3  ;;  %v6135_v3 = vld [vmem:[%s10828_s1 + $0xcb8] sm:$0xf0] }
 0x1e2   :  { %3988 = vmatpush.bf16.msra.mxu0 %v5578_v8  ;;  %4002 = vmatpush.bf16.msra.mxu1 %v5706_v43  ;;  %v6423_v8 = vld [vmem:[%s10828_s1 + $0xef8] sm:$0xf0]  ;;  %v5674_v43 = vor.u32 %v6988_v34, %v5671_v37  ;;  %v7208_v58 = vld [vmem:[%s10828_s1 + $0xfec] sm:$0xf] }
 0x1e3   :  { %4016 = vmatpush.bf16.msra.mxu2 %v5834_v44  ;;  %4030 = vmatpush.bf16.msra.mxu3 %v5962_v1  ;;  %v5802_v44 = vor.u32 %v7020_v56, %v5799_v49  ;;  %v553_v1 = vperm.slane %v10492_v11, 2  ;;  %v6426_v15 = vor.u32 %v7176_v5, %v6423_v8  ;;  %v7108_v16 = vld [vmem:[%s10828_s1 + $0xccc] sm:$0xf]  ;;  %v6407_v37 = vld [vmem:[%s10828_s1 + $0xed8] sm:$0xf0]  ;;  %v10515_v56 = vpop.f32.mrf.mxu3 }
 0x1e4   :  { %v7140_v20 = vld [vmem:[%s10828_s1 + $0xdcc] sm:$0xf]  ;;  %v6535_v49 = vld [vmem:[%s10828_s1 + $0xfd8] sm:$0xf0] }
 0x1e5   :  { %v7172_v34 = vld [vmem:[%s10828_s1 + $0xecc] sm:$0xf]  ;;  %v3657_v63 = vadd.f32 %v10375_v33, %v553_v1  ;;  %v6263_v8 = vld [vmem:[%s10828_s1 + $0xdb8] sm:$0xf0] }
 0x1e6   :  { %3989 = vmatpush.bf16.msra.mxu0 %v5562_v2  ;;  %4003 = vmatpush.bf16.msra.mxu1 %v5690_v45  ;;  %v6151_v2 = vld [vmem:[%s10828_s1 + $0xcd8] sm:$0xf0]  ;;  %v6554_v45 = vor.u32 %v7208_v58, %v6551_v47  ;;  %v6410_v39 = vor.u32 %v7172_v34, %v6407_v37  ;;  %v10538_v51 = vpop.f32.mrf.mxu1  ;;  %v3225_v47 = vadd.f32 %v8668_v0, %v3211_v50  ;;  %v7128_v50 = vld [vmem:[%s10828_s1 + $0xd6c] sm:$0xf] }
 0x1e7   :  { %4017 = vmatpush.bf16.msra.mxu2 %v5818_v28  ;;  %4031 = vmatpush.bf16.msra.mxu3 %v5946_v48  ;;  %v6279_v28 = vld [vmem:[%s10828_s1 + $0xdd8] sm:$0xf0]  ;;  %v7204_v48 = vld [vmem:[%s10828_s1 + $0xfcc] sm:$0xf]  ;;  %v6154_v9 = vor.u32 %v7108_v16, %v6151_v2 }
 0x1e8   :  { %v6282_v57 = vor.u32 %v7140_v20, %v6279_v28  ;;  %v6538_v5 = vor.u32 %v7204_v48, %v6535_v49  ;;  %v6519_v33 = vld [vmem:[%s10828_s1 + $0xfb8] sm:$0xf0]  ;;  %v7164_v16 = vld [vmem:[%s10828_s1 + $0xe8c] sm:$0xf]  ;;  %v3659_v20 = vadd.f32 %v10443_v24, %v553_v1  ;;  %v10586_v28 = vpop.f32.mrf.mxu2  ;;  %v3239_v37 = vadd.f32 %v8698_v18, %v3225_v47 }
 0x1e9   :  { %v6375_v2 = vld [vmem:[%s10828_s1 + $0xe98] sm:$0xf0]  ;;  %v7096_v1 = vld [vmem:[%s10828_s1 + $0xc6c] sm:$0xf] }
 0x1ea   :  { %3990 = vmatpush.bf16.msra.mxu0 %v5546_v59  ;;  %4004 = vmatpush.bf16.msra.mxu1 %v5674_v43  ;;  %v7104_v59 = vld [vmem:[%s10828_s1 + $0xcac] sm:$0xf]  ;;  %v6378_v24 = vor.u32 %v7164_v16, %v6375_v2 }
 0x1eb   :  { %4018 = vmatpush.bf16.msra.mxu2 %v5802_v44  ;;  %4032 = vmatpush.bf16.msra.mxu3 %v5930_v10  ;;  %v7168_v43 = vld [vmem:[%s10828_s1 + $0xeac] sm:$0xf]  ;;  %v6391_v44 = vld [vmem:[%s10828_s1 + $0xeb8] sm:$0xf0]  ;;  %v6138_v58 = vor.u32 %v7104_v59, %v6135_v3  ;;  %v6266_v10 = vor.u32 %v7136_v54, %v6263_v8  ;;  %v10589_v48 = vpop.f32.mrf.mxu3  ;;  %v3673_v54 = vadd.f32 %v10454_v42, %v3659_v20 }
 0x1ec   :  { %v7160_v59 = vld [vmem:[%s10828_s1 + $0xe6c] sm:$0xf]  ;;  %v6359_v3 = vld [vmem:[%s10828_s1 + $0xe78] sm:$0xf0] }
 0x1ed   :  { %3991 = vmatmul.bf16.vlgmr.msra.gmra.mxu0 %v8013_v31  ;;  %4005 = vmatmul.bf16.vlgmr.msra.gmra.mxu1 %v8026_v36  ;;  %v7200_v31 = vld [vmem:[%s10828_s1 + $0xfac] sm:$0xf]  ;;  %v6362_v42 = vor.u32 %v7160_v59, %v6359_v3  ;;  %v6071_v20 = vld [vmem:[%s10828_s1 + $0xc38] sm:$0xf0] }
 0x1ee   :  { %4039 = vmatpush.bf16.msrb.mxu0 %v6170_v17  ;;  %4053 = vmatpush.bf16.msrb.mxu1 %v6298_v13  ;;  %v7100_v36 = vld [vmem:[%s10828_s1 + $0xc8c] sm:$0xf]  ;;  %v6119_v17 = vld [vmem:[%s10828_s1 + $0xc98] sm:$0xf0]  ;;  %v3671_v13 = vadd.f32 %v10383_v55, %v3657_v63  ;;  %v6522_v0 = vor.u32 %v7200_v31, %v6519_v33  ;;  %v10611_v63 = vpop.f32.mrf.mxu0  ;;  %v10619_v8 = vpop.f32.mrf.mxu1 }
 0x1ef   :  { %4067 = vmatpush.bf16.msrb.mxu2 %v6426_v15  ;;  %4081 = vmatpush.bf16.msrb.mxu3 %v6554_v45  ;;  %v6247_v15 = vld [vmem:[%s10828_s1 + $0xd98] sm:$0xf0]  ;;  %v7196_v55 = vld [vmem:[%s10828_s1 + $0xf8c] sm:$0xf]  ;;  %v6122_v34 = vor.u32 %v7100_v36, %v6119_v17 }
 0x1f0   :  { %4019 = vmatmul.bf16.vlgmr.msra.gmra.mxu2 %v8024_v35  ;;  %4033 = vmatmul.bf16.vlgmr.msra.gmra.mxu3 %v8034_v40  ;;  %v6394_v35 = vor.u32 %v7168_v43, %v6391_v44  ;;  %v7132_v40 = vld [vmem:[%s10828_s1 + $0xd8c] sm:$0xf]  ;;  %v6503_v45 = vld [vmem:[%s10828_s1 + $0xf98] sm:$0xf0]  ;;  %v3685_v18 = vadd.f32 %v10418_v12, %v3671_v13  ;;  %v3253_v44 = vadd.f32 %v8709_v25, %v3239_v37 }
 0x1f1   :  { %v6250_v49 = vor.u32 %v7132_v40, %v6247_v15  ;;  %v7192_v12 = vld [vmem:[%s10828_s1 + $0xf6c] sm:$0xf]  ;;  %v6343_v17 = vld [vmem:[%s10828_s1 + $0xe58] sm:$0xf0]  ;;  %v3687_v40 = vadd.f32 %v10504_v23, %v3673_v54 }
 0x1f2   :  { %4040 = vmatpush.bf16.msrb.mxu0 %v6154_v9  ;;  %4054 = vmatpush.bf16.msrb.mxu1 %v6282_v57  ;;  %v6103_v9 = vld [vmem:[%s10828_s1 + $0xc78] sm:$0xf0]  ;;  %v6506_v57 = vor.u32 %v7196_v55, %v6503_v45  ;;  %v7092_v33 = vld [vmem:[%s10828_s1 + $0xc4c] sm:$0xf]  ;;  %v3267_v15 = vadd.f32 %v8867_v26, %v3253_v44 }
 0x1f3   :  { %4068 = vmatpush.bf16.msrb.mxu2 %v6410_v39  ;;  %4082 = vmatpush.bf16.msrb.mxu3 %v6538_v5  ;;  %v6231_v39 = vld [vmem:[%s10828_s1 + $0xd78] sm:$0xf0]  ;;  %v6106_v43 = vor.u32 %v7096_v1, %v6103_v9  ;;  %v7124_v47 = vld [vmem:[%s10828_s1 + $0xd4c] sm:$0xf]  ;;  %v3701_v1 = vadd.f32 %v10515_v56, %v3687_v40  ;;  %v3756_v9 = vpop.f32.mrf.mxu3 }
 0x1f4   :  { %v6487_v5 = vld [vmem:[%s10828_s1 + $0xf78] sm:$0xf0]  ;;  %v6234_v31 = vor.u32 %v7128_v50, %v6231_v39  ;;  %v7156_v36 = vld [vmem:[%s10828_s1 + $0xe4c] sm:$0xf]  ;;  %v3281_v59 = vadd.f32 %v8875_v29, %v3267_v15 }
 0x1f5   :  { %v6490_v25 = vor.u32 %v7192_v12, %v6487_v5  ;;  %v6471_v13 = vld [vmem:[%s10828_s1 + $0xf58] sm:$0xf0]  ;;  %v6346_v2 = vor.u32 %v7156_v36, %v6343_v17  ;;  %v7088_v23 = vld [vmem:[%s10828_s1 + $0xc2c] sm:$0xf] }
 0x1f6   :  { %4041 = vmatpush.bf16.msrb.mxu0 %v6138_v58  ;;  %4055 = vmatpush.bf16.msrb.mxu1 %v6266_v10  ;;  %v6087_v58 = vld [vmem:[%s10828_s1 + $0xc58] sm:$0xf0]  ;;  %v3699_v10 = vadd.f32 %v10429_v4, %v3685_v18  ;;  %v7188_v4 = vld [vmem:[%s10828_s1 + $0xf4c] sm:$0xf]  ;;  %v3768_v50 = vpop.f32.mrf.mxu0  ;;  %v6074_v39 = vor.u32 %v7088_v23, %v6071_v20 }
 0x1f7   :  { %4069 = vmatpush.bf16.msrb.mxu2 %v6394_v35  ;;  %4083 = vmatpush.bf16.msrb.mxu3 %v6522_v0  ;;  %v6215_v35 = vld [vmem:[%s10828_s1 + $0xd58] sm:$0xf0]  ;;  %v6090_v0 = vor.u32 %v7092_v33, %v6087_v58  ;;  %v7120_v55 = vld [vmem:[%s10828_s1 + $0xd2c] sm:$0xf]  ;;  %v6474_v26 = vor.u32 %v7188_v4, %v6471_v13  ;;  %v3295_v33 = vadd.f32 %v8914_v62, %v3281_v59 }
 0x1f8   :  { %v6218_v16 = vor.u32 %v7124_v47, %v6215_v35  ;;  %v3713_v45 = vadd.f32 %v10526_v52, %v3699_v10  ;;  %v6199_v37 = vld [vmem:[%s10828_s1 + $0xd38] sm:$0xf0]  ;;  %v7184_v52 = vld [vmem:[%s10828_s1 + $0xf2c] sm:$0xf]  ;;  %v3715_v58 = vadd.f32 %v10611_v63, %v3701_v1 }
 0x1f9   :  { %v6455_v18 = vld [vmem:[%s10828_s1 + $0xf38] sm:$0xf0]  ;;  %v6202_v3 = vor.u32 %v7120_v55, %v6199_v37  ;;  %v7084_v54 = vld [vmem:[%s10828_s1 + $0xc0c] sm:$0xf]  ;;  %v3309_v40 = vadd.f32 %v8925_v6, %v3295_v33 }
 0x1fa   :  { %4042 = vmatpush.bf16.msrb.mxu0 %v6122_v34  ;;  %4056 = vmatpush.bf16.msrb.mxu1 %v6250_v49  ;;  %v3742_v34 = vpop.f32.mrf.mxu2  ;;  %v7152_v49 = vld [vmem:[%s10828_s1 + $0xe2c] sm:$0xf]  ;;  %v6055_v12 = vld [vmem:[%s10828_s1 + $0xc18] sm:$0xf0]  ;;  %v6458_v29 = vor.u32 %v7184_v52, %v6455_v18  ;;  %v3729_v4 = vadd.f32 %v10619_v8, %v3715_v58  ;;  %v7217_v8 = vld [vmem:[%s10830_s3 + $0x30] sm:$0xff] }
 0x1fb   :  { %4070 = vmatpush.bf16.msrb.mxu2 %v6378_v24  ;;  %4084 = vmatpush.bf16.msrb.mxu3 %v6506_v57  ;;  %v6327_v24 = vld [vmem:[%s10828_s1 + $0xe38] sm:$0xf0]  ;;  %v10675_v57 = vpop.f32.mrf.mxu1  ;;  %v7116_v5 = vld [vmem:[%s10828_s1 + $0xd0c] sm:$0xf]  ;;  %v6058_v10 = vor.u32 %v7084_v54, %v6055_v12  ;;  %v3810_v13 = vpop.f32.mrf.mxu3  ;;  %v3323_v15 = vadd.f32 %v9074_v14, %v3309_v40  ;;  %v7225_v14 = vld [vmem:[%s10830_s3 + $0x70] sm:$0xff] }
 0x1fc   :  { %v6330_v56 = vor.u32 %v7152_v49, %v6327_v24  ;;  %v6183_v44 = vld [vmem:[%s10828_s1 + $0xd18] sm:$0xf0]  ;;  %v7232_v49 = vld [vmem:[%s10830_s3 + $0xa8] sm:$0xff]  ;;  %v7223_v52 = vld [vmem:[%s10830_s3 + $0x60] sm:$0xff] }
 0x1fd   :  { %v6439_v47 = vld [vmem:[%s10828_s1 + $0xf18] sm:$0xf0] }
 0x1fe   :  { %4043 = vmatpush.bf16.msrb.mxu0 %v6106_v43  ;;  %4057 = vmatpush.bf16.msrb.mxu1 %v6234_v31  ;;  %v3727_v43 = vadd.f32 %v10538_v51, %v3713_v45  ;;  %v7148_v31 = vld [vmem:[%s10828_s1 + $0xe0c] sm:$0xf]  ;;  %v7218_v63 = vld [vmem:[%s10830_s3 + $0x38] sm:$0xff]  ;;  %v7233_v45 = vld [vmem:[%s10830_s3 + $0xb0] sm:$0xff] }
 0x1ff   :  { %4071 = vmatpush.bf16.msrb.mxu2 %v6362_v42  ;;  %4085 = vmatpush.bf16.msrb.mxu3 %v6490_v25  ;;  %v6311_v42 = vld [vmem:[%s10828_s1 + $0xe18] sm:$0xf0]  ;;  %v7180_v51 = vld [vmem:[%s10828_s1 + $0xf0c] sm:$0xf]  ;;  %v6186_v25 = vor.u32 %v7116_v5, %v6183_v44  ;;  %v7213_v44 = vld [vmem:[%s10830_s3 + $0x10] sm:$0xff] }
 0x200   :  { %v6314_v35 = vor.u32 %v7148_v31, %v6311_v42  ;;  %v3741_v36 = vadd.f32 %v10586_v28, %v3727_v43  ;;  %v6442_v62 = vor.u32 %v7180_v51, %v6439_v47  ;;  %v3743_v28 = vadd.f32 %v3742_v34, %v3729_v4  ;;  %v7229_v51 = vld [vmem:[%s10830_s3 + $0x90] sm:$0xff] }
 0x202   :  { %4044 = vmatpush.bf16.msrb.mxu0 %v6090_v0  ;;  %4058 = vmatpush.bf16.msrb.mxu1 %v6218_v16  ;;  %v3796_v17 = vpop.f32.mrf.mxu2  ;;  %v7226_v0 = vld [vmem:[%s10830_s3 + $0x78] sm:$0xff]  ;;  %v3770_v16 = vpop.f32.mrf.mxu0  ;;  %v3755_v6 = vadd.f32 %v10589_v48, %v3741_v36  ;;  %v3337_v48 = vadd.f32 %v9082_v19, %v3323_v15  ;;  %v3757_v55 = vadd.f32 %v3756_v9, %v3743_v28  ;;  %v4095_v15 = vmax.f32 %v9189_v61, 0.0 }
 0x203   :  { %4072 = vmatpush.bf16.msrb.mxu2 %v6346_v2  ;;  %4086 = vmatpush.bf16.msrb.mxu3 %v6474_v26  ;;  %v7234_v2 = vld [vmem:[%s10830_s3 + $0xb8] sm:$0xff]  ;;  %v3784_v23 = vpop.f32.mrf.mxu1  ;;  %v3812_v26 = vpop.f32.mrf.mxu3 }
 0x204   :  { %v3769_v20 = vadd.f32 %v3768_v50, %v3755_v6  ;;  %v3351_v34 = vadd.f32 %v9121_v53, %v3337_v48  ;;  %v7215_v53 = vld [vmem:[%s10830_s3 + $0x20] sm:$0xff] }
 0x206   :  { %4045 = vmatpush.bf16.msrb.mxu0 %v6074_v39  ;;  %4059 = vmatpush.bf16.msrb.mxu1 %v6202_v3  ;;  %v3365_v9 = vadd.f32 %v9132_v60, %v3351_v34  ;;  %v7231_v39 = vld [vmem:[%s10830_s3 + $0xa0] sm:$0xff]  ;;  %v7214_v60 = vld [vmem:[%s10830_s3 + $0x18] sm:$0xff]  ;;  %v554_v34 = vperm.slane %v10492_v11, 3 }
 0x207   :  { %4073 = vmatpush.bf16.msrb.mxu2 %v6330_v56  ;;  %4087 = vmatpush.bf16.msrb.mxu3 %v6458_v29  ;;  %v7222_v3 = vld [vmem:[%s10830_s3 + $0x58] sm:$0xff] }
 0x208   :  { %v3379_v18 = vadd.f32 %v9281_v22, %v3365_v9  ;;  %v7230_v29 = vld [vmem:[%s10830_s3 + $0x98] sm:$0xff] }
 0x20a   :  { %4046 = vmatpush.bf16.msrb.mxu0 %v6058_v10  ;;  %4060 = vmatpush.bf16.msrb.mxu1 %v6186_v25  ;;  %v3798_v19 = vpop.f32.mrf.mxu2  ;;  %v3824_v37 = vpop.f32.mrf.mxu0  ;;  %v3393_v22 = vadd.f32 %v9289_v27, %v3379_v18  ;;  %v7221_v27 = vld [vmem:[%s10830_s3 + $0x50] sm:$0xff]  ;;  %v7212_v10 = vld [vmem:[%s10830_s3 + $0x8] sm:$0xff]  ;;  %v7238_v18 = vld [vmem:[%s10830_s3 + $0xd8] sm:$0xff] }
 0x20b   :  { %4074 = vmatpush.bf16.msrb.mxu2 %v6314_v35  ;;  %4088 = vmatpush.bf16.msrb.mxu3 %v6442_v62  ;;  %v3838_v1 = vpop.f32.mrf.mxu1  ;;  %v7220_v35 = vld [vmem:[%s10830_s3 + $0x48] sm:$0xff] }
 0x20c   :  { %v3407_v31 = vadd.f32 %v9334_v7, %v3393_v22 }
 0x20d   :  { %4047 = vmatmul.bf16.vlgmr.msrb.gmra.mxu0 %v8241_v32  ;;  %4061 = vmatmul.bf16.vlgmr.msrb.gmra.mxu1 %v8254_v41  ;;  %v7216_v32 = vld [vmem:[%s10830_s3 + $0x28] sm:$0xff]  ;;  %v3771_v41 = vadd.f32 %v3770_v16, %v3757_v55  ;;  %v7227_v16 = vld [vmem:[%s10830_s3 + $0x80] sm:$0xff] }
 0x20e   :  { %4367 = vmatpush.bf16.msra.mxu0 %v7218_v63  ;;  %4381 = vmatpush.bf16.msra.mxu1 %v7226_v0  ;;  %v3421_v7 = vadd.f32 %v9351_v21, %v3407_v31  ;;  %v7228_v63 = vld [vmem:[%s10830_s3 + $0x88] sm:$0xff]  ;;  %v7211_v21 = vld [vmem:[%s10830_s3] sm:$0xff] }
 0x20f   :  { %4075 = vmatmul.bf16.vlgmr.msrb.gmra.mxu2 %v8252_v38  ;;  %4089 = vmatmul.bf16.vlgmr.msrb.gmra.mxu3 %v8262_v46  ;;  %v7224_v38 = vld [vmem:[%s10830_s3 + $0x68] sm:$0xff]  ;;  %v3783_v46 = vadd.f32 %v10675_v57, %v3769_v20  ;;  %v3785_v50 = vadd.f32 %v3784_v23, %v3771_v41  ;;  %v7219_v0 = vld [vmem:[%s10830_s3 + $0x40] sm:$0xff] }
 0x210   :  { %4395 = vmatpush.bf16.msra.mxu2 %v7234_v2  ;;  %v4099_v4 = vmax.f32 %v3421_v7, 0.0  ;;  %v7235_v31 = vld [vmem:[%s10830_s3 + $0xc0] sm:$0xff] }
 0x211   :  { %v3797_v24 = vadd.f32 %v3796_v17, %v3783_v46  ;;  %v3799_v57 = vadd.f32 %v3798_v19, %v3785_v50 }
 0x212   :  { %4368 = vmatpush.bf16.msra.mxu0 %v7217_v8  ;;  %4382 = vmatpush.bf16.msra.mxu1 %v7225_v14  ;;  %v3826_v5 = vpop.f32.mrf.mxu0  ;;  %v4103_v6 = vpack.c.bf16 %v4099_v4, %v4095_v15 }
 0x213   :  { %v3811_v59 = vadd.f32 %v3810_v13, %v3797_v24  ;;  %v3852_v54 = vpop.f32.mrf.mxu2  ;;  %v3813_v12 = vadd.f32 %v3812_v26, %v3799_v57  ;;  %v3866_v43 = vpop.f32.mrf.mxu3 }
 0x214   :  { %4396 = vmatpush.bf16.msra.mxu2 %v7233_v45  ;;  %v3840_v58 = vpop.f32.mrf.mxu1  ;;  %v7242_v45 = vld [vmem:[%s10830_s3 + $0xf8] sm:$0xff] }
 0x215   :  { %v3825_v56 = vadd.f32 %v3824_v37, %v3811_v59  ;;  %v3827_v42 = vadd.f32 %v3826_v5, %v3813_v12  ;;  %4409 = vmatpush.bf16.msra.mxu3 %v7242_v45  ;;  %v7240_v37 = vld [vmem:[%s10830_s3 + $0xe8] sm:$0xff] }
 0x216   :  { %4369 = vmatpush.bf16.msra.mxu0 %v7216_v32  ;;  %4383 = vmatpush.bf16.msra.mxu1 %v7224_v38  ;;  %v7241_v32 = vld [vmem:[%s10830_s3 + $0xf0] sm:$0xff]  ;;  %v7236_v5 = vld [vmem:[%s10830_s3 + $0xc8] sm:$0xff] }
 0x217   :  { %v3839_v33 = vadd.f32 %v3838_v1, %v3825_v56  ;;  %v3841_v25 = vadd.f32 %v3840_v58, %v3827_v42 }
 0x218   :  { %4397 = vmatpush.bf16.msra.mxu2 %v7232_v49 }
 0x219   :  { %v3853_v47 = vadd.f32 %v3852_v54, %v3839_v33  ;;  %4410 = vmatpush.bf16.msra.mxu3 %v7241_v32 }
 0x21a   :  { %4370 = vmatpush.bf16.msra.mxu0 %v7215_v53  ;;  %4384 = vmatpush.bf16.msra.mxu1 %v7223_v52  ;;  %v7239_v53 = vld [vmem:[%s10830_s3 + $0xe0] sm:$0xff] }
 0x21b   :  { %v3854_v36 = vpop.f32.mrf.mxu2  ;;  %v3868_v62 = vpop.f32.mrf.mxu3  ;;  %v3867_v40 = vadd.f32 %v3866_v43, %v3853_v47 }
 0x21c   :  { %4398 = vmatpush.bf16.msra.mxu2 %v7231_v39  ;;  %v3855_v17 = vadd.f32 %v3854_v36, %v3841_v25 }
 0x21d   :  { %v4097_v2 = vmax.f32 %v3867_v40, 0.0  ;;  %4411 = vmatpush.bf16.msra.mxu3 %v7240_v37 }
 0x21e   :  { %4371 = vmatpush.bf16.msra.mxu0 %v7214_v60  ;;  %4385 = vmatpush.bf16.msra.mxu1 %v7222_v3  ;;  %v3869_v13 = vadd.f32 %v3868_v62, %v3855_v17  ;;  %v7237_v60 = vld [vmem:[%s10830_s3 + $0xd0] sm:$0xff] }
 0x220   :  { %4399 = vmatpush.bf16.msra.mxu2 %v7230_v29  ;;  %v4101_v28 = vmax.f32 %v3869_v13, 0.0 }
 0x221   :  { %4412 = vmatpush.bf16.msra.mxu3 %v7239_v53 }
 0x222   :  { %4372 = vmatpush.bf16.msra.mxu0 %v7213_v44  ;;  %4386 = vmatpush.bf16.msra.mxu1 %v7221_v27  ;;  %v4105_v23 = vpack.c.bf16 %v4101_v28, %v4097_v2 }
 0x224   :  { %4400 = vmatpush.bf16.msra.mxu2 %v7229_v51 }
 0x225   :  { %4413 = vmatpush.bf16.msra.mxu3 %v7238_v18 }
 0x226   :  { %4373 = vmatpush.bf16.msra.mxu0 %v7212_v10  ;;  %4387 = vmatpush.bf16.msra.mxu1 %v7220_v35 }
 0x228   :  { %4401 = vmatpush.bf16.msra.mxu2 %v7228_v63 }
 0x229   :  { %4414 = vmatpush.bf16.msra.mxu3 %v7237_v60 }
 0x22a   :  { %4374 = vmatpush.bf16.msra.mxu0 %v7211_v21  ;;  %4388 = vmatpush.bf16.msra.mxu1 %v7219_v0  ;;  %v3880_v8 = vpop.f32.mrf.mxu0  ;;  %v3894_v14 = vpop.f32.mrf.mxu1 }
 0x22b   :  { %v3881_v38 = vadd.f32 %v3880_v8, %v554_v34 }
 0x22c   :  { %4402 = vmatpush.bf16.msra.mxu2 %v7227_v16 }
 0x22d   :  { %4375 = vmatmul.bf16.vlgmr.msra.gmra.mxu0 %v4103_v6  ;;  %4389 = vmatmul.bf16.vlgmr.msra.gmra.mxu1 %v10101_v30  ;;  %v3895_v26 = vadd.f32 %v3894_v14, %v3881_v38 }
 0x22e   :  { %4415 = vmatpush.bf16.msra.mxu3 %v7236_v5 }
 0x22f   :  { %4403 = vmatmul.bf16.vlgmr.msra.gmra.mxu2 %v4105_v23 }
 0x232   :  { %v3882_v48 = vpop.f32.mrf.mxu0  ;;  %v3896_v55 = vpop.f32.mrf.mxu1  ;;  %4416 = vmatpush.bf16.msra.mxu3 %v7235_v31 }
 0x233   :  { %v3908_v20 = vpop.f32.mrf.mxu2  ;;  %v3922_v61 = vpop.f32.mrf.mxu3  ;;  %v3883_v49 = vadd.f32 %v3882_v48, %v554_v34 }
 0x234   :  { %v3909_v1 = vadd.f32 %v3908_v20, %v3895_v26 }
 0x235   :  { %v3897_v9 = vadd.f32 %v3896_v55, %v3883_v49 }
 0x236   :  { %v3923_v52 = vadd.f32 %v3922_v61, %v3909_v1 }
 0x23b   :  { %v3910_v41 = vpop.f32.mrf.mxu2  ;;  %v3924_v30 = vpop.f32.mrf.mxu3 }
 0x23c   :  { %v3911_v39 = vadd.f32 %v3910_v41, %v3897_v9 }
 0x23e   :  { %v3925_v56 = vadd.f32 %v3924_v30, %v3911_v39 }
 0x24a   :  { %v3936_v46 = vpop.f32.mrf.mxu0  ;;  %v3950_v19 = vpop.f32.mrf.mxu1 }
 0x24b   :  { %v3937_v59 = vadd.f32 %v3936_v46, %v3923_v52 }
 0x24d   :  { %v3951_v12 = vadd.f32 %v3950_v19, %v3937_v59  ;;  %v7246_v19 = vld [vmem:[%s10831_s4] ss:$0 sm:$0xff]  ;;  %s7276_s4 = smov 128  }
 0x252   :  { %v3938_v50 = vpop.f32.mrf.mxu0  ;;  %v3952_v57 = vpop.f32.mrf.mxu1 }
 0x253   :  { %v3964_v24 = vpop.f32.mrf.mxu2  ;;  %v3978_v11 = vpop.f32.mrf.mxu3  ;;  %v3939_v29 = vadd.f32 %v3938_v50, %v3925_v56 }
 0x254   :  { %v3965_v44 = vadd.f32 %v3964_v24, %v3951_v12 }
 0x255   :  { %v3953_v27 = vadd.f32 %v3952_v57, %v3939_v29 }
 0x256   :  { %v3979_v58 = vadd.f32 %v3978_v11, %v3965_v44 }
 0x25b   :  { %v3966_v3 = vpop.f32.mrf.mxu2  ;;  %v3980_v54 = vpop.f32.mrf.mxu3 }
 0x25c   :  { %v3967_v51 = vadd.f32 %v3966_v3, %v3953_v27 }
 0x25e   :  { %v3981_v25 = vadd.f32 %v3980_v54, %v3967_v51 }
 0x26a   :  { %v3992_v22 = vpop.f32.mrf.mxu0  ;;  %v4006_v43 = vpop.f32.mrf.mxu1 }
 0x26b   :  { %v3993_v10 = vadd.f32 %v3992_v22, %v3979_v58 }
 0x26d   :  { %v4007_v35 = vadd.f32 %v4006_v43, %v3993_v10 }
 0x272   :  { %v3994_v47 = vpop.f32.mrf.mxu0  ;;  %v4008_v7 = vpop.f32.mrf.mxu1 }
 0x273   :  { %v4020_v42 = vpop.f32.mrf.mxu2  ;;  %v4034_v33 = vpop.f32.mrf.mxu3  ;;  %v3995_v36 = vadd.f32 %v3994_v47, %v3981_v25 }
 0x274   :  { %v4021_v62 = vadd.f32 %v4020_v42, %v4007_v35 }
 0x275   :  { %v4009_v21 = vadd.f32 %v4008_v7, %v3995_v36 }
 0x276   :  { %v4035_v13 = vadd.f32 %v4034_v33, %v4021_v62 }
 0x27b   :  { %v4022_v17 = vpop.f32.mrf.mxu2  ;;  %v4036_v63 = vpop.f32.mrf.mxu3 }
 0x27c   :  { %v4023_v0 = vadd.f32 %v4022_v17, %v4009_v21 }
 0x27e   :  { %v4037_v16 = vadd.f32 %v4036_v63, %v4023_v0 }
 0x28a   :  { %v4048_v40 = vpop.f32.mrf.mxu0  ;;  %v4062_v4 = vpop.f32.mrf.mxu1 }
 0x28b   :  { %v4049_v15 = vadd.f32 %v4048_v40, %v4035_v13 }
 0x28d   :  { %v4063_v23 = vadd.f32 %v4062_v4, %v4049_v15 }
 0x292   :  { %v4076_v28 = vpop.f32.mrf.mxu2  ;;  %v4090_v2 = vpop.f32.mrf.mxu3 }
 0x293   :  { %v4050_v6 = vpop.f32.mrf.mxu0  ;;  %v4077_v14 = vadd.f32 %v4076_v28, %v4063_v23  ;;  %v4064_v20 = vpop.f32.mrf.mxu1 }
 0x294   :  { %v4051_v8 = vadd.f32 %v4050_v6, %v4037_v16 }
 0x295   :  { %v4091_v55 = vadd.f32 %v4090_v2, %v4077_v14 }
 0x296   :  { %v4065_v61 = vadd.f32 %v4064_v20, %v4051_v8 }
 0x297   :  { %v4098_v41 = vmax.f32 %v4091_v55, 0.0 }
 0x29a   :  { %v4078_v48 = vpop.f32.mrf.mxu2  ;;  %v4092_v32 = vpop.f32.mrf.mxu3 }
 0x29b   :  { %v4079_v45 = vadd.f32 %v4078_v48, %v4065_v61 }
 0x29d   :  { %v4093_v34 = vadd.f32 %v4092_v32, %v4079_v45 }
 0x29f   :  { %v4102_v30 = vmax.f32 %v4093_v34, 0.0 }
 0x2a1   :  { %v4106_v38 = vpack.c.bf16 %v4102_v30, %v4098_v41 }
 0x2a3   :  { %4417 = vmatmul.bf16.vlgmr.msra.gmra.mxu3 %v4106_v38 }
 0x2aa   :  { %v4376_v46 = vpop.f32.mrf.mxu0  ;;  %v4390_v37 = vpop.f32.mrf.mxu1 }
 0x2ab   :  { %v4377_v26 = vadd.f32 %v7246_v19, %v4376_v46 }
 0x2ad   :  { %v4391_v24 = vadd.f32 %v4390_v37, %v4377_v26 }
 0x2b2   :  { %v4404_v49 = vpop.f32.mrf.mxu2  ;;  %v4378_v53 = vpop.f32.mrf.mxu0 }
 0x2b3   :  { %v4405_v1 = vadd.f32 %v4404_v49, %v4391_v24  ;;  %v4379_v9 = vadd.f32 %v7246_v19, %v4378_v53  ;;  %v4392_v52 = vpop.f32.mrf.mxu1 }
 0x2b5   :  { %v4393_v57 = vadd.f32 %v4392_v52, %v4379_v9 }
 0x2ba   :  { %v4406_v18 = vpop.f32.mrf.mxu2 }
 0x2bb   :  { %v4407_v39 = vadd.f32 %v4406_v18, %v4393_v57 }
 0x326   :  { %v4418_v11 = vpop.f32.mrf.mxu3 }
 0x327   :  { %v4419_v50 = vadd.f32 %v4418_v11, %v4405_v1 }
 0x329   :  { %4423 = vst [vmem:[#allocation2] sm:$0xff] %v4419_v50 }
 0x32e   :  { %v4420_v59 = vpop.f32.mrf.mxu3 }
 0x32f   :  { %v4421_v60 = vadd.f32 %v4420_v59, %v4407_v39 }
 0x331   :  { %4424 = vst [vmem:[#allocation2 + $0x8] sm:$0xff] %v4421_v60 }
 0x332   :  { %4437 = dma.vmem_to_hbm [thread:$0]  %s4430_s6, 256, %s4432_s9, [#allocation3], %s7276_s4, %s7276_s4, %s7277_s10  }
 0x333   :  { %7273 = dma.done.wait [#allocation3], 256  }
 0x334   :  { %7274 = vsyncadd [#allocation3], 4294967040 }
 0x335   :  { %4442 = vsyncpa [#allocation3], 1 }

</bundles_post_ra>
